<compile_context>
chip_gen: v7x
topology: tpu7x:2x2x1
jax: 0.10.0
libtpu: 0.0.40
codegen_flags: <defaults>
</compile_context>

<pallas_src>
import functools
import math

import jax
import jax.numpy as jnp
from jax.experimental import pallas as pl
from jax.experimental.pallas import tpu as pltpu


# ----------------------------- Pallas kernel -----------------------------
def _svt_kernel(x_ref, mask_ref, wqkv_ref, bqkv_ref, wo_ref, bo_ref,
                w1_ref, b1_ref, w2_ref, b2_ref, lng_ref, lnb_ref,
                out_ref, *, n_layers, n_head):
    """Fused TransformerEncoder (post-LN, ReLU, eps=1e-8) for a block of visits.

    x_ref:    (Vb, cs, E)      code embeddings for Vb visits
    mask_ref: (Vb, 1, cs)      additive key-padding bias (0 valid / -1e9 pad)
    wqkv_ref: (L, E, 3E)       fused in_proj.weight^T  -> x @ wqkv = [Q | K | V]
    bqkv_ref: (L, 1, 3E)
    wo_ref:   (L, E, E)        out_proj.weight^T
    bo_ref:   (L, 1, E)
    w1_ref:   (L, E, F)   b1_ref: (L, 1, F)
    w2_ref:   (L, F, E)   b2_ref: (L, 1, E)
    lng_ref/lnb_ref: (L, 2, 1, E)  layernorm gamma/beta (norm1, norm2)
    out_ref:  (Vb, E)          encoding of code position 0 of every visit
    """
    Vb, cs, E = x_ref.shape
    hd = E // n_head
    eps = 1e-8                       # module sets layer_norm_eps=1e-08 explicitly
    scale = 1.0 / math.sqrt(hd)

    def layer_norm(y, g, b):
        mu = jnp.mean(y, axis=-1, keepdims=True)
        d = y - mu
        var = jnp.mean(d * d, axis=-1, keepdims=True)
        return d * jax.lax.rsqrt(var + eps) * g + b

    bias = mask_ref[...]                                          # (Vb, 1, cs)
    x2 = x_ref[...].astype(jnp.float32).reshape(Vb * cs, E)       # (Vb*cs, E)

    for l in range(n_layers):
        last = (l == n_layers - 1)

        # -------- fused QKV projection: one MXU matmul per layer --------
        qkv2 = jnp.dot(x2, wqkv_ref[l],
                       preferred_element_type=jnp.float32) + bqkv_ref[l]
        qkv3 = qkv2.reshape(Vb, cs, 3 * E)
        k3 = qkv3[:, :, E:2 * E]                                  # (Vb, cs, E)
        v3 = qkv3[:, :, 2 * E:]                                   # (Vb, cs, E)
        if last:
            # only code position 0 is returned by the module -> only its query
            q3 = qkv3[:, 0:1, :E]                                 # (Vb, 1, E)
            res = x2.reshape(Vb, cs, E)[:, 0, :]                  # (Vb, E)
            nq = 1
        else:
            q3 = qkv3[:, :, :E]                                   # (Vb, cs, E)
            res = x2                                              # (Vb*cs, E)
            nq = cs

        # -------- per-head attention on lane slices (no per-head reshapes) ----
        ctx_heads = []
        for h in range(n_head):
            sl = slice(h * hd, (h + 1) * hd)
            s = jnp.einsum("bqd,bkd->bqk", q3[:, :, sl], k3[:, :, sl],
                           preferred_element_type=jnp.float32) * scale + bias
            s = s - jnp.max(s, axis=-1, keepdims=True)
            p = jnp.exp(s)
            p = p * pl.reciprocal(jnp.sum(p, axis=-1, keepdims=True), approx=True)
            ctx_heads.append(
                jnp.einsum("bqk,bkd->bqd", p, v3[:, :, sl],
                           preferred_element_type=jnp.float32))
        ctx = jnp.concatenate(ctx_heads, axis=-1).reshape(Vb * nq, E)

        # -------- fused out-proj + residual/norm1, FFN, residual/norm2 --------
        attn = jnp.dot(ctx, wo_ref[l],
                       preferred_element_type=jnp.float32) + bo_ref[l]
        y = layer_norm(res + attn, lng_ref[l, 0], lnb_ref[l, 0])
        ff = jnp.maximum(
            jnp.dot(y, w1_ref[l], preferred_element_type=jnp.float32) + b1_ref[l],
            0.0)
        ff = jnp.dot(ff, w2_ref[l], preferred_element_type=jnp.float32) + b2_ref[l]
        x2 = layer_norm(y + ff, lng_ref[l, 1], lnb_ref[l, 1])

    # after the last layer x2 is already (Vb, E): position-0 visit encodings
    out_ref[...] = x2.astype(out_ref.dtype)


# ----------------------------- wrapper -----------------------------
def _pick_visit_block(n):
    """Visit-block size: multiple of 8 (out rows land on sublane boundaries),
    large enough to amortize the ~0.35us/grid-step overhead, small enough that
    per-block f32 activations stay a few MiB (fits v5e's 16 MiB scoped-VMEM
    default and v7x's 64 MiB physical VMEM), and giving >= 2 grid steps when
    possible so v7x's two TensorCores both get work."""
    if n <= 8:
        return max(n, 1)
    target = min(256, (n + 1) // 2)
    return max(8, (target // 8) * 8)


def _pack_params(layers):
    """Repack PyTorch-layout encoder-layer params into the kernel layout."""
    E = layers[0]["in_proj_w"].shape[1]
    wqkv = jnp.stack([lay["in_proj_w"].T for lay in layers])                 # (L,E,3E)
    bqkv = jnp.stack([lay["in_proj_b"].reshape(1, 3 * E) for lay in layers])  # (L,1,3E)
    wo = jnp.stack([lay["out_w"].T for lay in layers])                        # (L,E,E)
    bo = jnp.stack([lay["out_b"].reshape(1, E) for lay in layers])            # (L,1,E)
    w1 = jnp.stack([lay["w1"].T for lay in layers])                           # (L,E,F)
    b1 = jnp.stack([lay["b1"].reshape(1, -1) for lay in layers])              # (L,1,F)
    w2 = jnp.stack([lay["w2"].T for lay in layers])                           # (L,F,E)
    b2 = jnp.stack([lay["b2"].reshape(1, E) for lay in layers])               # (L,1,E)
    lng = jnp.stack([jnp.stack([lay["g1"].reshape(1, E), lay["g2"].reshape(1, E)])
                     for lay in layers])                                      # (L,2,1,E)
    lnb = jnp.stack([jnp.stack([lay["be1"].reshape(1, E), lay["be2"].reshape(1, E)])
                     for lay in layers])                                      # (L,2,1,E)
    return (wqkv, bqkv, wo, bo, w1, b1, w2, b2, lng, lnb)


def single_visit_transformer_forward(code_embeddings, visit_lengths, layers, n_head):
    """Equivalent of SingleVisitTransformer.forward (eval mode)."""
    bs, vs, cs, E = code_embeddings.shape
    N = bs * vs
    L = len(layers)
    packed = _pack_params(layers)
    F = packed[4].shape[-1]

    x = code_embeddings.reshape(N, cs, E).astype(jnp.float32)
    # key-padding mask: code index >= visit_length -> padded key
    pad = jnp.arange(cs, dtype=jnp.int32)[None, None, :] >= visit_lengths[:, :, None]
    mask_bias = jnp.where(pad, jnp.float32(-1e9), jnp.float32(0.0)).reshape(N, 1, cs)

    block_v = _pick_visit_block(N)
    n_extra = (-N) % block_v
    if n_extra:                                   # pad visits so the grid tiles evenly
        x = jnp.concatenate([x, jnp.zeros((n_extra, cs, E), x.dtype)], axis=0)
        mask_bias = jnp.concatenate(
            [mask_bias, jnp.zeros((n_extra, 1, cs), mask_bias.dtype)], axis=0)
    Np = N + n_extra
    grid = (Np // block_v,)

    flops = L * Np * cs * 2 * E * (4 * E + 2 * F + 2 * cs)
    transc = L * Np * n_head * cs * cs + 4 * L * Np * cs
    nbytes = 4 * (int(x.size) + int(mask_bias.size) + Np * E
                  + sum(int(p.size) for p in packed))

    out = pl.pallas_call(
        functools.partial(_svt_kernel, n_layers=L, n_head=n_head),
        out_shape=jax.ShapeDtypeStruct((Np, E), code_embeddings.dtype),
        grid=grid,
        in_specs=[
            pl.BlockSpec((block_v, cs, E), lambda i: (i, 0, 0)),   # visit block
            pl.BlockSpec((block_v, 1, cs), lambda i: (i, 0, 0)),   # mask bias
        ] + [pl.BlockSpec(memory_space=pltpu.MemorySpace.VMEM)] * len(packed),
        out_specs=pl.BlockSpec((block_v, E), lambda i: (i, 0)),
        compiler_params=pltpu.CompilerParams(
            dimension_semantics=("parallel",),
            vmem_limit_bytes=32 * 1024 * 1024),
        cost_estimate=pl.CostEstimate(flops=int(flops), transcendentals=int(transc),
                                      bytes_accessed=int(nbytes)),
    )(x, mask_bias, *packed)
    return out[:N].reshape(bs, vs, E)


# ----------------------------- reference (pure JAX) -----------------------------
def _layer_norm_ref(x, g, b, eps=1e-8):
    mu = jnp.mean(x, axis=-1, keepdims=True)
    var = jnp.mean((x - mu) ** 2, axis=-1, keepdims=True)
    return (x - mu) / jnp.sqrt(var + eps) * g + b


def single_visit_transformer_ref(code_embeddings, visit_lengths, layers, n_head):
    bs, vs, cs, E = code_embeddings.shape
    N = bs * vs
    hd = E // n_head
    x = code_embeddings.reshape(N, cs, E).astype(jnp.float32)
    pad = jnp.arange(cs, dtype=jnp.int32)[None, None, :] >= visit_lengths[:, :, None]
    bias = jnp.where(pad, jnp.float32(-1e9), jnp.float32(0.0)).reshape(N, cs)

    for lay in layers:
        qkv = x @ lay["in_proj_w"].T + lay["in_proj_b"]
        q, k, v = jnp.split(qkv, 3, axis=-1)

        def heads(t):
            return t.reshape(N, cs, n_head, hd).transpose(0, 2, 1, 3)

        qh, kh, vh = heads(q), heads(k), heads(v)
        s = jnp.einsum("nhqd,nhkd->nhqk", qh, kh) / math.sqrt(hd) + bias[:, None, None, :]
        p = jax.nn.softmax(s, axis=-1)
        ctx = jnp.einsum("nhqk,nhkd->nhqd", p, vh).transpose(0, 2, 1, 3).reshape(N, cs, E)
        attn = ctx @ lay["out_w"].T + lay["out_b"]
        y = _layer_norm_ref(x + attn, lay["g1"], lay["be1"])
        ff = jax.nn.relu(y @ lay["w1"].T + lay["b1"]) @ lay["w2"].T + lay["b2"]
        x = _layer_norm_ref(y + ff, lay["g2"], lay["be2"])
    return x[:, 0, :].reshape(bs, vs, E)


# ----------------------------- parameter init -----------------------------
def _init_layer_params(key, emb_size, ffn_dim):
    """PyTorch-layout params for one nn.TransformerEncoderLayer."""
    E, F = emb_size, ffn_dim
    ks = jax.random.split(key, 10)
    s_e = 1.0 / math.sqrt(E)
    s_f = 1.0 / math.sqrt(F)
    return dict(
        in_proj_w=jax.random.uniform(ks[0], (3 * E, E), jnp.float32, -s_e, s_e),
        in_proj_b=jax.random.uniform(ks[1], (3 * E,), jnp.float32, -s_e, s_e),
        out_w=jax.random.uniform(ks[2], (E, E), jnp.float32, -s_e, s_e),
        out_b=jnp.zeros((E,), jnp.float32),          # MHA zeroes out_proj.bias
        w1=jax.random.uniform(ks[3], (F, E), jnp.float32, -s_e, s_e),
        b1=jax.random.uniform(ks[4], (F,), jnp.float32, -s_e, s_e),
        w2=jax.random.uniform(ks[5], (E, F), jnp.float32, -s_f, s_f),
        b2=jax.random.uniform(ks[6], (E,), jnp.float32, -s_f, s_f),
        g1=1.0 + 0.1 * jax.random.normal(ks[7], (E,), jnp.float32),
        be1=0.1 * jax.random.normal(ks[8], (E,), jnp.float32),
        g2=1.0 + 0.1 * jax.random.normal(ks[9], (E,), jnp.float32),
        be2=jnp.zeros((E,), jnp.float32),
    )


if __name__ == "__main__":
    emb_size = 32      # code embedding dim
    n_head = 4
    hidden_dim = 64    # FFN dim_feedforward
    n_layers = 2       # nn.TransformerEncoder(encoderLayer, 2)
    bs, vs, cs = 2, 4, 8

    key = jax.random.PRNGKey(0)
    key, xk, lk = jax.random.split(key, 3)
    code_embeddings = jax.random.normal(xk, (bs, vs, cs, emb_size), jnp.float32)
    visit_lengths = jax.random.randint(lk, (bs, vs), 1, cs + 1)   # >= 1 real code / visit

    layers = []
    for _ in range(n_layers):
        key, sub = jax.random.split(key)
        layers.append(_init_layer_params(sub, emb_size, hidden_dim))

    out = single_visit_transformer_forward(code_embeddings, visit_lengths, layers, n_head)
    out = jax.block_until_ready(out)
    assert out.shape == (bs, vs, emb_size)

    with jax.default_matmul_precision("float32"):
        ref = jax.block_until_ready(
            single_visit_transformer_ref(code_embeddings, visit_lengths, layers, n_head))
    max_err = jnp.max(jnp.abs(out - ref))
    # 2e-3 headroom: the softmax denominator uses the EUP's approximate reciprocal.
    assert jnp.allclose(out, ref, atol=2e-3, rtol=2e-3), f"max abs err {max_err}"

    print("KERNEL_OK")
</pallas_src>

<mosaic_0001>
module attributes {stable_mosaic.version = 11 : i64} {
  func.func @_svt_kernel(%arg0: i32, %arg1: memref<8x8x32xf32, #tpu.memory_space<vmem>>, %arg2: memref<8x1x8xf32, #tpu.memory_space<vmem>>, %arg3: memref<2x32x96xf32, #tpu.memory_space<vmem>>, %arg4: memref<2x1x96xf32, #tpu.memory_space<vmem>>, %arg5: memref<2x32x32xf32, #tpu.memory_space<vmem>>, %arg6: memref<2x1x32xf32, #tpu.memory_space<vmem>>, %arg7: memref<2x32x64xf32, #tpu.memory_space<vmem>>, %arg8: memref<2x1x64xf32, #tpu.memory_space<vmem>>, %arg9: memref<2x64x32xf32, #tpu.memory_space<vmem>>, %arg10: memref<2x1x32xf32, #tpu.memory_space<vmem>>, %arg11: memref<2x2x1x32xf32, #tpu.memory_space<vmem>>, %arg12: memref<2x2x1x32xf32, #tpu.memory_space<vmem>>, %arg13: memref<8x32xf32, #tpu.memory_space<vmem>>) attributes {dimension_semantics = [#tpu.dimension_semantics<parallel>], iteration_bounds = array<i64: 1>, scalar_prefetch = 0 : i64, scratch_operands = 0 : i64, tpu.core_type = #tpu.core_type<tc>, window_params = [{transform_indices = @transform_0, window_bounds = array<i64: 8, 8, 32>}, {transform_indices = @transform_1, window_bounds = array<i64: 8, 1, 8>}, {pipeline_mode = #tpu.pipeline_mode<synchronous>, transform_indices = @transform_2, window_bounds = array<i64: 2, 32, 96>}, {pipeline_mode = #tpu.pipeline_mode<synchronous>, transform_indices = @transform_3, window_bounds = array<i64: 2, 1, 96>}, {pipeline_mode = #tpu.pipeline_mode<synchronous>, transform_indices = @transform_4, window_bounds = array<i64: 2, 32, 32>}, {pipeline_mode = #tpu.pipeline_mode<synchronous>, transform_indices = @transform_5, window_bounds = array<i64: 2, 1, 32>}, {pipeline_mode = #tpu.pipeline_mode<synchronous>, transform_indices = @transform_6, window_bounds = array<i64: 2, 32, 64>}, {pipeline_mode = #tpu.pipeline_mode<synchronous>, transform_indices = @transform_7, window_bounds = array<i64: 2, 1, 64>}, {pipeline_mode = #tpu.pipeline_mode<synchronous>, transform_indices = @transform_8, window_bounds = array<i64: 2, 64, 32>}, {pipeline_mode = #tpu.pipeline_mode<synchronous>, transform_indices = @transform_9, window_bounds = array<i64: 2, 1, 32>}, {pipeline_mode = #tpu.pipeline_mode<synchronous>, transform_indices = @transform_10, window_bounds = array<i64: 2, 2, 1, 32>}, {pipeline_mode = #tpu.pipeline_mode<synchronous>, transform_indices = @transform_11, window_bounds = array<i64: 2, 2, 1, 32>}, {transform_indices = @transform_12, window_bounds = array<i64: 8, 32>}]} {
    %c0 = arith.constant 0 : index
    %c0_0 = arith.constant 0 : index
    %c0_1 = arith.constant 0 : index
    %0 = vector.load %arg2[%c0, %c0_0, %c0_1] : memref<8x1x8xf32, #tpu.memory_space<vmem>>, vector<8x1x8xf32>
    %c0_2 = arith.constant 0 : index
    %c0_3 = arith.constant 0 : index
    %c0_4 = arith.constant 0 : index
    %1 = vector.load %arg1[%c0_2, %c0_3, %c0_4] : memref<8x8x32xf32, #tpu.memory_space<vmem>>, vector<8x8x32xf32>
    %2 = vector.shape_cast %1 : vector<8x8x32xf32> to vector<64x32xf32>
    %c0_5 = arith.constant 0 : index
    %c0_6 = arith.constant 0 : index
    %c0_7 = arith.constant 0 : index
    %3 = vector.load %arg3[%c0_5, %c0_6, %c0_7] : memref<2x32x96xf32, #tpu.memory_space<vmem>>, vector<1x32x96xf32>
    %4 = vector.shape_cast %3 : vector<1x32x96xf32> to vector<32x96xf32>
    %cst = arith.constant dense<0.000000e+00> : vector<64x96xf32>
    %5 = tpu.matmul %2, %4, %cst {dimension_numbers = #tpu.dot_dimension_numbers<[1], [0], [0], [1], [0, 0, 1, 1], [], []>} : vector<64x32xf32>, vector<32x96xf32>, vector<64x96xf32> -> vector<64x96xf32>
    %c0_8 = arith.constant 0 : index
    %c0_9 = arith.constant 0 : index
    %c0_10 = arith.constant 0 : index
    %6 = vector.load %arg4[%c0_8, %c0_9, %c0_10] : memref<2x1x96xf32, #tpu.memory_space<vmem>>, vector<1x1x96xf32>
    %7 = vector.shape_cast %6 : vector<1x1x96xf32> to vector<1x96xf32>
    %8 = vector.broadcast %7 : vector<1x96xf32> to vector<64x96xf32>
    %9 = arith.addf %5, %8 : vector<64x96xf32>
    %10 = vector.shape_cast %9 : vector<64x96xf32> to vector<8x8x96xf32>
    %11 = vector.extract_strided_slice %10 {offsets = [0, 0, 32], sizes = [8, 8, 32], strides = [1, 1, 1]} : vector<8x8x96xf32> to vector<8x8x32xf32>
    %12 = vector.extract_strided_slice %10 {offsets = [0, 0, 64], sizes = [8, 8, 32], strides = [1, 1, 1]} : vector<8x8x96xf32> to vector<8x8x32xf32>
    %13 = vector.extract_strided_slice %10 {offsets = [0, 0, 0], sizes = [8, 8, 32], strides = [1, 1, 1]} : vector<8x8x96xf32> to vector<8x8x32xf32>
    %14 = vector.extract_strided_slice %13 {offsets = [0, 0, 0], sizes = [8, 8, 8], strides = [1, 1, 1]} : vector<8x8x32xf32> to vector<8x8x8xf32>
    %15 = vector.extract_strided_slice %11 {offsets = [0, 0, 0], sizes = [8, 8, 8], strides = [1, 1, 1]} : vector<8x8x32xf32> to vector<8x8x8xf32>
    "tpu.trace_start"() <{level = 10 : i32, message = "bqd,bkd->bqk"}> : () -> ()
    %cst_11 = arith.constant dense<0.000000e+00> : vector<8x8x8xf32>
    %16 = tpu.matmul %14, %15, %cst_11 {dimension_numbers = #tpu.dot_dimension_numbers<[2], [2], [1], [1], [0, 0, 0, 1, 1, 1], [0], [0]>} : vector<8x8x8xf32>, vector<8x8x8xf32>, vector<8x8x8xf32> -> vector<8x8x8xf32>
    "tpu.trace_stop"() : () -> ()
    %cst_12 = arith.constant 0.353553385 : f32
    %17 = vector.broadcast %cst_12 : f32 to vector<8x8x8xf32>
    %18 = arith.mulf %16, %17 : vector<8x8x8xf32>
    %19 = vector.broadcast %0 : vector<8x1x8xf32> to vector<8x8x8xf32>
    %20 = arith.addf %18, %19 : vector<8x8x8xf32>
    %cst_13 = arith.constant dense<0xFF800000> : vector<8x8xf32>
    %21 = vector.multi_reduction <maximumf>, %20, %cst_13 [2] : vector<8x8x8xf32> to vector<8x8xf32>
    %22 = vector.shape_cast %21 : vector<8x8xf32> to vector<8x8x1xf32>
    %23 = vector.broadcast %22 : vector<8x8x1xf32> to vector<8x8x8xf32>
    %24 = arith.subf %20, %23 : vector<8x8x8xf32>
    %25 = math.exp %24 : vector<8x8x8xf32>
    %cst_14 = arith.constant dense<0.000000e+00> : vector<8x8xf32>
    %26 = vector.multi_reduction <add>, %25, %cst_14 [2] : vector<8x8x8xf32> to vector<8x8xf32>
    %27 = vector.shape_cast %26 : vector<8x8xf32> to vector<8x8x1xf32>
    %28 = tpu.reciprocal %27 {approx = true} : vector<8x8x1xf32> -> vector<8x8x1xf32>
    %29 = vector.broadcast %28 : vector<8x8x1xf32> to vector<8x8x8xf32>
    %30 = arith.mulf %25, %29 : vector<8x8x8xf32>
    %31 = vector.extract_strided_slice %12 {offsets = [0, 0, 0], sizes = [8, 8, 8], strides = [1, 1, 1]} : vector<8x8x32xf32> to vector<8x8x8xf32>
    "tpu.trace_start"() <{level = 10 : i32, message = "bqk,bkd->bqd"}> : () -> ()
    %cst_15 = arith.constant dense<0.000000e+00> : vector<8x8x8xf32>
    %32 = tpu.matmul %30, %31, %cst_15 {dimension_numbers = #tpu.dot_dimension_numbers<[2], [1], [1], [2], [0, 0, 0, 1, 1, 2], [0], [0]>} : vector<8x8x8xf32>, vector<8x8x8xf32>, vector<8x8x8xf32> -> vector<8x8x8xf32>
    "tpu.trace_stop"() : () -> ()
    %33 = vector.extract_strided_slice %13 {offsets = [0, 0, 8], sizes = [8, 8, 8], strides = [1, 1, 1]} : vector<8x8x32xf32> to vector<8x8x8xf32>
    %34 = vector.extract_strided_slice %11 {offsets = [0, 0, 8], sizes = [8, 8, 8], strides = [1, 1, 1]} : vector<8x8x32xf32> to vector<8x8x8xf32>
    "tpu.trace_start"() <{level = 10 : i32, message = "bqd,bkd->bqk"}> : () -> ()
    %cst_16 = arith.constant dense<0.000000e+00> : vector<8x8x8xf32>
    %35 = tpu.matmul %33, %34, %cst_16 {dimension_numbers = #tpu.dot_dimension_numbers<[2], [2], [1], [1], [0, 0, 0, 1, 1, 1], [0], [0]>} : vector<8x8x8xf32>, vector<8x8x8xf32>, vector<8x8x8xf32> -> vector<8x8x8xf32>
    "tpu.trace_stop"() : () -> ()
    %cst_17 = arith.constant 0.353553385 : f32
    %36 = vector.broadcast %cst_17 : f32 to vector<8x8x8xf32>
    %37 = arith.mulf %35, %36 : vector<8x8x8xf32>
    %38 = vector.broadcast %0 : vector<8x1x8xf32> to vector<8x8x8xf32>
    %39 = arith.addf %37, %38 : vector<8x8x8xf32>
    %cst_18 = arith.constant dense<0xFF800000> : vector<8x8xf32>
    %40 = vector.multi_reduction <maximumf>, %39, %cst_18 [2] : vector<8x8x8xf32> to vector<8x8xf32>
    %41 = vector.shape_cast %40 : vector<8x8xf32> to vector<8x8x1xf32>
    %42 = vector.broadcast %41 : vector<8x8x1xf32> to vector<8x8x8xf32>
    %43 = arith.subf %39, %42 : vector<8x8x8xf32>
    %44 = math.exp %43 : vector<8x8x8xf32>
    %cst_19 = arith.constant dense<0.000000e+00> : vector<8x8xf32>
    %45 = vector.multi_reduction <add>, %44, %cst_19 [2] : vector<8x8x8xf32> to vector<8x8xf32>
    %46 = vector.shape_cast %45 : vector<8x8xf32> to vector<8x8x1xf32>
    %47 = tpu.reciprocal %46 {approx = true} : vector<8x8x1xf32> -> vector<8x8x1xf32>
    %48 = vector.broadcast %47 : vector<8x8x1xf32> to vector<8x8x8xf32>
    %49 = arith.mulf %44, %48 : vector<8x8x8xf32>
    %50 = vector.extract_strided_slice %12 {offsets = [0, 0, 8], sizes = [8, 8, 8], strides = [1, 1, 1]} : vector<8x8x32xf32> to vector<8x8x8xf32>
    "tpu.trace_start"() <{level = 10 : i32, message = "bqk,bkd->bqd"}> : () -> ()
    %cst_20 = arith.constant dense<0.000000e+00> : vector<8x8x8xf32>
    %51 = tpu.matmul %49, %50, %cst_20 {dimension_numbers = #tpu.dot_dimension_numbers<[2], [1], [1], [2], [0, 0, 0, 1, 1, 2], [0], [0]>} : vector<8x8x8xf32>, vector<8x8x8xf32>, vector<8x8x8xf32> -> vector<8x8x8xf32>
    "tpu.trace_stop"() : () -> ()
    %52 = vector.extract_strided_slice %13 {offsets = [0, 0, 16], sizes = [8, 8, 8], strides = [1, 1, 1]} : vector<8x8x32xf32> to vector<8x8x8xf32>
    %53 = vector.extract_strided_slice %11 {offsets = [0, 0, 16], sizes = [8, 8, 8], strides = [1, 1, 1]} : vector<8x8x32xf32> to vector<8x8x8xf32>
    "tpu.trace_start"() <{level = 10 : i32, message = "bqd,bkd->bqk"}> : () -> ()
    %cst_21 = arith.constant dense<0.000000e+00> : vector<8x8x8xf32>
    %54 = tpu.matmul %52, %53, %cst_21 {dimension_numbers = #tpu.dot_dimension_numbers<[2], [2], [1], [1], [0, 0, 0, 1, 1, 1], [0], [0]>} : vector<8x8x8xf32>, vector<8x8x8xf32>, vector<8x8x8xf32> -> vector<8x8x8xf32>
    "tpu.trace_stop"() : () -> ()
    %cst_22 = arith.constant 0.353553385 : f32
    %55 = vector.broadcast %cst_22 : f32 to vector<8x8x8xf32>
    %56 = arith.mulf %54, %55 : vector<8x8x8xf32>
    %57 = vector.broadcast %0 : vector<8x1x8xf32> to vector<8x8x8xf32>
    %58 = arith.addf %56, %57 : vector<8x8x8xf32>
    %cst_23 = arith.constant dense<0xFF800000> : vector<8x8xf32>
    %59 = vector.multi_reduction <maximumf>, %58, %cst_23 [2] : vector<8x8x8xf32> to vector<8x8xf32>
    %60 = vector.shape_cast %59 : vector<8x8xf32> to vector<8x8x1xf32>
    %61 = vector.broadcast %60 : vector<8x8x1xf32> to vector<8x8x8xf32>
    %62 = arith.subf %58, %61 : vector<8x8x8xf32>
    %63 = math.exp %62 : vector<8x8x8xf32>
    %cst_24 = arith.constant dense<0.000000e+00> : vector<8x8xf32>
    %64 = vector.multi_reduction <add>, %63, %cst_24 [2] : vector<8x8x8xf32> to vector<8x8xf32>
    %65 = vector.shape_cast %64 : vector<8x8xf32> to vector<8x8x1xf32>
    %66 = tpu.reciprocal %65 {approx = true} : vector<8x8x1xf32> -> vector<8x8x1xf32>
    %67 = vector.broadcast %66 : vector<8x8x1xf32> to vector<8x8x8xf32>
    %68 = arith.mulf %63, %67 : vector<8x8x8xf32>
    %69 = vector.extract_strided_slice %12 {offsets = [0, 0, 16], sizes = [8, 8, 8], strides = [1, 1, 1]} : vector<8x8x32xf32> to vector<8x8x8xf32>
    "tpu.trace_start"() <{level = 10 : i32, message = "bqk,bkd->bqd"}> : () -> ()
    %cst_25 = arith.constant dense<0.000000e+00> : vector<8x8x8xf32>
    %70 = tpu.matmul %68, %69, %cst_25 {dimension_numbers = #tpu.dot_dimension_numbers<[2], [1], [1], [2], [0, 0, 0, 1, 1, 2], [0], [0]>} : vector<8x8x8xf32>, vector<8x8x8xf32>, vector<8x8x8xf32> -> vector<8x8x8xf32>
    "tpu.trace_stop"() : () -> ()
    %71 = vector.extract_strided_slice %13 {offsets = [0, 0, 24], sizes = [8, 8, 8], strides = [1, 1, 1]} : vector<8x8x32xf32> to vector<8x8x8xf32>
    %72 = vector.extract_strided_slice %11 {offsets = [0, 0, 24], sizes = [8, 8, 8], strides = [1, 1, 1]} : vector<8x8x32xf32> to vector<8x8x8xf32>
    "tpu.trace_start"() <{level = 10 : i32, message = "bqd,bkd->bqk"}> : () -> ()
    %cst_26 = arith.constant dense<0.000000e+00> : vector<8x8x8xf32>
    %73 = tpu.matmul %71, %72, %cst_26 {dimension_numbers = #tpu.dot_dimension_numbers<[2], [2], [1], [1], [0, 0, 0, 1, 1, 1], [0], [0]>} : vector<8x8x8xf32>, vector<8x8x8xf32>, vector<8x8x8xf32> -> vector<8x8x8xf32>
    "tpu.trace_stop"() : () -> ()
    %cst_27 = arith.constant 0.353553385 : f32
    %74 = vector.broadcast %cst_27 : f32 to vector<8x8x8xf32>
    %75 = arith.mulf %73, %74 : vector<8x8x8xf32>
    %76 = vector.broadcast %0 : vector<8x1x8xf32> to vector<8x8x8xf32>
    %77 = arith.addf %75, %76 : vector<8x8x8xf32>
    %cst_28 = arith.constant dense<0xFF800000> : vector<8x8xf32>
    %78 = vector.multi_reduction <maximumf>, %77, %cst_28 [2] : vector<8x8x8xf32> to vector<8x8xf32>
    %79 = vector.shape_cast %78 : vector<8x8xf32> to vector<8x8x1xf32>
    %80 = vector.broadcast %79 : vector<8x8x1xf32> to vector<8x8x8xf32>
    %81 = arith.subf %77, %80 : vector<8x8x8xf32>
    %82 = math.exp %81 : vector<8x8x8xf32>
    %cst_29 = arith.constant dense<0.000000e+00> : vector<8x8xf32>
    %83 = vector.multi_reduction <add>, %82, %cst_29 [2] : vector<8x8x8xf32> to vector<8x8xf32>
    %84 = vector.shape_cast %83 : vector<8x8xf32> to vector<8x8x1xf32>
    %85 = tpu.reciprocal %84 {approx = true} : vector<8x8x1xf32> -> vector<8x8x1xf32>
    %86 = vector.broadcast %85 : vector<8x8x1xf32> to vector<8x8x8xf32>
    %87 = arith.mulf %82, %86 : vector<8x8x8xf32>
    %88 = vector.extract_strided_slice %12 {offsets = [0, 0, 24], sizes = [8, 8, 8], strides = [1, 1, 1]} : vector<8x8x32xf32> to vector<8x8x8xf32>
    "tpu.trace_start"() <{level = 10 : i32, message = "bqk,bkd->bqd"}> : () -> ()
    %cst_30 = arith.constant dense<0.000000e+00> : vector<8x8x8xf32>
    %89 = tpu.matmul %87, %88, %cst_30 {dimension_numbers = #tpu.dot_dimension_numbers<[2], [1], [1], [2], [0, 0, 0, 1, 1, 2], [0], [0]>} : vector<8x8x8xf32>, vector<8x8x8xf32>, vector<8x8x8xf32> -> vector<8x8x8xf32>
    "tpu.trace_stop"() : () -> ()
    %90 = tpu.concatenate %32, %51, %70, %89 in 2 : vector<8x8x8xf32>, vector<8x8x8xf32>, vector<8x8x8xf32>, vector<8x8x8xf32> -> vector<8x8x32xf32>
    %91 = vector.shape_cast %90 : vector<8x8x32xf32> to vector<64x32xf32>
    %c0_31 = arith.constant 0 : index
    %c0_32 = arith.constant 0 : index
    %c0_33 = arith.constant 0 : index
    %92 = vector.load %arg5[%c0_31, %c0_32, %c0_33] : memref<2x32x32xf32, #tpu.memory_space<vmem>>, vector<1x32x32xf32>
    %93 = vector.shape_cast %92 : vector<1x32x32xf32> to vector<32x32xf32>
    %cst_34 = arith.constant dense<0.000000e+00> : vector<64x32xf32>
    %94 = tpu.matmul %91, %93, %cst_34 {dimension_numbers = #tpu.dot_dimension_numbers<[1], [0], [0], [1], [0, 0, 1, 1], [], []>} : vector<64x32xf32>, vector<32x32xf32>, vector<64x32xf32> -> vector<64x32xf32>
    %c0_35 = arith.constant 0 : index
    %c0_36 = arith.constant 0 : index
    %c0_37 = arith.constant 0 : index
    %95 = vector.load %arg6[%c0_35, %c0_36, %c0_37] : memref<2x1x32xf32, #tpu.memory_space<vmem>>, vector<1x1x32xf32>
    %96 = vector.shape_cast %95 : vector<1x1x32xf32> to vector<1x32xf32>
    %97 = vector.broadcast %96 : vector<1x32xf32> to vector<64x32xf32>
    %98 = arith.addf %94, %97 : vector<64x32xf32>
    %99 = arith.addf %2, %98 : vector<64x32xf32>
    %c0_38 = arith.constant 0 : index
    %c0_39 = arith.constant 0 : index
    %c0_40 = arith.constant 0 : index
    %c0_41 = arith.constant 0 : index
    %100 = vector.load %arg11[%c0_38, %c0_39, %c0_40, %c0_41] : memref<2x2x1x32xf32, #tpu.memory_space<vmem>>, vector<1x1x1x32xf32>
    %101 = vector.shape_cast %100 : vector<1x1x1x32xf32> to vector<1x32xf32>
    %c0_42 = arith.constant 0 : index
    %c0_43 = arith.constant 0 : index
    %c0_44 = arith.constant 0 : index
    %c0_45 = arith.constant 0 : index
    %102 = vector.load %arg12[%c0_42, %c0_43, %c0_44, %c0_45] : memref<2x2x1x32xf32, #tpu.memory_space<vmem>>, vector<1x1x1x32xf32>
    %103 = vector.shape_cast %102 : vector<1x1x1x32xf32> to vector<1x32xf32>
    %cst_46 = arith.constant dense<0.000000e+00> : vector<64xf32>
    %104 = vector.multi_reduction <add>, %99, %cst_46 [1] : vector<64x32xf32> to vector<64xf32>
    %105 = vector.shape_cast %104 : vector<64xf32> to vector<64x1xf32>
    %cst_47 = arith.constant 3.200000e+01 : f32
    %106 = vector.broadcast %cst_47 : f32 to vector<64x1xf32>
    %107 = arith.divf %105, %106 : vector<64x1xf32>
    %108 = vector.broadcast %107 : vector<64x1xf32> to vector<64x32xf32>
    %109 = arith.subf %99, %108 : vector<64x32xf32>
    %110 = arith.mulf %109, %109 : vector<64x32xf32>
    %cst_48 = arith.constant dense<0.000000e+00> : vector<64xf32>
    %111 = vector.multi_reduction <add>, %110, %cst_48 [1] : vector<64x32xf32> to vector<64xf32>
    %112 = vector.shape_cast %111 : vector<64xf32> to vector<64x1xf32>
    %cst_49 = arith.constant 3.200000e+01 : f32
    %113 = vector.broadcast %cst_49 : f32 to vector<64x1xf32>
    %114 = arith.divf %112, %113 : vector<64x1xf32>
    %cst_50 = arith.constant 9.99999993E-9 : f32
    %115 = vector.broadcast %cst_50 : f32 to vector<64x1xf32>
    %116 = arith.addf %114, %115 : vector<64x1xf32>
    %117 = math.rsqrt %116 : vector<64x1xf32>
    %118 = vector.broadcast %117 : vector<64x1xf32> to vector<64x32xf32>
    %119 = arith.mulf %109, %118 : vector<64x32xf32>
    %120 = vector.broadcast %101 : vector<1x32xf32> to vector<64x32xf32>
    %121 = arith.mulf %119, %120 : vector<64x32xf32>
    %122 = vector.broadcast %103 : vector<1x32xf32> to vector<64x32xf32>
    %123 = arith.addf %121, %122 : vector<64x32xf32>
    %c0_51 = arith.constant 0 : index
    %c0_52 = arith.constant 0 : index
    %c0_53 = arith.constant 0 : index
    %124 = vector.load %arg7[%c0_51, %c0_52, %c0_53] : memref<2x32x64xf32, #tpu.memory_space<vmem>>, vector<1x32x64xf32>
    %125 = vector.shape_cast %124 : vector<1x32x64xf32> to vector<32x64xf32>
    %cst_54 = arith.constant dense<0.000000e+00> : vector<64x64xf32>
    %126 = tpu.matmul %123, %125, %cst_54 {dimension_numbers = #tpu.dot_dimension_numbers<[1], [0], [0], [1], [0, 0, 1, 1], [], []>} : vector<64x32xf32>, vector<32x64xf32>, vector<64x64xf32> -> vector<64x64xf32>
    %c0_55 = arith.constant 0 : index
    %c0_56 = arith.constant 0 : index
    %c0_57 = arith.constant 0 : index
    %127 = vector.load %arg8[%c0_55, %c0_56, %c0_57] : memref<2x1x64xf32, #tpu.memory_space<vmem>>, vector<1x1x64xf32>
    %128 = vector.shape_cast %127 : vector<1x1x64xf32> to vector<1x64xf32>
    %129 = vector.broadcast %128 : vector<1x64xf32> to vector<64x64xf32>
    %130 = arith.addf %126, %129 : vector<64x64xf32>
    %cst_58 = arith.constant 0.000000e+00 : f32
    %131 = vector.broadcast %cst_58 : f32 to vector<64x64xf32>
    %132 = arith.maximumf %130, %131 : vector<64x64xf32>
    %c0_59 = arith.constant 0 : index
    %c0_60 = arith.constant 0 : index
    %c0_61 = arith.constant 0 : index
    %133 = vector.load %arg9[%c0_59, %c0_60, %c0_61] : memref<2x64x32xf32, #tpu.memory_space<vmem>>, vector<1x64x32xf32>
    %134 = vector.shape_cast %133 : vector<1x64x32xf32> to vector<64x32xf32>
    %cst_62 = arith.constant dense<0.000000e+00> : vector<64x32xf32>
    %135 = tpu.matmul %132, %134, %cst_62 {dimension_numbers = #tpu.dot_dimension_numbers<[1], [0], [0], [1], [0, 0, 1, 1], [], []>} : vector<64x64xf32>, vector<64x32xf32>, vector<64x32xf32> -> vector<64x32xf32>
    %c0_63 = arith.constant 0 : index
    %c0_64 = arith.constant 0 : index
    %c0_65 = arith.constant 0 : index
    %136 = vector.load %arg10[%c0_63, %c0_64, %c0_65] : memref<2x1x32xf32, #tpu.memory_space<vmem>>, vector<1x1x32xf32>
    %137 = vector.shape_cast %136 : vector<1x1x32xf32> to vector<1x32xf32>
    %138 = vector.broadcast %137 : vector<1x32xf32> to vector<64x32xf32>
    %139 = arith.addf %135, %138 : vector<64x32xf32>
    %140 = arith.addf %123, %139 : vector<64x32xf32>
    %c0_66 = arith.constant 0 : index
    %c1 = arith.constant 1 : index
    %c0_67 = arith.constant 0 : index
    %c0_68 = arith.constant 0 : index
    %141 = vector.load %arg11[%c0_66, %c1, %c0_67, %c0_68] : memref<2x2x1x32xf32, #tpu.memory_space<vmem>>, vector<1x1x1x32xf32>
    %142 = vector.shape_cast %141 : vector<1x1x1x32xf32> to vector<1x32xf32>
    %c0_69 = arith.constant 0 : index
    %c1_70 = arith.constant 1 : index
    %c0_71 = arith.constant 0 : index
    %c0_72 = arith.constant 0 : index
    %143 = vector.load %arg12[%c0_69, %c1_70, %c0_71, %c0_72] : memref<2x2x1x32xf32, #tpu.memory_space<vmem>>, vector<1x1x1x32xf32>
    %144 = vector.shape_cast %143 : vector<1x1x1x32xf32> to vector<1x32xf32>
    %cst_73 = arith.constant dense<0.000000e+00> : vector<64xf32>
    %145 = vector.multi_reduction <add>, %140, %cst_73 [1] : vector<64x32xf32> to vector<64xf32>
    %146 = vector.shape_cast %145 : vector<64xf32> to vector<64x1xf32>
    %cst_74 = arith.constant 3.200000e+01 : f32
    %147 = vector.broadcast %cst_74 : f32 to vector<64x1xf32>
    %148 = arith.divf %146, %147 : vector<64x1xf32>
    %149 = vector.broadcast %148 : vector<64x1xf32> to vector<64x32xf32>
    %150 = arith.subf %140, %149 : vector<64x32xf32>
    %151 = arith.mulf %150, %150 : vector<64x32xf32>
    %cst_75 = arith.constant dense<0.000000e+00> : vector<64xf32>
    %152 = vector.multi_reduction <add>, %151, %cst_75 [1] : vector<64x32xf32> to vector<64xf32>
    %153 = vector.shape_cast %152 : vector<64xf32> to vector<64x1xf32>
    %cst_76 = arith.constant 3.200000e+01 : f32
    %154 = vector.broadcast %cst_76 : f32 to vector<64x1xf32>
    %155 = arith.divf %153, %154 : vector<64x1xf32>
    %cst_77 = arith.constant 9.99999993E-9 : f32
    %156 = vector.broadcast %cst_77 : f32 to vector<64x1xf32>
    %157 = arith.addf %155, %156 : vector<64x1xf32>
    %158 = math.rsqrt %157 : vector<64x1xf32>
    %159 = vector.broadcast %158 : vector<64x1xf32> to vector<64x32xf32>
    %160 = arith.mulf %150, %159 : vector<64x32xf32>
    %161 = vector.broadcast %142 : vector<1x32xf32> to vector<64x32xf32>
    %162 = arith.mulf %160, %161 : vector<64x32xf32>
    %163 = vector.broadcast %144 : vector<1x32xf32> to vector<64x32xf32>
    %164 = arith.addf %162, %163 : vector<64x32xf32>
    %c1_78 = arith.constant 1 : index
    %c0_79 = arith.constant 0 : index
    %c0_80 = arith.constant 0 : index
    %165 = vector.load %arg3[%c1_78, %c0_79, %c0_80] : memref<2x32x96xf32, #tpu.memory_space<vmem>>, vector<1x32x96xf32>
    %166 = vector.shape_cast %165 : vector<1x32x96xf32> to vector<32x96xf32>
    %cst_81 = arith.constant dense<0.000000e+00> : vector<64x96xf32>
    %167 = tpu.matmul %164, %166, %cst_81 {dimension_numbers = #tpu.dot_dimension_numbers<[1], [0], [0], [1], [0, 0, 1, 1], [], []>} : vector<64x32xf32>, vector<32x96xf32>, vector<64x96xf32> -> vector<64x96xf32>
    %c1_82 = arith.constant 1 : index
    %c0_83 = arith.constant 0 : index
    %c0_84 = arith.constant 0 : index
    %168 = vector.load %arg4[%c1_82, %c0_83, %c0_84] : memref<2x1x96xf32, #tpu.memory_space<vmem>>, vector<1x1x96xf32>
    %169 = vector.shape_cast %168 : vector<1x1x96xf32> to vector<1x96xf32>
    %170 = vector.broadcast %169 : vector<1x96xf32> to vector<64x96xf32>
    %171 = arith.addf %167, %170 : vector<64x96xf32>
    %172 = vector.shape_cast %171 : vector<64x96xf32> to vector<8x8x96xf32>
    %173 = vector.extract_strided_slice %172 {offsets = [0, 0, 32], sizes = [8, 8, 32], strides = [1, 1, 1]} : vector<8x8x96xf32> to vector<8x8x32xf32>
    %174 = vector.extract_strided_slice %172 {offsets = [0, 0, 64], sizes = [8, 8, 32], strides = [1, 1, 1]} : vector<8x8x96xf32> to vector<8x8x32xf32>
    %175 = vector.extract_strided_slice %172 {offsets = [0, 0, 0], sizes = [8, 1, 32], strides = [1, 1, 1]} : vector<8x8x96xf32> to vector<8x1x32xf32>
    %176 = vector.shape_cast %164 : vector<64x32xf32> to vector<8x8x32xf32>
    %177 = vector.extract_strided_slice %176 {offsets = [0, 0, 0], sizes = [8, 1, 32], strides = [1, 1, 1]} : vector<8x8x32xf32> to vector<8x1x32xf32>
    %178 = vector.shape_cast %177 : vector<8x1x32xf32> to vector<8x32xf32>
    %179 = vector.extract_strided_slice %175 {offsets = [0, 0, 0], sizes = [8, 1, 8], strides = [1, 1, 1]} : vector<8x1x32xf32> to vector<8x1x8xf32>
    %180 = vector.extract_strided_slice %173 {offsets = [0, 0, 0], sizes = [8, 8, 8], strides = [1, 1, 1]} : vector<8x8x32xf32> to vector<8x8x8xf32>
    "tpu.trace_start"() <{level = 10 : i32, message = "bqd,bkd->bqk"}> : () -> ()
    %cst_85 = arith.constant dense<0.000000e+00> : vector<8x1x8xf32>
    %181 = tpu.matmul %179, %180, %cst_85 {dimension_numbers = #tpu.dot_dimension_numbers<[2], [2], [1], [1], [0, 0, 0, 1, 1, 1], [0], [0]>} : vector<8x1x8xf32>, vector<8x8x8xf32>, vector<8x1x8xf32> -> vector<8x1x8xf32>
    "tpu.trace_stop"() : () -> ()
    %cst_86 = arith.constant 0.353553385 : f32
    %182 = vector.broadcast %cst_86 : f32 to vector<8x1x8xf32>
    %183 = arith.mulf %181, %182 : vector<8x1x8xf32>
    %184 = arith.addf %183, %0 : vector<8x1x8xf32>
    %cst_87 = arith.constant dense<0xFF800000> : vector<8x1xf32>
    %185 = vector.multi_reduction <maximumf>, %184, %cst_87 [2] : vector<8x1x8xf32> to vector<8x1xf32>
    %186 = vector.shape_cast %185 : vector<8x1xf32> to vector<8x1x1xf32>
    %187 = vector.broadcast %186 : vector<8x1x1xf32> to vector<8x1x8xf32>
    %188 = arith.subf %184, %187 : vector<8x1x8xf32>
    %189 = math.exp %188 : vector<8x1x8xf32>
    %cst_88 = arith.constant dense<0.000000e+00> : vector<8x1xf32>
    %190 = vector.multi_reduction <add>, %189, %cst_88 [2] : vector<8x1x8xf32> to vector<8x1xf32>
    %191 = vector.shape_cast %190 : vector<8x1xf32> to vector<8x1x1xf32>
    %192 = tpu.reciprocal %191 {approx = true} : vector<8x1x1xf32> -> vector<8x1x1xf32>
    %193 = vector.broadcast %192 : vector<8x1x1xf32> to vector<8x1x8xf32>
    %194 = arith.mulf %189, %193 : vector<8x1x8xf32>
    %195 = vector.extract_strided_slice %174 {offsets = [0, 0, 0], sizes = [8, 8, 8], strides = [1, 1, 1]} : vector<8x8x32xf32> to vector<8x8x8xf32>
    "tpu.trace_start"() <{level = 10 : i32, message = "bqk,bkd->bqd"}> : () -> ()
    %cst_89 = arith.constant dense<0.000000e+00> : vector<8x1x8xf32>
    %196 = tpu.matmul %194, %195, %cst_89 {dimension_numbers = #tpu.dot_dimension_numbers<[2], [1], [1], [2], [0, 0, 0, 1, 1, 2], [0], [0]>} : vector<8x1x8xf32>, vector<8x8x8xf32>, vector<8x1x8xf32> -> vector<8x1x8xf32>
    "tpu.trace_stop"() : () -> ()
    %197 = vector.extract_strided_slice %175 {offsets = [0, 0, 8], sizes = [8, 1, 8], strides = [1, 1, 1]} : vector<8x1x32xf32> to vector<8x1x8xf32>
    %198 = vector.extract_strided_slice %173 {offsets = [0, 0, 8], sizes = [8, 8, 8], strides = [1, 1, 1]} : vector<8x8x32xf32> to vector<8x8x8xf32>
    "tpu.trace_start"() <{level = 10 : i32, message = "bqd,bkd->bqk"}> : () -> ()
    %cst_90 = arith.constant dense<0.000000e+00> : vector<8x1x8xf32>
    %199 = tpu.matmul %197, %198, %cst_90 {dimension_numbers = #tpu.dot_dimension_numbers<[2], [2], [1], [1], [0, 0, 0, 1, 1, 1], [0], [0]>} : vector<8x1x8xf32>, vector<8x8x8xf32>, vector<8x1x8xf32> -> vector<8x1x8xf32>
    "tpu.trace_stop"() : () -> ()
    %cst_91 = arith.constant 0.353553385 : f32
    %200 = vector.broadcast %cst_91 : f32 to vector<8x1x8xf32>
    %201 = arith.mulf %199, %200 : vector<8x1x8xf32>
    %202 = arith.addf %201, %0 : vector<8x1x8xf32>
    %cst_92 = arith.constant dense<0xFF800000> : vector<8x1xf32>
    %203 = vector.multi_reduction <maximumf>, %202, %cst_92 [2] : vector<8x1x8xf32> to vector<8x1xf32>
    %204 = vector.shape_cast %203 : vector<8x1xf32> to vector<8x1x1xf32>
    %205 = vector.broadcast %204 : vector<8x1x1xf32> to vector<8x1x8xf32>
    %206 = arith.subf %202, %205 : vector<8x1x8xf32>
    %207 = math.exp %206 : vector<8x1x8xf32>
    %cst_93 = arith.constant dense<0.000000e+00> : vector<8x1xf32>
    %208 = vector.multi_reduction <add>, %207, %cst_93 [2] : vector<8x1x8xf32> to vector<8x1xf32>
    %209 = vector.shape_cast %208 : vector<8x1xf32> to vector<8x1x1xf32>
    %210 = tpu.reciprocal %209 {approx = true} : vector<8x1x1xf32> -> vector<8x1x1xf32>
    %211 = vector.broadcast %210 : vector<8x1x1xf32> to vector<8x1x8xf32>
    %212 = arith.mulf %207, %211 : vector<8x1x8xf32>
    %213 = vector.extract_strided_slice %174 {offsets = [0, 0, 8], sizes = [8, 8, 8], strides = [1, 1, 1]} : vector<8x8x32xf32> to vector<8x8x8xf32>
    "tpu.trace_start"() <{level = 10 : i32, message = "bqk,bkd->bqd"}> : () -> ()
    %cst_94 = arith.constant dense<0.000000e+00> : vector<8x1x8xf32>
    %214 = tpu.matmul %212, %213, %cst_94 {dimension_numbers = #tpu.dot_dimension_numbers<[2], [1], [1], [2], [0, 0, 0, 1, 1, 2], [0], [0]>} : vector<8x1x8xf32>, vector<8x8x8xf32>, vector<8x1x8xf32> -> vector<8x1x8xf32>
    "tpu.trace_stop"() : () -> ()
    %215 = vector.extract_strided_slice %175 {offsets = [0, 0, 16], sizes = [8, 1, 8], strides = [1, 1, 1]} : vector<8x1x32xf32> to vector<8x1x8xf32>
    %216 = vector.extract_strided_slice %173 {offsets = [0, 0, 16], sizes = [8, 8, 8], strides = [1, 1, 1]} : vector<8x8x32xf32> to vector<8x8x8xf32>
    "tpu.trace_start"() <{level = 10 : i32, message = "bqd,bkd->bqk"}> : () -> ()
    %cst_95 = arith.constant dense<0.000000e+00> : vector<8x1x8xf32>
    %217 = tpu.matmul %215, %216, %cst_95 {dimension_numbers = #tpu.dot_dimension_numbers<[2], [2], [1], [1], [0, 0, 0, 1, 1, 1], [0], [0]>} : vector<8x1x8xf32>, vector<8x8x8xf32>, vector<8x1x8xf32> -> vector<8x1x8xf32>
    "tpu.trace_stop"() : () -> ()
    %cst_96 = arith.constant 0.353553385 : f32
    %218 = vector.broadcast %cst_96 : f32 to vector<8x1x8xf32>
    %219 = arith.mulf %217, %218 : vector<8x1x8xf32>
    %220 = arith.addf %219, %0 : vector<8x1x8xf32>
    %cst_97 = arith.constant dense<0xFF800000> : vector<8x1xf32>
    %221 = vector.multi_reduction <maximumf>, %220, %cst_97 [2] : vector<8x1x8xf32> to vector<8x1xf32>
    %222 = vector.shape_cast %221 : vector<8x1xf32> to vector<8x1x1xf32>
    %223 = vector.broadcast %222 : vector<8x1x1xf32> to vector<8x1x8xf32>
    %224 = arith.subf %220, %223 : vector<8x1x8xf32>
    %225 = math.exp %224 : vector<8x1x8xf32>
    %cst_98 = arith.constant dense<0.000000e+00> : vector<8x1xf32>
    %226 = vector.multi_reduction <add>, %225, %cst_98 [2] : vector<8x1x8xf32> to vector<8x1xf32>
    %227 = vector.shape_cast %226 : vector<8x1xf32> to vector<8x1x1xf32>
    %228 = tpu.reciprocal %227 {approx = true} : vector<8x1x1xf32> -> vector<8x1x1xf32>
    %229 = vector.broadcast %228 : vector<8x1x1xf32> to vector<8x1x8xf32>
    %230 = arith.mulf %225, %229 : vector<8x1x8xf32>
    %231 = vector.extract_strided_slice %174 {offsets = [0, 0, 16], sizes = [8, 8, 8], strides = [1, 1, 1]} : vector<8x8x32xf32> to vector<8x8x8xf32>
    "tpu.trace_start"() <{level = 10 : i32, message = "bqk,bkd->bqd"}> : () -> ()
    %cst_99 = arith.constant dense<0.000000e+00> : vector<8x1x8xf32>
    %232 = tpu.matmul %230, %231, %cst_99 {dimension_numbers = #tpu.dot_dimension_numbers<[2], [1], [1], [2], [0, 0, 0, 1, 1, 2], [0], [0]>} : vector<8x1x8xf32>, vector<8x8x8xf32>, vector<8x1x8xf32> -> vector<8x1x8xf32>
    "tpu.trace_stop"() : () -> ()
    %233 = vector.extract_strided_slice %175 {offsets = [0, 0, 24], sizes = [8, 1, 8], strides = [1, 1, 1]} : vector<8x1x32xf32> to vector<8x1x8xf32>
    %234 = vector.extract_strided_slice %173 {offsets = [0, 0, 24], sizes = [8, 8, 8], strides = [1, 1, 1]} : vector<8x8x32xf32> to vector<8x8x8xf32>
    "tpu.trace_start"() <{level = 10 : i32, message = "bqd,bkd->bqk"}> : () -> ()
    %cst_100 = arith.constant dense<0.000000e+00> : vector<8x1x8xf32>
    %235 = tpu.matmul %233, %234, %cst_100 {dimension_numbers = #tpu.dot_dimension_numbers<[2], [2], [1], [1], [0, 0, 0, 1, 1, 1], [0], [0]>} : vector<8x1x8xf32>, vector<8x8x8xf32>, vector<8x1x8xf32> -> vector<8x1x8xf32>
    "tpu.trace_stop"() : () -> ()
    %cst_101 = arith.constant 0.353553385 : f32
    %236 = vector.broadcast %cst_101 : f32 to vector<8x1x8xf32>
    %237 = arith.mulf %235, %236 : vector<8x1x8xf32>
    %238 = arith.addf %237, %0 : vector<8x1x8xf32>
    %cst_102 = arith.constant dense<0xFF800000> : vector<8x1xf32>
    %239 = vector.multi_reduction <maximumf>, %238, %cst_102 [2] : vector<8x1x8xf32> to vector<8x1xf32>
    %240 = vector.shape_cast %239 : vector<8x1xf32> to vector<8x1x1xf32>
    %241 = vector.broadcast %240 : vector<8x1x1xf32> to vector<8x1x8xf32>
    %242 = arith.subf %238, %241 : vector<8x1x8xf32>
    %243 = math.exp %242 : vector<8x1x8xf32>
    %cst_103 = arith.constant dense<0.000000e+00> : vector<8x1xf32>
    %244 = vector.multi_reduction <add>, %243, %cst_103 [2] : vector<8x1x8xf32> to vector<8x1xf32>
    %245 = vector.shape_cast %244 : vector<8x1xf32> to vector<8x1x1xf32>
    %246 = tpu.reciprocal %245 {approx = true} : vector<8x1x1xf32> -> vector<8x1x1xf32>
    %247 = vector.broadcast %246 : vector<8x1x1xf32> to vector<8x1x8xf32>
    %248 = arith.mulf %243, %247 : vector<8x1x8xf32>
    %249 = vector.extract_strided_slice %174 {offsets = [0, 0, 24], sizes = [8, 8, 8], strides = [1, 1, 1]} : vector<8x8x32xf32> to vector<8x8x8xf32>
    "tpu.trace_start"() <{level = 10 : i32, message = "bqk,bkd->bqd"}> : () -> ()
    %cst_104 = arith.constant dense<0.000000e+00> : vector<8x1x8xf32>
    %250 = tpu.matmul %248, %249, %cst_104 {dimension_numbers = #tpu.dot_dimension_numbers<[2], [1], [1], [2], [0, 0, 0, 1, 1, 2], [0], [0]>} : vector<8x1x8xf32>, vector<8x8x8xf32>, vector<8x1x8xf32> -> vector<8x1x8xf32>
    "tpu.trace_stop"() : () -> ()
    %251 = tpu.concatenate %196, %214, %232, %250 in 2 : vector<8x1x8xf32>, vector<8x1x8xf32>, vector<8x1x8xf32>, vector<8x1x8xf32> -> vector<8x1x32xf32>
    %252 = vector.shape_cast %251 : vector<8x1x32xf32> to vector<8x32xf32>
    %c1_105 = arith.constant 1 : index
    %c0_106 = arith.constant 0 : index
    %c0_107 = arith.constant 0 : index
    %253 = vector.load %arg5[%c1_105, %c0_106, %c0_107] : memref<2x32x32xf32, #tpu.memory_space<vmem>>, vector<1x32x32xf32>
    %254 = vector.shape_cast %253 : vector<1x32x32xf32> to vector<32x32xf32>
    %cst_108 = arith.constant dense<0.000000e+00> : vector<8x32xf32>
    %255 = tpu.matmul %252, %254, %cst_108 {dimension_numbers = #tpu.dot_dimension_numbers<[1], [0], [0], [1], [0, 0, 1, 1], [], []>} : vector<8x32xf32>, vector<32x32xf32>, vector<8x32xf32> -> vector<8x32xf32>
    %c1_109 = arith.constant 1 : index
    %c0_110 = arith.constant 0 : index
    %c0_111 = arith.constant 0 : index
    %256 = vector.load %arg6[%c1_109, %c0_110, %c0_111] : memref<2x1x32xf32, #tpu.memory_space<vmem>>, vector<1x1x32xf32>
    %257 = vector.shape_cast %256 : vector<1x1x32xf32> to vector<1x32xf32>
    %258 = vector.broadcast %257 : vector<1x32xf32> to vector<8x32xf32>
    %259 = arith.addf %255, %258 : vector<8x32xf32>
    %260 = arith.addf %178, %259 : vector<8x32xf32>
    %c1_112 = arith.constant 1 : index
    %c0_113 = arith.constant 0 : index
    %c0_114 = arith.constant 0 : index
    %c0_115 = arith.constant 0 : index
    %261 = vector.load %arg11[%c1_112, %c0_113, %c0_114, %c0_115] : memref<2x2x1x32xf32, #tpu.memory_space<vmem>>, vector<1x1x1x32xf32>
    %262 = vector.shape_cast %261 : vector<1x1x1x32xf32> to vector<1x32xf32>
    %c1_116 = arith.constant 1 : index
    %c0_117 = arith.constant 0 : index
    %c0_118 = arith.constant 0 : index
    %c0_119 = arith.constant 0 : index
    %263 = vector.load %arg12[%c1_116, %c0_117, %c0_118, %c0_119] : memref<2x2x1x32xf32, #tpu.memory_space<vmem>>, vector<1x1x1x32xf32>
    %264 = vector.shape_cast %263 : vector<1x1x1x32xf32> to vector<1x32xf32>
    %cst_120 = arith.constant dense<0.000000e+00> : vector<8xf32>
    %265 = vector.multi_reduction <add>, %260, %cst_120 [1] : vector<8x32xf32> to vector<8xf32>
    %266 = vector.shape_cast %265 : vector<8xf32> to vector<8x1xf32>
    %cst_121 = arith.constant 3.200000e+01 : f32
    %267 = vector.broadcast %cst_121 : f32 to vector<8x1xf32>
    %268 = arith.divf %266, %267 : vector<8x1xf32>
    %269 = vector.broadcast %268 : vector<8x1xf32> to vector<8x32xf32>
    %270 = arith.subf %260, %269 : vector<8x32xf32>
    %271 = arith.mulf %270, %270 : vector<8x32xf32>
    %cst_122 = arith.constant dense<0.000000e+00> : vector<8xf32>
    %272 = vector.multi_reduction <add>, %271, %cst_122 [1] : vector<8x32xf32> to vector<8xf32>
    %273 = vector.shape_cast %272 : vector<8xf32> to vector<8x1xf32>
    %cst_123 = arith.constant 3.200000e+01 : f32
    %274 = vector.broadcast %cst_123 : f32 to vector<8x1xf32>
    %275 = arith.divf %273, %274 : vector<8x1xf32>
    %cst_124 = arith.constant 9.99999993E-9 : f32
    %276 = vector.broadcast %cst_124 : f32 to vector<8x1xf32>
    %277 = arith.addf %275, %276 : vector<8x1xf32>
    %278 = math.rsqrt %277 : vector<8x1xf32>
    %279 = vector.broadcast %278 : vector<8x1xf32> to vector<8x32xf32>
    %280 = arith.mulf %270, %279 : vector<8x32xf32>
    %281 = vector.broadcast %262 : vector<1x32xf32> to vector<8x32xf32>
    %282 = arith.mulf %280, %281 : vector<8x32xf32>
    %283 = vector.broadcast %264 : vector<1x32xf32> to vector<8x32xf32>
    %284 = arith.addf %282, %283 : vector<8x32xf32>
    %c1_125 = arith.constant 1 : index
    %c0_126 = arith.constant 0 : index
    %c0_127 = arith.constant 0 : index
    %285 = vector.load %arg7[%c1_125, %c0_126, %c0_127] : memref<2x32x64xf32, #tpu.memory_space<vmem>>, vector<1x32x64xf32>
    %286 = vector.shape_cast %285 : vector<1x32x64xf32> to vector<32x64xf32>
    %cst_128 = arith.constant dense<0.000000e+00> : vector<8x64xf32>
    %287 = tpu.matmul %284, %286, %cst_128 {dimension_numbers = #tpu.dot_dimension_numbers<[1], [0], [0], [1], [0, 0, 1, 1], [], []>} : vector<8x32xf32>, vector<32x64xf32>, vector<8x64xf32> -> vector<8x64xf32>
    %c1_129 = arith.constant 1 : index
    %c0_130 = arith.constant 0 : index
    %c0_131 = arith.constant 0 : index
    %288 = vector.load %arg8[%c1_129, %c0_130, %c0_131] : memref<2x1x64xf32, #tpu.memory_space<vmem>>, vector<1x1x64xf32>
    %289 = vector.shape_cast %288 : vector<1x1x64xf32> to vector<1x64xf32>
    %290 = vector.broadcast %289 : vector<1x64xf32> to vector<8x64xf32>
    %291 = arith.addf %287, %290 : vector<8x64xf32>
    %cst_132 = arith.constant 0.000000e+00 : f32
    %292 = vector.broadcast %cst_132 : f32 to vector<8x64xf32>
    %293 = arith.maximumf %291, %292 : vector<8x64xf32>
    %c1_133 = arith.constant 1 : index
    %c0_134 = arith.constant 0 : index
    %c0_135 = arith.constant 0 : index
    %294 = vector.load %arg9[%c1_133, %c0_134, %c0_135] : memref<2x64x32xf32, #tpu.memory_space<vmem>>, vector<1x64x32xf32>
    %295 = vector.shape_cast %294 : vector<1x64x32xf32> to vector<64x32xf32>
    %cst_136 = arith.constant dense<0.000000e+00> : vector<8x32xf32>
    %296 = tpu.matmul %293, %295, %cst_136 {dimension_numbers = #tpu.dot_dimension_numbers<[1], [0], [0], [1], [0, 0, 1, 1], [], []>} : vector<8x64xf32>, vector<64x32xf32>, vector<8x32xf32> -> vector<8x32xf32>
    %c1_137 = arith.constant 1 : index
    %c0_138 = arith.constant 0 : index
    %c0_139 = arith.constant 0 : index
    %297 = vector.load %arg10[%c1_137, %c0_138, %c0_139] : memref<2x1x32xf32, #tpu.memory_space<vmem>>, vector<1x1x32xf32>
    %298 = vector.shape_cast %297 : vector<1x1x32xf32> to vector<1x32xf32>
    %299 = vector.broadcast %298 : vector<1x32xf32> to vector<8x32xf32>
    %300 = arith.addf %296, %299 : vector<8x32xf32>
    %301 = arith.addf %284, %300 : vector<8x32xf32>
    %c1_140 = arith.constant 1 : index
    %c1_141 = arith.constant 1 : index
    %c0_142 = arith.constant 0 : index
    %c0_143 = arith.constant 0 : index
    %302 = vector.load %arg11[%c1_140, %c1_141, %c0_142, %c0_143] : memref<2x2x1x32xf32, #tpu.memory_space<vmem>>, vector<1x1x1x32xf32>
    %303 = vector.shape_cast %302 : vector<1x1x1x32xf32> to vector<1x32xf32>
    %c1_144 = arith.constant 1 : index
    %c1_145 = arith.constant 1 : index
    %c0_146 = arith.constant 0 : index
    %c0_147 = arith.constant 0 : index
    %304 = vector.load %arg12[%c1_144, %c1_145, %c0_146, %c0_147] : memref<2x2x1x32xf32, #tpu.memory_space<vmem>>, vector<1x1x1x32xf32>
    %305 = vector.shape_cast %304 : vector<1x1x1x32xf32> to vector<1x32xf32>
    %cst_148 = arith.constant dense<0.000000e+00> : vector<8xf32>
    %306 = vector.multi_reduction <add>, %301, %cst_148 [1] : vector<8x32xf32> to vector<8xf32>
    %307 = vector.shape_cast %306 : vector<8xf32> to vector<8x1xf32>
    %cst_149 = arith.constant 3.200000e+01 : f32
    %308 = vector.broadcast %cst_149 : f32 to vector<8x1xf32>
    %309 = arith.divf %307, %308 : vector<8x1xf32>
    %310 = vector.broadcast %309 : vector<8x1xf32> to vector<8x32xf32>
    %311 = arith.subf %301, %310 : vector<8x32xf32>
    %312 = arith.mulf %311, %311 : vector<8x32xf32>
    %cst_150 = arith.constant dense<0.000000e+00> : vector<8xf32>
    %313 = vector.multi_reduction <add>, %312, %cst_150 [1] : vector<8x32xf32> to vector<8xf32>
    %314 = vector.shape_cast %313 : vector<8xf32> to vector<8x1xf32>
    %cst_151 = arith.constant 3.200000e+01 : f32
    %315 = vector.broadcast %cst_151 : f32 to vector<8x1xf32>
    %316 = arith.divf %314, %315 : vector<8x1xf32>
    %cst_152 = arith.constant 9.99999993E-9 : f32
    %317 = vector.broadcast %cst_152 : f32 to vector<8x1xf32>
    %318 = arith.addf %316, %317 : vector<8x1xf32>
    %319 = math.rsqrt %318 : vector<8x1xf32>
    %320 = vector.broadcast %319 : vector<8x1xf32> to vector<8x32xf32>
    %321 = arith.mulf %311, %320 : vector<8x32xf32>
    %322 = vector.broadcast %303 : vector<1x32xf32> to vector<8x32xf32>
    %323 = arith.mulf %321, %322 : vector<8x32xf32>
    %324 = vector.broadcast %305 : vector<1x32xf32> to vector<8x32xf32>
    %325 = arith.addf %323, %324 : vector<8x32xf32>
    %c0_153 = arith.constant 0 : index
    %c0_154 = arith.constant 0 : index
    %326 = vector.load %arg13[%c0_153, %c0_154] : memref<8x32xf32, #tpu.memory_space<vmem>>, vector<8x32xf32>
    tpu.vector_store %arg13[%c0_153, %c0_154], %325 {strides = array<i32>} : memref<8x32xf32, #tpu.memory_space<vmem>>, vector<8x32xf32>,
    return
  }
  func.func @transform_0(%arg0: i32) -> (i32, i32, i32) {
    %c0_i32 = arith.constant 0 : i32
    %c0_i32_0 = arith.constant 0 : i32
    %c0_i32_1 = arith.constant 0 : i32
    return %arg0, %c0_i32, %c0_i32_0 : i32, i32, i32
  }
  func.func @transform_1(%arg0: i32) -> (i32, i32, i32) {
    %c0_i32 = arith.constant 0 : i32
    %c0_i32_0 = arith.constant 0 : i32
    %c0_i32_1 = arith.constant 0 : i32
    return %arg0, %c0_i32, %c0_i32_0 : i32, i32, i32
  }
  func.func @transform_2(%arg0: i32) -> (i32, i32, i32) {
    %c0_i32 = arith.constant 0 : i32
    %c0_i32_0 = arith.constant 0 : i32
    %c0_i32_1 = arith.constant 0 : i32
    %c0_i32_2 = arith.constant 0 : i32
    return %c0_i32, %c0_i32_0, %c0_i32_1 : i32, i32, i32
  }
  func.func @transform_3(%arg0: i32) -> (i32, i32, i32) {
    %c0_i32 = arith.constant 0 : i32
    %c0_i32_0 = arith.constant 0 : i32
    %c0_i32_1 = arith.constant 0 : i32
    %c0_i32_2 = arith.constant 0 : i32
    return %c0_i32, %c0_i32_0, %c0_i32_1 : i32, i32, i32
  }
  func.func @transform_4(%arg0: i32) -> (i32, i32, i32) {
    %c0_i32 = arith.constant 0 : i32
    %c0_i32_0 = arith.constant 0 : i32
    %c0_i32_1 = arith.constant 0 : i32
    %c0_i32_2 = arith.constant 0 : i32
    return %c0_i32, %c0_i32_0, %c0_i32_1 : i32, i32, i32
  }
  func.func @transform_5(%arg0: i32) -> (i32, i32, i32) {
    %c0_i32 = arith.constant 0 : i32
    %c0_i32_0 = arith.constant 0 : i32
    %c0_i32_1 = arith.constant 0 : i32
    %c0_i32_2 = arith.constant 0 : i32
    return %c0_i32, %c0_i32_0, %c0_i32_1 : i32, i32, i32
  }
  func.func @transform_6(%arg0: i32) -> (i32, i32, i32) {
    %c0_i32 = arith.constant 0 : i32
    %c0_i32_0 = arith.constant 0 : i32
    %c0_i32_1 = arith.constant 0 : i32
    %c0_i32_2 = arith.constant 0 : i32
    return %c0_i32, %c0_i32_0, %c0_i32_1 : i32, i32, i32
  }
  func.func @transform_7(%arg0: i32) -> (i32, i32, i32) {
    %c0_i32 = arith.constant 0 : i32
    %c0_i32_0 = arith.constant 0 : i32
    %c0_i32_1 = arith.constant 0 : i32
    %c0_i32_2 = arith.constant 0 : i32
    return %c0_i32, %c0_i32_0, %c0_i32_1 : i32, i32, i32
  }
  func.func @transform_8(%arg0: i32) -> (i32, i32, i32) {
    %c0_i32 = arith.constant 0 : i32
    %c0_i32_0 = arith.constant 0 : i32
    %c0_i32_1 = arith.constant 0 : i32
    %c0_i32_2 = arith.constant 0 : i32
    return %c0_i32, %c0_i32_0, %c0_i32_1 : i32, i32, i32
  }
  func.func @transform_9(%arg0: i32) -> (i32, i32, i32) {
    %c0_i32 = arith.constant 0 : i32
    %c0_i32_0 = arith.constant 0 : i32
    %c0_i32_1 = arith.constant 0 : i32
    %c0_i32_2 = arith.constant 0 : i32
    return %c0_i32, %c0_i32_0, %c0_i32_1 : i32, i32, i32
  }
  func.func @transform_10(%arg0: i32) -> (i32, i32, i32, i32) {
    %c0_i32 = arith.constant 0 : i32
    %c0_i32_0 = arith.constant 0 : i32
    %c0_i32_1 = arith.constant 0 : i32
    %c0_i32_2 = arith.constant 0 : i32
    %c0_i32_3 = arith.constant 0 : i32
    return %c0_i32, %c0_i32_0, %c0_i32_1, %c0_i32_2 : i32, i32, i32, i32
  }
  func.func @transform_11(%arg0: i32) -> (i32, i32, i32, i32) {
    %c0_i32 = arith.constant 0 : i32
    %c0_i32_0 = arith.constant 0 : i32
    %c0_i32_1 = arith.constant 0 : i32
    %c0_i32_2 = arith.constant 0 : i32
    %c0_i32_3 = arith.constant 0 : i32
    return %c0_i32, %c0_i32_0, %c0_i32_1, %c0_i32_2 : i32, i32, i32, i32
  }
  func.func @transform_12(%arg0: i32) -> (i32, i32) {
    %c0_i32 = arith.constant 0 : i32
    %c0_i32_0 = arith.constant 0 : i32
    return %arg0, %c0_i32 : i32, i32
  }
}

</mosaic_0001>

<bundles_post_ra>
// kernel: tpu_custom_call.1
= control target key start
LH: loop header
LB: loop body
LE: loop exit
PB: predicated region body
PF: predicated region fallthrough
CT: control target
= control target key end

     0   :  { %17 = vsyncpa [#allocation3], 0  ;;  %s17194_s0 = inlined_call_operand.vmem [shape: f32[8,8,32], index: 0, kind: input, shape index: {}]   ;;  %s17195_s1 = inlined_call_operand.hbm [shape: f32[8,1,8], index: 1, kind: input, shape index: {}]   ;;  %s17196_s2 = inlined_call_operand.vmem [shape: f32[2,32,96], index: 2, kind: input, shape index: {}]   ;;  %s17197_s3 = inlined_call_operand.vmem [shape: f32[2,1,96], index: 3, kind: input, shape index: {}]   ;;  %s17198_s4 = inlined_call_operand.vmem [shape: f32[2,32,32], index: 4, kind: input, shape index: {}]   ;;  %s17199_s5 = inlined_call_operand.vmem [shape: f32[2,1,32], index: 5, kind: input, shape index: {}]   ;;  %s17200_s6 = inlined_call_operand.hbm [shape: f32[2,32,64], index: 6, kind: input, shape index: {}]   ;;  %s17201_s7 = inlined_call_operand.vmem [shape: f32[2,1,64], index: 7, kind: input, shape index: {}]   ;;  %s17202_s8 = inlined_call_operand.vmem [shape: f32[2,64,32], index: 8, kind: input, shape index: {}]   ;;  %s17203_s9 = inlined_call_operand.vmem [shape: f32[2,1,32], index: 9, kind: input, shape index: {}]   ;;  %s17204_s10 = inlined_call_operand.vmem [shape: f32[2,2,1,32], index: 10, kind: input, shape index: {}]   ;;  %s17205_s11 = inlined_call_operand.vmem [shape: f32[2,2,1,32], index: 11, kind: input, shape index: {}]   ;;  %s17206_s12 = inlined_call_operand.hbm [shape: f32[8,32], index: 12, kind: output, shape index: {}]  }
   0x1   :  { %18 = vsyncpa [#allocation6], 0 }
   0x2   :  { %19 = vsyncpa [#allocation4], 0  ;;  %s14636_s21 = smov [#allocation2]   ;;  %s14564_s25 = scalar_lea.hbm %s17195_s1, 128 }
   0x3   :  { %s27_s22 = sshll.u32 %s14636_s21, 4  ;;  %p14565_p0 = scmp.ne.s32.totalorder %s17195_s1, %s14564_s25  ;;  %s28_s22 = int_to_ptr.vmem [resolvable:$true] %s27_s22 }
   0x4   :  { %p14568_p1 = scmp.lt.u32.totalorder %s14564_s25, %s17195_s1 }
   0x6   :  { %p14570_p2 = pnand %p14568_p1, %p14565_p0 }
   0x8   :  { %14573 = shalt.err (!%p14570_p2)
}
   0x9   :  { %s14574_s30 = scalar_lea.vmem %s28_s22, 128  ;;  %p14579_p4 = scmp.lt.s32.totalorder %s28_s22, %s28_s22 }
   0xa   :  { %p14575_p3 = scmp.ne.s32.totalorder %s28_s22, %s14574_s30  ;;  %p14580_p5 = scmp.lt.s32.totalorder %s14574_s30, %s14574_s30 }
   0xc   :  { %p14581_p6 = por %p14580_p5, %p14579_p4 }
   0xe   :  { %p14582_p7 = pnand %p14581_p6, %p14575_p3 }
  0x10   :  { %14585 = shalt.err (!%p14582_p7)
}
  0x11   :  { %s17211_s13 = smov 16   ;;  %s14638_s14 = smov 1  }
  0x12   :  { %33 = dma.hbm_to_vmem [thread:$0]  %s17195_s1, 128, %s28_s22, [#allocation3], %s17211_s13, %s17211_s13, %s14638_s14  }
  0x13   :  { %s14639_s17 = smov [#allocation5]   ;;  %s14586_s21 = scalar_lea.hbm %s17200_s6, 1024 }
  0x14   :  { %s47_s18 = sshll.u32 %s14639_s17, 4  ;;  %p14587_p8 = scmp.ne.s32.totalorder %s17200_s6, %s14586_s21  ;;  %s48_s18 = int_to_ptr.vmem [resolvable:$true] %s47_s18 }
  0x15   :  { %p14590_p9 = scmp.lt.u32.totalorder %s14586_s21, %s17200_s6 }
  0x17   :  { %p14592_p10 = pnand %p14590_p9, %p14587_p8 }
  0x19   :  { %14595 = shalt.err (!%p14592_p10)
}
  0x1a   :  { %s14596_s27 = scalar_lea.vmem %s48_s18, 1024  ;;  %p14601_p12 = scmp.lt.s32.totalorder %s48_s18, %s48_s18 }
  0x1b   :  { %p14597_p11 = scmp.ne.s32.totalorder %s48_s18, %s14596_s27  ;;  %p14602_p13 = scmp.lt.s32.totalorder %s14596_s27, %s14596_s27 }
  0x1d   :  { %p14603_p0 = por %p14602_p13, %p14601_p12 }
  0x1f   :  { %p14604_p1 = pnand %p14603_p0, %p14597_p11 }
  0x21   :  { %14607 = shalt.err (!%p14604_p1)
}
  0x22   :  { %s14640_s1 = smov 128   ;;  %s17207_s22 = smov 8  }
  0x23   :  { %53 = dma.hbm_to_vmem [thread:$0]  %s17200_s6, 1024, %s48_s18, [#allocation6], %s14640_s1, %s14640_s1, %s17207_s22  }
  0x24   :  { %14630 = dma.done.wait [#allocation3], 128  }
  0x25   :  { %14631 = vsyncadd [#allocation3], 4294967168 }
  0x26   :  { %14632 = dma.done.wait [#allocation6], 1024  }
  0x27   :  { %14633 = vsyncadd [#allocation6], 4294966272  ;;  %vm97_vm0 = vcmask 261120   ;;  %v86_v0 = vld [vmem:[%s17196_s2] sm:$0xff]  ;;  %v87_v1 = vld [vmem:[%s17196_s2 + $0x8] sm:$0xff]  ;;  %v17213_v14 = vmov 0.0  }
  0x28   :  { %v88_v2 = vld [vmem:[%s17196_s2 + $0x10] sm:$0xff]  ;;  %v14146_v3 = vpack.c.bf16 %v87_v1, %v86_v0  ;;  %v89_v4 = vld [vmem:[%s17196_s2 + $0x18] sm:$0xff]  ;;  %v78_v5 = vld [vmem:[%s17194_s0] sm:$0xff]  ;;  %13382 = vmatprep.subr.mxu1 %v17213_v14  ;;  %vm14643_vm1 = vmmov 0   ;;  %s14644_s18 = smov 96   ;;  %s14645_s21 = smov 64  }
  0x29   :  { %v14150_v6 = vpack.c.bf16 %v89_v4, %v88_v2  ;;  %13365 = vmatprep.mubr.msk.f32.mxu0 %vm97_vm0, %v78_v5  ;;  %v79_v7 = vld [vmem:[%s17194_s0 + $0x8] sm:$0xff]  ;;  %v80_v8 = vld [vmem:[%s17194_s0 + $0x10] sm:$0xff]  ;;  %v81_v9 = vld [vmem:[%s17194_s0 + $0x18] sm:$0xff]  ;;  %13384 = vmatprep.mubr.msk.f32.mxu1 %vm14643_vm1, %v17213_v14  ;;  %s14646_s23 = smov 88   ;;  %vm230_vm2 = vcmask 64512   ;;  %s14647_s24 = smov 120  }
  0x2a   :  { %14147 = vmatprep.subr.bf16.mxu0 %v14146_v3  ;;  %v82_v10 = vld [vmem:[%s17194_s0 + $0x20] sm:$0xff]  ;;  %v83_v11 = vld [vmem:[%s17194_s0 + $0x28] sm:$0xff]  ;;  %v84_v12 = vld [vmem:[%s17194_s0 + $0x30] sm:$0xff]  ;;  %s14648_s25 = smov 56   ;;  %s14649_s26 = smov 80   ;;  %vm5716_vm3 = vcmask 130048  }
  0x2b   :  { %14149 = vmatpush3.bf16.msra.mxu0 %v14146_v3  ;;  %v85_v13 = vld [vmem:[%s17194_s0 + $0x38] sm:$0xff]  ;;  %v12741_v15 = vld [vmem:[%s17197_s3] ss:$0 sm:$0xff]  ;;  %v14905_v42 = vld [vmem:[#allocation2 + $0x1] ss:$0 sm:$0xff]  ;;  %s14650_s27 = smov 112  }
  0x2c   :  { %14151 = vmatprep.subr.bf16.mxu0 %v14150_v6  ;;  %v14907_v44 = vld [vmem:[#allocation2] ss:$0 sm:$0xff]  ;;  %v14909_v47 = vld [vmem:[#allocation2 + $0x2] ss:$0 sm:$0xff]  ;;  %v14919_v60 = vld [vmem:[#allocation2 + $0x4] ss:$0 sm:$0xff] }
  0x2d   :  { %v14921_v61 = vld [vmem:[#allocation2 + $0x5] ss:$0 sm:$0xff]  ;;  %v14923_v63 = vld [vmem:[#allocation2 + $0x3] ss:$0 sm:$0xff]  ;;  %v14926_v3 = vld [vmem:[#allocation2 + $0x6] ss:$0 sm:$0xff] }
  0x2e   :  { %s14651_s1 = smov 48   ;;  %s14652_s28 = smov 72   ;;  %vm5725_vm4 = vcmask 195584   ;;  %vm6180_vm5 = vcmask 523264   ;;  %vm7228_vm6 = vcmask 57344   ;;  %vm12075_vm7 = vcmask 1041409  }
  0x2f   :  { %14153 = vmatpush3.bf16.msra.mxu0 %v14150_v6  ;;  %s14653_s29 = smov 104   ;;  %s14654_s30 = smov 40   ;;  %vm12078_vm8 = vcmask 1042434   ;;  %vm12081_vm9 = vcmask 1043459   ;;  %vm12084_vm10 = vcmask 1044484   ;;  %vm12087_vm11 = vcmask 1045509  }
  0x30   :  { %13377 = vmatprep.subr.mxu0 %v17213_v14  ;;  %s17209_s14 = smov 24   ;;  %vm12090_vm12 = vcmask 1046534   ;;  %vm12093_vm13 = vcmask 1047559  }
  0x32   :  { %13366 = vmatmul.mubr.msk.f32.vlgmr.msra.gmra.mrb[0].mxu0 %vm97_vm0, %v79_v7 }
  0x33   :  { %13368 = vmatprep.mubr.msk.f32.mxu0 %vm97_vm0, %v80_v8 }
  0x36   :  { %13369 = vmatmul.mubr.msk.f32.gmra.mrb[2].mxu0 %vm97_vm0, %v81_v9  ;;  %v14928_v9 = vld [vmem:[#allocation2 + $0x7] ss:$0 sm:$0xff] }
  0x37   :  { %13371 = vmatprep.mubr.msk.f32.mxu0 %vm97_vm0, %v82_v10 }
  0x3a   :  { %13372 = vmatmul.mubr.msk.f32.gmra.mrb[4].mxu0 %vm97_vm0, %v83_v11 }
  0x3b   :  { %13374 = vmatprep.mubr.msk.f32.mxu0 %vm97_vm0, %v84_v12 }
  0x3e   :  { %13375 = vmatmul.mubr.msk.f32.gmra.mrb[6].mxu0 %vm97_vm0, %v85_v13 }
  0x3f   :  { %13379 = vmatprep.mubr.msk.f32.mxu0 %vm14643_vm1, %v17213_v14 }
 0x105   :  { %v13367_v16 = vpop.f32.mrb[0].mxu0 }
 0x106   :  { %v14803_v17 = vadd.f32 %v13367_v16, %v12741_v15  ;;  %v188_v18 = vpop.f32.mrb[1].mxu0 }
 0x107   :  { %v14807_v20 = vadd.f32 %v12741_v15, %v188_v18 }
 0x108   :  { %306 = vrot.lane.b32.xlu0 %v14803_v17, %s14644_s18 }
 0x109   :  { %v13370_v19 = vpop.f32.mrb[2].mxu0 }
 0x10a   :  { %v198_v21 = vpop.f32.mrb[3].mxu0  ;;  %v14815_v25 = vadd.f32 %v13370_v19, %v12741_v15 }
 0x10b   :  { %v14809_v22 = vadd.f32 %v12741_v15, %v198_v21 }
 0x10c   :  { %228 = vrot.lane.b32.xlu0 %v14807_v20, %s14644_s18 }
 0x10d   :  { %v13373_v23 = vpop.f32.mrb[4].mxu0  ;;  %383 = vrot.lane.b32.xlu1 %v14809_v22, %s14644_s18 }
 0x10e   :  { %v208_v24 = vpop.f32.mrb[5].mxu0  ;;  %v14819_v27 = vadd.f32 %v13373_v23, %v12741_v15 }
 0x10f   :  { %v14817_v26 = vadd.f32 %v12741_v15, %v208_v24 }
 0x111   :  { %v13376_v28 = vpop.f32.mrb[6].mxu0  ;;  %460 = vrot.lane.b32.xlu1 %v14815_v25, %s14644_s18  ;;  %537 = vrot.lane.b32.xlu0 %v14817_v26, %s14644_s18 }
 0x112   :  { %v218_v29 = vpop.f32.mrb[7].mxu0  ;;  %v14827_v31 = vadd.f32 %v13376_v28, %v12741_v15 }
 0x113   :  { %v14825_v30 = vadd.f32 %v12741_v15, %v218_v29 }
 0x115   :  { %614 = vrot.lane.b32.xlu1 %v14819_v27, %s14644_s18  ;;  %691 = vrot.lane.b32.xlu0 %v14825_v30, %s14644_s18 }
 0x119   :  { %768 = vrot.lane.b32.xlu1 %v14827_v31, %s14644_s18  ;;  %1072 = vrot.lane.b32.xlu0 %v14803_v17, %s14645_s21 }
 0x11d   :  { %996 = vrot.lane.b32.xlu1 %v14807_v20, %s14645_s21  ;;  %1300 = vrot.lane.b32.xlu0 %v14817_v26, %s14645_s21 }
 0x121   :  { %1148 = vrot.lane.b32.xlu1 %v14809_v22, %s14645_s21  ;;  %1606 = vrot.lane.b32.xlu0 %v14807_v20, %s14646_s23 }
 0x125   :  { %1224 = vrot.lane.b32.xlu1 %v14815_v25, %s14645_s21  ;;  %1452 = vrot.lane.b32.xlu0 %v14825_v30, %s14645_s21 }
 0x129   :  { %1376 = vrot.lane.b32.xlu1 %v14819_v27, %s14645_s21 }
 0x12d   :  { %1528 = vrot.lane.b32.xlu1 %v14827_v31, %s14645_s21 }
 0x131   :  { %1684 = vrot.lane.b32.xlu1 %v14803_v17, %s14646_s23 }
 0x17a   :  { %v307_v32 = vpop.permute.xlu0 %306 }
 0x17b   :  { %13383 = vmatpush3.xpose.msk.msra.mxu1 %vm230_vm2, %v307_v32 }
 0x17c   :  { %13387 = vmatprep.subr.mxu1 %v17213_v14 }
 0x17e   :  { %13385 = vmatmul.mubr.msk.f32.vlgmr.msra.gmra.mrb[0].mxu1 %vm230_vm2, %v14803_v17  ;;  %v229_v33 = vpop.permute.xlu0 %228 }
 0x17f   :  { %v384_v34 = vpop.permute.xlu1 %383  ;;  %13378 = vmatpush3.xpose.msk.msra.mxu0 %vm230_vm2, %v229_v33  ;;  %13389 = vmatprep.mubr.msk.f32.mxu1 %vm14643_vm1, %v17213_v14 }
 0x180   :  { %13388 = vmatpush3.xpose.msk.msra.mxu1 %vm230_vm2, %v384_v34  ;;  %13402 = vmatprep.subr.mxu0 %v17213_v14 }
 0x181   :  { %13392 = vmatprep.subr.mxu1 %v17213_v14 }
 0x182   :  { %13380 = vmatmul.mubr.msk.f32.vlgmr.msra.gmra.mrb[8].mxu0 %vm230_vm2, %v14807_v20 }
 0x183   :  { %13390 = vmatmul.mubr.msk.f32.vlgmr.msra.gmra.mrb[2].mxu1 %vm230_vm2, %v14809_v22  ;;  %v461_v35 = vpop.permute.xlu1 %460  ;;  %v538_v36 = vpop.permute.xlu0 %537  ;;  %13404 = vmatprep.mubr.msk.f32.mxu0 %vm14643_vm1, %v17213_v14 }
 0x184   :  { %13393 = vmatpush3.xpose.msk.msra.mxu1 %vm230_vm2, %v461_v35  ;;  %13394 = vmatprep.mubr.msk.f32.mxu1 %vm14643_vm1, %v17213_v14 }
 0x185   :  { %13397 = vmatprep.subr.mxu1 %v17213_v14 }
 0x187   :  { %13395 = vmatmul.mubr.msk.f32.vlgmr.msra.gmra.mrb[4].mxu1 %vm230_vm2, %v14815_v25  ;;  %v615_v37 = vpop.permute.xlu1 %614  ;;  %v692_v38 = vpop.permute.xlu0 %691 }
 0x188   :  { %13398 = vmatpush3.xpose.msk.msra.mxu1 %vm230_vm2, %v538_v36  ;;  %13403 = vmatpush3.xpose.msk.msra.mxu0 %vm230_vm2, %v615_v37 }
 0x189   :  { %13399 = vmatprep.mubr.msk.f32.mxu1 %vm14643_vm1, %v17213_v14  ;;  %13407 = vmatprep.subr.mxu1 %v17213_v14 }
 0x18a   :  { %13412 = vmatprep.subr.mxu0 %v17213_v14 }
 0x18b   :  { %v769_v39 = vpop.permute.xlu1 %768  ;;  %13400 = vmatmul.mubr.msk.f32.vlgmr.msra.gmra.mrb[6].mxu1 %vm230_vm2, %v14817_v26  ;;  %13405 = vmatmul.mubr.msk.f32.vlgmr.msra.gmra.mrb[10].mxu0 %vm230_vm2, %v14819_v27  ;;  %v1073_v40 = vpop.permute.xlu0 %1072 }
 0x18c   :  { %13408 = vmatpush3.xpose.msk.msra.mxu1 %vm230_vm2, %v692_v38  ;;  %13413 = vmatpush3.xpose.msk.msra.mxu0 %vm230_vm2, %v769_v39 }
 0x18d   :  { %13409 = vmatprep.mubr.msk.f32.mxu1 %vm14643_vm1, %v17213_v14  ;;  %13414 = vmatprep.mubr.msk.f32.mxu0 %vm14643_vm1, %v17213_v14 }
 0x18e   :  { %13417 = vmatprep.subr.mxu1 %v17213_v14  ;;  %13422 = vmatprep.subr.mxu0 %v17213_v14 }
 0x18f   :  { %v997_v41 = vpop.permute.xlu1 %996  ;;  %13410 = vmatmul.mubr.msk.f32.vlgmr.msra.gmra.mrb[8].mxu1 %vm230_vm2, %v14825_v30  ;;  %13415 = vmatmul.mubr.msk.f32.vlgmr.msra.gmra.mrb[12].mxu0 %vm230_vm2, %v14827_v31  ;;  %v14959_v38 = vpop.permute.xlu0 %1300 }
 0x190   :  { %13418 = vmatpush3.msra.mxu1 %v997_v41  ;;  %13423 = vmatpush3.msra.mxu0 %v1073_v40 }
 0x191   :  { %13424 = vmatprep.mubr.msk.f32.mxu0 %vm14643_vm1, %v17213_v14  ;;  %13432 = vmatprep.subr.mxu0 %v17213_v14 }
 0x192   :  { %13419 = vmatprep.mubr.msk.f32.mxu1 %vm14643_vm1, %v17213_v14  ;;  %13427 = vmatprep.subr.mxu1 %v17213_v14 }
 0x193   :  { %v14953_v35 = vpop.permute.xlu1 %1148  ;;  %v14963_v40 = vpop.permute.xlu0 %1606 }
 0x197   :  { %v14955_v36 = vpop.permute.xlu1 %1224 }
 0x19b   :  { %v14957_v37 = vpop.permute.xlu1 %1376 }
 0x19f   :  { %v14961_v39 = vpop.permute.xlu1 %1528 }
 0x1a3   :  { %v14965_v41 = vpop.permute.xlu1 %1684 }
 0x251   :  { %v378_v43 = vpop.f32.mrb[0].mxu1 }
 0x252   :  { %v845_v45 = vmul.f32 0.35355338, %v378_v43  ;;  %v13386_v46 = vpop.f32.mrb[1].mxu1  ;;  %v14967_v43 = vpop.permute.xlu0 %1452 }
 0x254   :  { %v14912_v48 = vadd.f32 %v14905_v42, %v845_v45 }
 0x255   :  { %v301_v49 = vpop.f32.mrb[8].mxu0 }
 0x256   :  { %v844_v50 = vmul.f32 0.35355338, %v301_v49  ;;  %v13381_v51 = vpop.f32.mrb[9].mxu0  ;;  %v455_v52 = vpop.f32.mrb[2].mxu1  ;;  %v911_v53 = vsel %vm230_vm2, %v14912_v48, -inf }
 0x257   :  { %v846_v54 = vmul.f32 0.35355338, %v455_v52  ;;  %v13391_v55 = vpop.f32.mrb[3].mxu1  ;;  %912 = vmax.xlane.f32.xlu1 %v911_v53 }
 0x258   :  { %v900_v56 = vadd.f32 %v14907_v44, %v844_v50 }
 0x259   :  { %v902_v59 = vadd.f32 %v14909_v47, %v846_v54 }
 0x25a   :  { %v532_v57 = vpop.f32.mrb[4].mxu1  ;;  %v908_v58 = vsel %vm230_vm2, %v900_v56, -inf }
 0x25b   :  { %v13396_v62 = vpop.f32.mrb[5].mxu1  ;;  %909 = vmax.xlane.f32.xlu0 %v908_v58  ;;  %v914_v2 = vsel %vm230_vm2, %v902_v59, -inf  ;;  %v847_v8 = vmul.f32 0.35355338, %v532_v57 }
 0x25d   :  { %v903_v24 = vadd.f32 %v14923_v63, %v847_v8 }
 0x25e   :  { %v609_v0 = vpop.f32.mrb[6].mxu1  ;;  %v686_v1 = vpop.f32.mrb[10].mxu0 }
 0x25f   :  { %v848_v4 = vmul.f32 0.35355338, %v609_v0  ;;  %v849_v5 = vmul.f32 0.35355338, %v686_v1  ;;  %v13401_v6 = vpop.f32.mrb[7].mxu1  ;;  %v13406_v7 = vpop.f32.mrb[11].mxu0  ;;  %915 = vmax.xlane.f32.xlu0 %v914_v2 }
 0x260   :  { %v917_v32 = vsel %vm230_vm2, %v903_v24, -inf }
 0x261   :  { %v14931_v10 = vadd.f32 %v14919_v60, %v848_v4  ;;  %v905_v11 = vadd.f32 %v14921_v61, %v849_v5 }
 0x262   :  { %v763_v12 = vpop.f32.mrb[8].mxu1  ;;  %v840_v13 = vpop.f32.mrb[12].mxu0 }
 0x263   :  { %v850_v15 = vmul.f32 0.35355338, %v763_v12  ;;  %v13411_v16 = vpop.f32.mrb[9].mxu1  ;;  %v13416_v18 = vpop.f32.mrb[13].mxu0  ;;  %v851_v19 = vmul.f32 0.35355338, %v840_v13 }
 0x264   :  { %v920_v21 = vsel %vm230_vm2, %v14931_v10, -inf  ;;  %v923_v23 = vsel %vm230_vm2, %v905_v11, -inf }
 0x265   :  { %921 = vmax.xlane.f32.xlu1 %v920_v21  ;;  %924 = vmax.xlane.f32.xlu0 %v923_v23  ;;  %v14939_v28 = vadd.f32 %v14926_v3, %v850_v15  ;;  %v14945_v33 = vadd.f32 %v14928_v9, %v851_v19 }
 0x267   :  { %v926_v29 = vsel %vm230_vm2, %v14939_v28, -inf  ;;  %v929_v34 = vsel %vm230_vm2, %v14945_v33, -inf }
 0x269   :  { %927 = vmax.xlane.f32.xlu1 %v926_v29  ;;  %918 = vmax.xlane.f32.xlu0 %v917_v32 }
 0x26d   :  { %930 = vmax.xlane.f32.xlu0 %v929_v34 }
 0x27a   :  { %1682 = vrot.lane.b32.xlu1 %v14803_v17, %s14647_s24 }
 0x283   :  { %1604 = vrot.lane.b32.xlu0 %v14807_v20, %s14647_s24 }
 0x2e4   :  { %v913_v45 = vpop.xlane.xlu1 %912 }
 0x2e5   :  { %v933_v46 = vsub.f32 %v14912_v48, %v913_v45 }
 0x2e7   :  { %v942_v49 = vmul.f32 1.442695, %v933_v46 }
 0x2e8   :  { %v910_v50 = vpop.xlane.xlu0 %909 }
 0x2e9   :  { %14240 = vpow2.f32 %v942_v49  ;;  %v932_v51 = vsub.f32 %v900_v56, %v910_v50 }
 0x2eb   :  { %v940_v52 = vmul.f32 1.442695, %v932_v51 }
 0x2ec   :  { %v916_v53 = vpop.xlane.xlu0 %915 }
 0x2ed   :  { %14242 = vpow2.f32 %v940_v52  ;;  %v934_v54 = vsub.f32 %v902_v59, %v916_v53 }
 0x2ef   :  { %v944_v55 = vmul.f32 1.442695, %v934_v54 }
 0x2f1   :  { %14244 = vpow2.f32 %v944_v55 }
 0x2f2   :  { %v925_v57 = vpop.xlane.xlu0 %924  ;;  %v922_v13 = vpop.xlane.xlu1 %921 }
 0x2f3   :  { %v14970_v58 = vpop.eup %14240  ;;  %v937_v62 = vsub.f32 %v905_v11, %v925_v57  ;;  %v936_v15 = vsub.f32 %v14931_v10, %v922_v13 }
 0x2f4   :  { %v959_v0 = vsel %vm230_vm2, %v14970_v58, 0.0 }
 0x2f5   :  { %v950_v1 = vmul.f32 1.442695, %v937_v62  ;;  %960 = vadd.xlane.f32.xlu0 %v959_v0  ;;  %v948_v18 = vmul.f32 1.442695, %v936_v15 }
 0x2f6   :  { %v919_v48 = vpop.xlane.xlu0 %918  ;;  %v928_v16 = vpop.xlane.xlu1 %927 }
 0x2f7   :  { %v14974_v2 = vpop.eup %14242  ;;  %v935_v4 = vsub.f32 %v903_v24, %v919_v48  ;;  %14246 = vpow2.f32 %v950_v1  ;;  %v938_v19 = vsub.f32 %v14939_v28, %v928_v16 }
 0x2f8   :  { %v956_v56 = vsel %vm230_vm2, %v14974_v2, 0.0 }
 0x2f9   :  { %v946_v59 = vmul.f32 1.442695, %v935_v4  ;;  %957 = vadd.xlane.f32.xlu1 %v956_v56  ;;  %v952_v24 = vmul.f32 1.442695, %v938_v19 }
 0x2fa   :  { %v931_v21 = vpop.xlane.xlu0 %930  ;;  %v15031_v49 = vpop.permute.xlu1 %1682 }
 0x2fb   :  { %v14978_v5 = vpop.eup %14244  ;;  %14248 = vpow2.f32 %v946_v59  ;;  %v939_v23 = vsub.f32 %v14945_v33, %v931_v21 }
 0x2fc   :  { %v962_v6 = vsel %vm230_vm2, %v14978_v5, 0.0  ;;  %14250 = vpow2.f32 %v948_v18 }
 0x2fd   :  { %963 = vadd.xlane.f32.xlu1 %v962_v6  ;;  %v954_v29 = vmul.f32 1.442695, %v939_v23  ;;  %14252 = vpow2.f32 %v952_v24 }
 0x2fe   :  { %v15029_v46 = vpop.permute.xlu0 %1604 }
 0x2ff   :  { %14254 = vpow2.f32 %v954_v29 }
 0x301   :  { %v14982_v7 = vpop.eup %14246 }
 0x302   :  { %v971_v8 = vsel %vm230_vm2, %v14982_v7, 0.0 }
 0x303   :  { %972 = vadd.xlane.f32.xlu0 %v971_v8 }
 0x305   :  { %v14986_v11 = vpop.eup %14248 }
 0x306   :  { %v965_v12 = vsel %vm230_vm2, %v14986_v11, 0.0  ;;  %v14999_v32 = vpop.eup %14250 }
 0x307   :  { %966 = vadd.xlane.f32.xlu0 %v965_v12  ;;  %v968_v34 = vsel %vm230_vm2, %v14999_v32, 0.0  ;;  %v15003_v45 = vpop.eup %14252 }
 0x308   :  { %v974_v28 = vsel %vm230_vm2, %v15003_v45, 0.0 }
 0x309   :  { %v15005_v10 = vpop.eup %14254 }
 0x30a   :  { %v977_v33 = vsel %vm230_vm2, %v15005_v10, 0.0 }
 0x30e   :  { %1840 = vrot.lane.b32.xlu1 %v14815_v25, %s14646_s23 }
 0x312   :  { %1838 = vrot.lane.b32.xlu1 %v14815_v25, %s14647_s24 }
 0x31d   :  { %1762 = vrot.lane.b32.xlu0 %v14809_v22, %s14646_s23 }
 0x336   :  { %969 = vadd.xlane.f32.xlu1 %v968_v34 }
 0x33a   :  { %975 = vadd.xlane.f32.xlu1 %v974_v28 }
 0x33c   :  { %978 = vadd.xlane.f32.xlu0 %v977_v33 }
 0x34b   :  { %1996 = vrot.lane.b32.xlu1 %v14819_v27, %s14646_s23 }
 0x34f   :  { %1994 = vrot.lane.b32.xlu1 %v14819_v27, %s14647_s24 }
 0x352   :  { %1760 = vrot.lane.b32.xlu0 %v14809_v22, %s14647_s24 }
 0x353   :  { %2152 = vrot.lane.b32.xlu1 %v14827_v31, %s14646_s23 }
 0x356   :  { %1918 = vrot.lane.b32.xlu0 %v14817_v26, %s14646_s23 }
 0x357   :  { %2150 = vrot.lane.b32.xlu1 %v14827_v31, %s14647_s24 }
 0x35a   :  { %1916 = vrot.lane.b32.xlu0 %v14817_v26, %s14647_s24 }
 0x35e   :  { %2074 = vrot.lane.b32.xlu0 %v14825_v30, %s14646_s23 }
 0x362   :  { %2072 = vrot.lane.b32.xlu0 %v14825_v30, %s14647_s24 }
 0x382   :  { %v961_v50 = vpop.xlane.xlu0 %960 }
 0x383   :  { %14256 = vrcp.f32 %v961_v50 }
 0x386   :  { %v958_v51 = vpop.xlane.xlu1 %957 }
 0x387   :  { %14258 = vrcp.f32 %v958_v51 }
 0x38a   :  { %v964_v52 = vpop.xlane.xlu1 %963 }
 0x38b   :  { %14260 = vrcp.f32 %v964_v52 }
 0x38d   :  { %v14257_v53 = vpop.eup %14256 }
 0x38e   :  { %v989_v54 = vmul.f32 %v14257_v53, %v14970_v58 }
 0x390   :  { %13425 = vmatmul.mubr.msk.f32.vlgmr.msra.gmra.mrb[14].mxu0 %vm230_vm2, %v989_v54  ;;  %v973_v57 = vpop.xlane.xlu0 %972 }
 0x391   :  { %v14259_v55 = vpop.eup %14258  ;;  %13433 = vmatpush3.msra.mxu0 %v14955_v36  ;;  %13434 = vmatprep.mubr.msk.f32.mxu0 %vm14643_vm1, %v17213_v14 }
 0x392   :  { %v988_v62 = vmul.f32 %v14259_v55, %v14974_v2  ;;  %13442 = vmatprep.subr.mxu0 %v17213_v14  ;;  %v1841_v2 = vpop.permute.xlu1 %1840 }
 0x394   :  { %13420 = vmatmul.mubr.msk.f32.vlgmr.msra.gmra.mrb[10].mxu1 %vm230_vm2, %v988_v62  ;;  %v967_v1 = vpop.xlane.xlu0 %966 }
 0x395   :  { %v14261_v0 = vpop.eup %14260  ;;  %13428 = vmatpush3.msra.mxu1 %v14953_v35  ;;  %13429 = vmatprep.mubr.msk.f32.mxu1 %vm14643_vm1, %v17213_v14  ;;  %14262 = vrcp.f32 %v967_v1 }
 0x396   :  { %13437 = vmatprep.subr.mxu1 %v17213_v14  ;;  %v990_v36 = vmul.f32 %v14261_v0, %v14978_v5  ;;  %14264 = vrcp.f32 %v973_v57  ;;  %v1839_v4 = vpop.permute.xlu1 %1838 }
 0x398   :  { %13430 = vmatmul.mubr.msk.f32.vlgmr.msra.gmra.mrb[12].mxu1 %vm230_vm2, %v990_v36 }
 0x399   :  { %13438 = vmatpush3.msra.mxu1 %v14959_v38  ;;  %13439 = vmatprep.mubr.msk.f32.mxu1 %vm14643_vm1, %v17213_v14 }
 0x39a   :  { %13447 = vmatprep.subr.mxu1 %v17213_v14 }
 0x39f   :  { %v14263_v58 = vpop.eup %14262 }
 0x3a0   :  { %v991_v35 = vmul.f32 %v14263_v58, %v14986_v11  ;;  %v14265_v48 = vpop.eup %14264 }
 0x3a1   :  { %v993_v38 = vmul.f32 %v14265_v48, %v14982_v7 }
 0x3a2   :  { %13435 = vmatmul.mubr.msk.f32.vlgmr.msra.gmra.mrb[16].mxu0 %vm230_vm2, %v991_v35 }
 0x3a3   :  { %13443 = vmatpush3.msra.mxu0 %v14957_v37  ;;  %13444 = vmatprep.mubr.msk.f32.mxu0 %vm14643_vm1, %v17213_v14  ;;  %v1763_v37 = vpop.permute.xlu0 %1762 }
 0x3a4   :  { %13452 = vmatprep.subr.mxu0 %v17213_v14 }
 0x3a6   :  { %13445 = vmatmul.mubr.msk.f32.vlgmr.msra.gmra.mrb[18].mxu0 %vm230_vm2, %v993_v38 }
 0x3a7   :  { %13453 = vmatpush3.msra.mxu0 %v14961_v39  ;;  %13454 = vmatprep.mubr.msk.f32.mxu0 %vm14643_vm1, %v17213_v14 }
 0x3a8   :  { %13462 = vmatprep.subr.mxu0 %v17213_v14 }
 0x3c3   :  { %v970_v56 = vpop.xlane.xlu1 %969 }
 0x3c4   :  { %14266 = vrcp.f32 %v970_v56 }
 0x3c7   :  { %v976_v59 = vpop.xlane.xlu1 %975 }
 0x3c8   :  { %14268 = vrcp.f32 %v976_v59 }
 0x3c9   :  { %v979_v5 = vpop.xlane.xlu0 %978 }
 0x3ca   :  { %14270 = vrcp.f32 %v979_v5 }
 0x3cb   :  { %v1997_v13 = vpop.permute.xlu1 %1996 }
 0x3cd   :  { %v1761_v7 = vpop.permute.xlu0 %1760 }
 0x3ce   :  { %v14267_v6 = vpop.eup %14266 }
 0x3cf   :  { %v992_v8 = vmul.f32 %v14267_v6, %v14999_v32 }
 0x3d1   :  { %13440 = vmatmul.mubr.msk.f32.vlgmr.msra.gmra.mrb[14].mxu1 %vm230_vm2, %v992_v8  ;;  %v1919_v15 = vpop.permute.xlu0 %1918 }
 0x3d2   :  { %v14269_v39 = vpop.eup %14268  ;;  %13448 = vmatpush3.msra.mxu1 %v14967_v43  ;;  %13449 = vmatprep.mubr.msk.f32.mxu1 %vm14643_vm1, %v17213_v14  ;;  %v1995_v43 = vpop.permute.xlu1 %1994 }
 0x3d3   :  { %v994_v11 = vmul.f32 %v14269_v39, %v15003_v45  ;;  %13457 = vmatprep.subr.mxu1 %v17213_v14 }
 0x3d4   :  { %v14271_v12 = vpop.eup %14270 }
 0x3d5   :  { %13450 = vmatmul.mubr.msk.f32.vlgmr.msra.gmra.mrb[16].mxu1 %vm230_vm2, %v994_v11  ;;  %v995_v16 = vmul.f32 %v14271_v12, %v15005_v10  ;;  %v1917_v18 = vpop.permute.xlu0 %1916 }
 0x3d6   :  { %13459 = vmatprep.mubr.msk.f32.mxu1 %vm14643_vm1, %v17213_v14 }
 0x3d7   :  { %13455 = vmatmul.mubr.msk.f32.vlgmr.msra.gmra.mrb[20].mxu0 %vm230_vm2, %v995_v16 }
 0x3d8   :  { %13463 = vmatpush3.xpose.msk.msra.mxu0 %vm230_vm2, %v14965_v41  ;;  %13464 = vmatprep.mubr.msk.f32.mxu0 %vm14643_vm1, %v17213_v14 }
 0x3d9   :  { %13458 = vmatpush3.xpose.msk.msra.mxu1 %vm230_vm2, %v14963_v40  ;;  %13472 = vmatprep.subr.mxu0 %v17213_v14  ;;  %v2153_v40 = vpop.permute.xlu1 %2152  ;;  %v2075_v41 = vpop.permute.xlu0 %2074 }
 0x3da   :  { %13467 = vmatprep.subr.mxu1 %v17213_v14 }
 0x3db   :  { %13465 = vmatmul.mubr.msk.f32.vlgmr.msra.gmra.mrb[22].mxu0 %vm230_vm2, %v15031_v49 }
 0x3dc   :  { %13460 = vmatmul.mubr.msk.f32.vlgmr.msra.gmra.mrb[18].mxu1 %vm230_vm2, %v15029_v46  ;;  %13473 = vmatpush3.xpose.msk.msra.mxu0 %vm230_vm2, %v1841_v2 }
 0x3dd   :  { %13468 = vmatpush3.xpose.msk.msra.mxu1 %vm230_vm2, %v1763_v37  ;;  %13474 = vmatprep.mubr.msk.f32.mxu0 %vm14643_vm1, %v17213_v14  ;;  %v2151_v19 = vpop.permute.xlu1 %2150  ;;  %v2073_v21 = vpop.permute.xlu0 %2072 }
 0x3de   :  { %13482 = vmatprep.subr.mxu0 %v17213_v14  ;;  %13469 = vmatprep.mubr.msk.f32.mxu1 %vm14643_vm1, %v17213_v14 }
 0x3df   :  { %13477 = vmatprep.subr.mxu1 %v17213_v14  ;;  %13475 = vmatmul.mubr.msk.f32.vlgmr.msra.gmra.mrb[24].mxu0 %vm230_vm2, %v1839_v4 }
 0x3e0   :  { %13470 = vmatmul.mubr.msk.f32.vlgmr.msra.gmra.mrb[20].mxu1 %vm230_vm2, %v1761_v7  ;;  %13483 = vmatpush3.xpose.msk.msra.mxu0 %vm230_vm2, %v1997_v13 }
 0x3e1   :  { %13478 = vmatpush3.xpose.msk.msra.mxu1 %vm230_vm2, %v1919_v15  ;;  %13484 = vmatprep.mubr.msk.f32.mxu0 %vm14643_vm1, %v17213_v14 }
 0x3e2   :  { %13492 = vmatprep.subr.mxu0 %v17213_v14  ;;  %13479 = vmatprep.mubr.msk.f32.mxu1 %vm14643_vm1, %v17213_v14 }
 0x3e3   :  { %13487 = vmatprep.subr.mxu1 %v17213_v14  ;;  %13485 = vmatmul.mubr.msk.f32.vlgmr.msra.gmra.mrb[26].mxu0 %vm230_vm2, %v1995_v43 }
 0x3e4   :  { %13480 = vmatmul.mubr.msk.f32.vlgmr.msra.gmra.mrb[22].mxu1 %vm230_vm2, %v1917_v18  ;;  %13493 = vmatpush3.xpose.msk.msra.mxu0 %vm230_vm2, %v2153_v40 }
 0x3e5   :  { %13488 = vmatpush3.xpose.msk.msra.mxu1 %vm230_vm2, %v2075_v41  ;;  %13494 = vmatprep.mubr.msk.f32.mxu0 %vm14643_vm1, %v17213_v14 }
 0x3e6   :  { %13489 = vmatprep.mubr.msk.f32.mxu1 %vm14643_vm1, %v17213_v14  ;;  %13497 = vmatprep.subr.mxu1 %v17213_v14 }
 0x3e7   :  { %13502 = vmatprep.subr.mxu0 %v17213_v14  ;;  %13495 = vmatmul.mubr.msk.f32.vlgmr.msra.gmra.mrb[28].mxu0 %vm230_vm2, %v2151_v19 }
 0x3e8   :  { %13490 = vmatmul.mubr.msk.f32.vlgmr.msra.gmra.mrb[24].mxu1 %vm230_vm2, %v2073_v21  ;;  %13504 = vmatprep.mubr.msk.f32.mxu0 %vm14643_vm1, %v17213_v14 }
 0x3e9   :  { %13499 = vmatprep.mubr.msk.f32.mxu1 %vm14643_vm1, %v17213_v14 }
 0x463   :  { %v15121_v23 = vpop.f32.mrb[14].mxu0 }
 0x464   :  { %v13426_v24 = vpop.f32.mrb[15].mxu0 }
 0x467   :  { %v15123_v29 = vpop.f32.mrb[10].mxu1 }
 0x468   :  { %v13421_v32 = vpop.f32.mrb[11].mxu1 }
 0x46b   :  { %v15125_v34 = vpop.f32.mrb[12].mxu1 }
 0x46c   :  { %v13431_v45 = vpop.f32.mrb[13].mxu1 }
 0x475   :  { %v15127_v10 = vpop.f32.mrb[16].mxu0 }
 0x476   :  { %v13436_v28 = vpop.f32.mrb[17].mxu0 }
 0x479   :  { %v15129_v33 = vpop.f32.mrb[18].mxu0 }
 0x47a   :  { %v13446_v46 = vpop.f32.mrb[19].mxu0 }
 0x4a4   :  { %v15131_v49 = vpop.f32.mrb[14].mxu1 }
 0x4a5   :  { %v13441_v50 = vpop.f32.mrb[15].mxu1 }
 0x4a8   :  { %v15133_v51 = vpop.f32.mrb[16].mxu1 }
 0x4a9   :  { %v13451_v52 = vpop.f32.mrb[17].mxu1 }
 0x4aa   :  { %v15135_v53 = vpop.f32.mrb[20].mxu0 }
 0x4ab   :  { %v13456_v54 = vpop.f32.mrb[21].mxu0 }
 0x4ae   :  { %v1756_v55 = vpop.f32.mrb[22].mxu0 }
 0x4af   :  { %v1678_v57 = vpop.f32.mrb[18].mxu1  ;;  %v2229_v62 = vmul.f32 0.35355338, %v1756_v55  ;;  %v13466_v1 = vpop.f32.mrb[23].mxu0 }
 0x4b0   :  { %v2228_v0 = vmul.f32 0.35355338, %v1678_v57  ;;  %v13461_v36 = vpop.f32.mrb[19].mxu1 }
 0x4b1   :  { %v15138_v58 = vadd.f32 %v14905_v42, %v2229_v62 }
 0x4b2   :  { %v15141_v35 = vadd.f32 %v14907_v44, %v2228_v0  ;;  %v1912_v48 = vpop.f32.mrb[24].mxu0 }
 0x4b3   :  { %v1834_v38 = vpop.f32.mrb[20].mxu1  ;;  %v13476_v4 = vpop.f32.mrb[25].mxu0  ;;  %v2247_v56 = vsel %vm230_vm2, %v15138_v58, -inf  ;;  %v2231_v37 = vmul.f32 0.35355338, %v1912_v48 }
 0x4b4   :  { %v2230_v2 = vmul.f32 0.35355338, %v1834_v38  ;;  %2248 = vmax.xlane.f32.xlu1 %v2247_v56  ;;  %v13471_v59 = vpop.f32.mrb[21].mxu1  ;;  %v2244_v5 = vsel %vm230_vm2, %v15141_v35, -inf }
 0x4b5   :  { %2245 = vmax.xlane.f32.xlu0 %v2244_v5  ;;  %v2239_v16 = vadd.f32 %v14923_v63, %v2231_v37 }
 0x4b6   :  { %v2238_v6 = vadd.f32 %v14909_v47, %v2230_v2  ;;  %v2068_v7 = vpop.f32.mrb[26].mxu0 }
 0x4b7   :  { %v1990_v8 = vpop.f32.mrb[22].mxu1  ;;  %v13486_v11 = vpop.f32.mrb[27].mxu0  ;;  %v2233_v13 = vmul.f32 0.35355338, %v2068_v7  ;;  %v2253_v24 = vsel %vm230_vm2, %v2239_v16, -inf }
 0x4b8   :  { %v2232_v39 = vmul.f32 0.35355338, %v1990_v8  ;;  %v13481_v12 = vpop.f32.mrb[23].mxu1  ;;  %v2250_v15 = vsel %vm230_vm2, %v2238_v6, -inf }
 0x4b9   :  { %2251 = vmax.xlane.f32.xlu0 %v2250_v15  ;;  %v2241_v45 = vadd.f32 %v14921_v61, %v2233_v13 }
 0x4ba   :  { %v2240_v43 = vadd.f32 %v14919_v60, %v2232_v39  ;;  %v2224_v18 = vpop.f32.mrb[28].mxu0 }
 0x4bb   :  { %v2146_v40 = vpop.f32.mrb[24].mxu1  ;;  %v13496_v41 = vpop.f32.mrb[29].mxu0  ;;  %v2235_v21 = vmul.f32 0.35355338, %v2224_v18  ;;  %v2259_v28 = vsel %vm230_vm2, %v2241_v45, -inf }
 0x4bc   :  { %v13491_v19 = vpop.f32.mrb[25].mxu1  ;;  %v2256_v32 = vsel %vm230_vm2, %v2240_v43, -inf  ;;  %v2234_v52 = vmul.f32 0.35355338, %v2146_v40 }
 0x4bd   :  { %2254 = vmax.xlane.f32.xlu0 %v2253_v24  ;;  %2257 = vmax.xlane.f32.xlu1 %v2256_v32  ;;  %v2243_v46 = vadd.f32 %v14928_v9, %v2235_v21 }
 0x4be   :  { %v15170_v54 = vadd.f32 %v14926_v3, %v2234_v52 }
 0x4bf   :  { %v2265_v50 = vsel %vm230_vm2, %v2243_v46, -inf }
 0x4c0   :  { %v2262_v55 = vsel %vm230_vm2, %v15170_v54, -inf }
 0x4c1   :  { %2260 = vmax.xlane.f32.xlu0 %v2259_v28 }
 0x4c5   :  { %2266 = vmax.xlane.f32.xlu0 %v2265_v50 }
 0x4ce   :  { %2332 = vrot.lane.b32.xlu1 %v14807_v20, %s14648_s25 }
 0x4db   :  { %2408 = vrot.lane.b32.xlu0 %v14803_v17, %s14648_s25 }
 0x4df   :  { %2636 = vrot.lane.b32.xlu0 %v14817_v26, %s14648_s25 }
 0x4e3   :  { %2788 = vrot.lane.b32.xlu0 %v14825_v30, %s14648_s25 }
 0x4e7   :  { %2942 = vrot.lane.b32.xlu0 %v14807_v20, %s14649_s26 }
 0x4eb   :  { %2940 = vrot.lane.b32.xlu0 %v14807_v20, %s14650_s27 }
 0x4ef   :  { %3098 = vrot.lane.b32.xlu0 %v14809_v22, %s14649_s26 }
 0x4f2   :  { %2263 = vmax.xlane.f32.xlu1 %v2262_v55 }
 0x503   :  { %2484 = vrot.lane.b32.xlu1 %v14809_v22, %s14648_s25 }
 0x507   :  { %2560 = vrot.lane.b32.xlu1 %v14815_v25, %s14648_s25 }
 0x50b   :  { %2712 = vrot.lane.b32.xlu1 %v14819_v27, %s14648_s25 }
 0x50f   :  { %2864 = vrot.lane.b32.xlu1 %v14827_v31, %s14648_s25 }
 0x513   :  { %3020 = vrot.lane.b32.xlu1 %v14803_v17, %s14649_s26 }
 0x517   :  { %3018 = vrot.lane.b32.xlu1 %v14803_v17, %s14650_s27 }
 0x51b   :  { %3176 = vrot.lane.b32.xlu1 %v14815_v25, %s14649_s26 }
 0x541   :  { %v2249_v57 = vpop.xlane.xlu1 %2248 }
 0x542   :  { %v2269_v62 = vsub.f32 %v15138_v58, %v2249_v57  ;;  %v2246_v0 = vpop.xlane.xlu0 %2245 }
 0x543   :  { %v2268_v1 = vsub.f32 %v15141_v35, %v2246_v0 }
 0x544   :  { %v2278_v36 = vmul.f32 1.442695, %v2269_v62 }
 0x545   :  { %v2276_v48 = vmul.f32 1.442695, %v2268_v1 }
 0x546   :  { %14272 = vpow2.f32 %v2278_v36  ;;  %v2252_v38 = vpop.xlane.xlu0 %2251 }
 0x547   :  { %14274 = vpow2.f32 %v2276_v48  ;;  %v2270_v2 = vsub.f32 %v2238_v6, %v2252_v38 }
 0x549   :  { %v2280_v4 = vmul.f32 1.442695, %v2270_v2 }
 0x54a   :  { %v2258_v56 = vpop.xlane.xlu1 %2257  ;;  %v2255_v37 = vpop.xlane.xlu0 %2254 }
 0x54b   :  { %14276 = vpow2.f32 %v2280_v4  ;;  %v2272_v59 = vsub.f32 %v2240_v43, %v2258_v56  ;;  %v2271_v5 = vsub.f32 %v2239_v16, %v2255_v37 }
 0x54d   :  { %v2284_v7 = vmul.f32 1.442695, %v2272_v59  ;;  %v2282_v8 = vmul.f32 1.442695, %v2271_v5 }
 0x54e   :  { %v2333_v39 = vpop.permute.xlu1 %2332  ;;  %v2261_v11 = vpop.xlane.xlu0 %2260 }
 0x54f   :  { %14278 = vpow2.f32 %v2284_v7  ;;  %v2273_v58 = vsub.f32 %v2241_v45, %v2261_v11  ;;  %13498 = vmatpush3.msra.mxu1 %v2333_v39 }
 0x550   :  { %v15192_v35 = vpop.eup %14272  ;;  %14280 = vpow2.f32 %v2282_v8  ;;  %13507 = vmatprep.subr.mxu1 %v17213_v14 }
 0x551   :  { %v15195_v12 = vpop.eup %14274  ;;  %v2286_v6 = vmul.f32 1.442695, %v2273_v58  ;;  %v2295_v13 = vsel %vm230_vm2, %v15192_v35, 0.0 }
 0x552   :  { %2296 = vadd.xlane.f32.xlu0 %v2295_v13  ;;  %v2267_v15 = vpop.xlane.xlu0 %2266  ;;  %v2292_v16 = vsel %vm230_vm2, %v15195_v12, 0.0 }
 0x553   :  { %14282 = vpow2.f32 %v2286_v6  ;;  %v2275_v43 = vsub.f32 %v2243_v46, %v2267_v15  ;;  %2293 = vadd.xlane.f32.xlu1 %v2292_v16 }
 0x555   :  { %v15201_v18 = vpop.eup %14276  ;;  %v2290_v40 = vmul.f32 1.442695, %v2275_v43 }
 0x556   :  { %v2409_v41 = vpop.permute.xlu0 %2408  ;;  %v2298_v19 = vsel %vm230_vm2, %v15201_v18, 0.0 }
 0x557   :  { %14284 = vpow2.f32 %v2290_v40  ;;  %2299 = vadd.xlane.f32.xlu1 %v2298_v19  ;;  %13503 = vmatpush3.msra.mxu0 %v2409_v41 }
 0x558   :  { %13512 = vmatprep.subr.mxu0 %v17213_v14 }
 0x559   :  { %v15206_v21 = vpop.eup %14278 }
 0x55a   :  { %v15208_v24 = vpop.eup %14280  ;;  %v2304_v32 = vsel %vm230_vm2, %v15206_v21, 0.0  ;;  %v2637_v48 = vpop.permute.xlu0 %2636 }
 0x55b   :  { %2305 = vadd.xlane.f32.xlu1 %v2304_v32  ;;  %v2301_v45 = vsel %vm230_vm2, %v15208_v24, 0.0 }
 0x55c   :  { %2302 = vadd.xlane.f32.xlu0 %v2301_v45 }
 0x55d   :  { %v15214_v28 = vpop.eup %14282 }
 0x55e   :  { %v2307_v46 = vsel %vm230_vm2, %v15214_v28, 0.0  ;;  %v2789_v2 = vpop.permute.xlu0 %2788 }
 0x560   :  { %2308 = vadd.xlane.f32.xlu0 %v2307_v46 }
 0x561   :  { %v15218_v50 = vpop.eup %14284 }
 0x562   :  { %v2313_v52 = vsel %vm230_vm2, %v15218_v50, 0.0  ;;  %v15247_v56 = vpop.permute.xlu0 %2942 }
 0x564   :  { %2314 = vadd.xlane.f32.xlu0 %v2313_v52 }
 0x566   :  { %v15249_v59 = vpop.permute.xlu0 %2940 }
 0x56a   :  { %v15251_v7 = vpop.permute.xlu0 %3098 }
 0x57a   :  { %3096 = vrot.lane.b32.xlu0 %v14809_v22, %s14650_s27 }
 0x57e   :  { %3254 = vrot.lane.b32.xlu0 %v14817_v26, %s14649_s26 }
 0x57f   :  { %v2264_v55 = vpop.xlane.xlu1 %2263 }
 0x580   :  { %v2274_v57 = vsub.f32 %v15170_v54, %v2264_v55 }
 0x582   :  { %v2288_v62 = vmul.f32 1.442695, %v2274_v57  ;;  %3252 = vrot.lane.b32.xlu0 %v14817_v26, %s14650_s27 }
 0x583   :  { %v2485_v54 = vpop.permute.xlu1 %2484 }
 0x584   :  { %14286 = vpow2.f32 %v2288_v62 }
 0x586   :  { %3410 = vrot.lane.b32.xlu0 %v14825_v30, %s14649_s26 }
 0x587   :  { %v2561_v36 = vpop.permute.xlu1 %2560 }
 0x58a   :  { %3408 = vrot.lane.b32.xlu0 %v14825_v30, %s14650_s27 }
 0x58b   :  { %v2713_v38 = vpop.permute.xlu1 %2712 }
 0x58e   :  { %v15233_v0 = vpop.eup %14286 }
 0x58f   :  { %v2310_v1 = vsel %vm230_vm2, %v15233_v0, 0.0  ;;  %v2865_v4 = vpop.permute.xlu1 %2864 }
 0x590   :  { %2311 = vadd.xlane.f32.xlu1 %v2310_v1 }
 0x593   :  { %v3021_v37 = vpop.permute.xlu1 %3020 }
 0x597   :  { %v3019_v5 = vpop.permute.xlu1 %3018 }
 0x59b   :  { %v3177_v8 = vpop.permute.xlu1 %3176 }
 0x5a1   :  { %3174 = vrot.lane.b32.xlu1 %v14815_v25, %s14650_s27 }
 0x5a5   :  { %3332 = vrot.lane.b32.xlu1 %v14819_v27, %s14649_s26 }
 0x5a9   :  { %3330 = vrot.lane.b32.xlu1 %v14819_v27, %s14650_s27 }
 0x5ad   :  { %3488 = vrot.lane.b32.xlu1 %v14827_v31, %s14649_s26 }
 0x5b1   :  { %3486 = vrot.lane.b32.xlu1 %v14827_v31, %s14650_s27 }
 0x5df   :  { %v2297_v39 = vpop.xlane.xlu0 %2296 }
 0x5e0   :  { %14288 = vrcp.f32 %v2297_v39  ;;  %v2294_v11 = vpop.xlane.xlu1 %2293 }
 0x5e1   :  { %14290 = vrcp.f32 %v2294_v11 }
 0x5e4   :  { %v2300_v58 = vpop.xlane.xlu1 %2299 }
 0x5e5   :  { %14292 = vrcp.f32 %v2300_v58 }
 0x5e8   :  { %v2306_v6 = vpop.xlane.xlu1 %2305 }
 0x5e9   :  { %14294 = vrcp.f32 %v2306_v6  ;;  %v2303_v13 = vpop.xlane.xlu0 %2302 }
 0x5ea   :  { %v14289_v15 = vpop.eup %14288  ;;  %14296 = vrcp.f32 %v2303_v13 }
 0x5eb   :  { %v14291_v16 = vpop.eup %14290  ;;  %v2325_v43 = vmul.f32 %v14289_v15, %v15192_v35 }
 0x5ec   :  { %v2324_v40 = vmul.f32 %v14291_v16, %v15195_v12 }
 0x5ed   :  { %v2309_v41 = vpop.xlane.xlu0 %2308  ;;  %13505 = vmatmul.mubr.msk.f32.vlgmr.msra.gmra.mrb[30].mxu0 %vm230_vm2, %v2325_v43 }
 0x5ee   :  { %14298 = vrcp.f32 %v2309_v41  ;;  %13513 = vmatpush3.msra.mxu0 %v2561_v36  ;;  %13500 = vmatmul.mubr.msk.f32.vlgmr.msra.gmra.mrb[26].mxu1 %vm230_vm2, %v2324_v40 }
 0x5ef   :  { %v14293_v19 = vpop.eup %14292  ;;  %13508 = vmatpush3.msra.mxu1 %v2485_v54  ;;  %13509 = vmatprep.mubr.msk.f32.mxu1 %vm14643_vm1, %v17213_v14 }
 0x5f0   :  { %13517 = vmatprep.subr.mxu1 %v17213_v14  ;;  %v2326_v32 = vmul.f32 %v14293_v19, %v15201_v18  ;;  %13514 = vmatprep.mubr.msk.f32.mxu0 %vm14643_vm1, %v17213_v14 }
 0x5f1   :  { %v2315_v35 = vpop.xlane.xlu0 %2314  ;;  %13522 = vmatprep.subr.mxu0 %v17213_v14 }
 0x5f2   :  { %14300 = vrcp.f32 %v2315_v35  ;;  %13510 = vmatmul.mubr.msk.f32.vlgmr.msra.gmra.mrb[28].mxu1 %vm230_vm2, %v2326_v32 }
 0x5f3   :  { %v14295_v12 = vpop.eup %14294  ;;  %13518 = vmatpush3.msra.mxu1 %v2637_v48  ;;  %13519 = vmatprep.mubr.msk.f32.mxu1 %vm14643_vm1, %v17213_v14 }
 0x5f4   :  { %v14297_v45 = vpop.eup %14296  ;;  %13527 = vmatprep.subr.mxu1 %v17213_v14  ;;  %v2328_v46 = vmul.f32 %v14295_v12, %v15206_v21 }
 0x5f5   :  { %v2327_v18 = vmul.f32 %v14297_v45, %v15208_v24  ;;  %v3097_v57 = vpop.permute.xlu0 %3096 }
 0x5f6   :  { %13520 = vmatmul.mubr.msk.f32.vlgmr.msra.gmra.mrb[30].mxu1 %vm230_vm2, %v2328_v46 }
 0x5f7   :  { %13515 = vmatmul.mubr.msk.f32.vlgmr.msra.gmra.mrb[32].mxu0 %vm230_vm2, %v2327_v18  ;;  %13528 = vmatpush3.msra.mxu1 %v2789_v2 }
 0x5f8   :  { %v14299_v52 = vpop.eup %14298  ;;  %13523 = vmatpush3.msra.mxu0 %v2713_v38  ;;  %13524 = vmatprep.mubr.msk.f32.mxu0 %vm14643_vm1, %v17213_v14 }
 0x5f9   :  { %13532 = vmatprep.subr.mxu0 %v17213_v14  ;;  %v2329_v55 = vmul.f32 %v14299_v52, %v15214_v28  ;;  %13529 = vmatprep.mubr.msk.f32.mxu1 %vm14643_vm1, %v17213_v14  ;;  %v3255_v54 = vpop.permute.xlu0 %3254 }
 0x5fa   :  { %13537 = vmatprep.subr.mxu1 %v17213_v14 }
 0x5fb   :  { %13525 = vmatmul.mubr.msk.f32.vlgmr.msra.gmra.mrb[34].mxu0 %vm230_vm2, %v2329_v55 }
 0x5fc   :  { %v14301_v21 = vpop.eup %14300  ;;  %13533 = vmatpush3.msra.mxu0 %v2865_v4  ;;  %13534 = vmatprep.mubr.msk.f32.mxu0 %vm14643_vm1, %v17213_v14 }
 0x5fd   :  { %v2331_v24 = vmul.f32 %v14301_v21, %v15218_v50  ;;  %13542 = vmatprep.subr.mxu0 %v17213_v14  ;;  %v3253_v2 = vpop.permute.xlu0 %3252 }
 0x5ff   :  { %13535 = vmatmul.mubr.msk.f32.vlgmr.msra.gmra.mrb[36].mxu0 %vm230_vm2, %v2331_v24 }
 0x600   :  { %13544 = vmatprep.mubr.msk.f32.mxu0 %vm14643_vm1, %v17213_v14 }
 0x601   :  { %v3411_v4 = vpop.permute.xlu0 %3410 }
 0x603   :  { %13543 = vmatpush3.xpose.msk.msra.mxu0 %vm230_vm2, %v3021_v37 }
 0x604   :  { %13552 = vmatprep.subr.mxu0 %v17213_v14 }
 0x606   :  { %13545 = vmatmul.mubr.msk.f32.vlgmr.msra.gmra.mrb[38].mxu0 %vm230_vm2, %v3019_v5 }
 0x607   :  { %13553 = vmatpush3.xpose.msk.msra.mxu0 %vm230_vm2, %v3177_v8  ;;  %13554 = vmatprep.mubr.msk.f32.mxu0 %vm14643_vm1, %v17213_v14 }
 0x608   :  { %13562 = vmatprep.subr.mxu0 %v17213_v14 }
 0x61d   :  { %v2312_v28 = vpop.xlane.xlu1 %2311 }
 0x61e   :  { %14302 = vrcp.f32 %v2312_v28 }
 0x621   :  { %v3175_v50 = vpop.permute.xlu1 %3174 }
 0x622   :  { %13555 = vmatmul.mubr.msk.f32.vlgmr.msra.gmra.mrb[40].mxu0 %vm230_vm2, %v3175_v50 }
 0x623   :  { %13564 = vmatprep.mubr.msk.f32.mxu0 %vm14643_vm1, %v17213_v14 }
 0x625   :  { %v3333_v62 = vpop.permute.xlu1 %3332 }
 0x626   :  { %13563 = vmatpush3.xpose.msk.msra.mxu0 %vm230_vm2, %v3333_v62 }
 0x627   :  { %13572 = vmatprep.subr.mxu0 %v17213_v14 }
 0x628   :  { %v14303_v1 = vpop.eup %14302 }
 0x629   :  { %v3331_v36 = vpop.permute.xlu1 %3330  ;;  %v2330_v48 = vmul.f32 %v14303_v1, %v15233_v0 }
 0x62a   :  { %13565 = vmatmul.mubr.msk.f32.vlgmr.msra.gmra.mrb[42].mxu0 %vm230_vm2, %v3331_v36 }
 0x62b   :  { %13530 = vmatmul.mubr.msk.f32.vlgmr.msra.gmra.mrb[32].mxu1 %vm230_vm2, %v2330_v48  ;;  %13574 = vmatprep.mubr.msk.f32.mxu0 %vm14643_vm1, %v17213_v14 }
 0x62c   :  { %13538 = vmatpush3.xpose.msk.msra.mxu1 %vm230_vm2, %v15247_v56  ;;  %13539 = vmatprep.mubr.msk.f32.mxu1 %vm14643_vm1, %v17213_v14  ;;  %v3409_v56 = vpop.permute.xlu0 %3408 }
 0x62d   :  { %v3489_v38 = vpop.permute.xlu1 %3488  ;;  %13547 = vmatprep.subr.mxu1 %v17213_v14 }
 0x62e   :  { %13573 = vmatpush3.xpose.msk.msra.mxu0 %vm230_vm2, %v3489_v38 }
 0x62f   :  { %13540 = vmatmul.mubr.msk.f32.vlgmr.msra.gmra.mrb[34].mxu1 %vm230_vm2, %v15249_v59  ;;  %13582 = vmatprep.subr.mxu0 %v17213_v14 }
 0x630   :  { %13548 = vmatpush3.xpose.msk.msra.mxu1 %vm230_vm2, %v15251_v7  ;;  %13549 = vmatprep.mubr.msk.f32.mxu1 %vm14643_vm1, %v17213_v14 }
 0x631   :  { %v3487_v0 = vpop.permute.xlu1 %3486  ;;  %13557 = vmatprep.subr.mxu1 %v17213_v14 }
 0x632   :  { %13575 = vmatmul.mubr.msk.f32.vlgmr.msra.gmra.mrb[44].mxu0 %vm230_vm2, %v3487_v0 }
 0x633   :  { %13550 = vmatmul.mubr.msk.f32.vlgmr.msra.gmra.mrb[36].mxu1 %vm230_vm2, %v3097_v57  ;;  %13584 = vmatprep.mubr.msk.f32.mxu0 %vm14643_vm1, %v17213_v14 }
 0x634   :  { %13558 = vmatpush3.xpose.msk.msra.mxu1 %vm230_vm2, %v3255_v54  ;;  %13559 = vmatprep.mubr.msk.f32.mxu1 %vm14643_vm1, %v17213_v14 }
 0x635   :  { %13567 = vmatprep.subr.mxu1 %v17213_v14 }
 0x637   :  { %13560 = vmatmul.mubr.msk.f32.vlgmr.msra.gmra.mrb[38].mxu1 %vm230_vm2, %v3253_v2 }
 0x638   :  { %13568 = vmatpush3.xpose.msk.msra.mxu1 %vm230_vm2, %v3411_v4  ;;  %13569 = vmatprep.mubr.msk.f32.mxu1 %vm14643_vm1, %v17213_v14 }
 0x639   :  { %13577 = vmatprep.subr.mxu1 %v17213_v14 }
 0x63b   :  { %13570 = vmatmul.mubr.msk.f32.vlgmr.msra.gmra.mrb[40].mxu1 %vm230_vm2, %v3409_v56 }
 0x63c   :  { %13579 = vmatprep.mubr.msk.f32.mxu1 %vm14643_vm1, %v17213_v14 }
 0x6c0   :  { %v15334_v37 = vpop.f32.mrb[30].mxu0 }
 0x6c1   :  { %v15336_v59 = vpop.f32.mrb[26].mxu1  ;;  %v13506_v5 = vpop.f32.mrb[31].mxu0 }
 0x6c2   :  { %v13501_v7 = vpop.f32.mrb[27].mxu1 }
 0x6c5   :  { %v15338_v8 = vpop.f32.mrb[28].mxu1 }
 0x6c6   :  { %v13511_v39 = vpop.f32.mrb[29].mxu1 }
 0x6c9   :  { %v15340_v11 = vpop.f32.mrb[30].mxu1 }
 0x6ca   :  { %v15342_v58 = vpop.f32.mrb[32].mxu0  ;;  %v13521_v6 = vpop.f32.mrb[31].mxu1 }
 0x6cb   :  { %v13516_v13 = vpop.f32.mrb[33].mxu0 }
 0x6ce   :  { %v15344_v15 = vpop.f32.mrb[34].mxu0 }
 0x6cf   :  { %v13526_v16 = vpop.f32.mrb[35].mxu0 }
 0x6d2   :  { %v15346_v43 = vpop.f32.mrb[36].mxu0 }
 0x6d3   :  { %v13536_v40 = vpop.f32.mrb[37].mxu0 }
 0x6d9   :  { %v3092_v41 = vpop.f32.mrb[38].mxu0 }
 0x6da   :  { %v3565_v19 = vmul.f32 0.35355338, %v3092_v41  ;;  %v13546_v32 = vpop.f32.mrb[39].mxu0 }
 0x6dc   :  { %v15349_v35 = vadd.f32 %v14905_v42, %v3565_v19 }
 0x6de   :  { %v3583_v12 = vsel %vm230_vm2, %v15349_v35, -inf }
 0x6df   :  { %3584 = vmax.xlane.f32.xlu1 %v3583_v12 }
 0x6f5   :  { %v3248_v45 = vpop.f32.mrb[40].mxu0 }
 0x6f6   :  { %v13556_v46 = vpop.f32.mrb[41].mxu0  ;;  %v3567_v36 = vmul.f32 0.35355338, %v3248_v45 }
 0x6f8   :  { %v3575_v6 = vadd.f32 %v14923_v63, %v3567_v36 }
 0x6fa   :  { %v3589_v19 = vsel %vm230_vm2, %v3575_v6, -inf }
 0x6fd   :  { %v3404_v18 = vpop.f32.mrb[42].mxu0 }
 0x6fe   :  { %v15353_v52 = vpop.f32.mrb[32].mxu1  ;;  %v13566_v55 = vpop.f32.mrb[43].mxu0  ;;  %v3569_v56 = vmul.f32 0.35355338, %v3404_v18 }
 0x6ff   :  { %v13531_v21 = vpop.f32.mrb[33].mxu1 }
 0x700   :  { %v3577_v12 = vadd.f32 %v14921_v61, %v3569_v56 }
 0x702   :  { %v3014_v24 = vpop.f32.mrb[34].mxu1  ;;  %v3595_v45 = vsel %vm230_vm2, %v3577_v12, -inf }
 0x703   :  { %v3564_v28 = vmul.f32 0.35355338, %v3014_v24  ;;  %v13541_v50 = vpop.f32.mrb[35].mxu1 }
 0x705   :  { %v3560_v57 = vpop.f32.mrb[44].mxu0  ;;  %v3572_v62 = vadd.f32 %v14907_v44, %v3564_v28 }
 0x706   :  { %v3170_v1 = vpop.f32.mrb[36].mxu1  ;;  %v13576_v54 = vpop.f32.mrb[45].mxu0  ;;  %v3571_v40 = vmul.f32 0.35355338, %v3560_v57 }
 0x707   :  { %v3566_v48 = vmul.f32 0.35355338, %v3170_v1  ;;  %v13551_v38 = vpop.f32.mrb[37].mxu1  ;;  %v3580_v2 = vsel %vm230_vm2, %v3572_v62, -inf }
 0x708   :  { %3581 = vmax.xlane.f32.xlu0 %v3580_v2  ;;  %v3579_v46 = vadd.f32 %v14928_v9, %v3571_v40 }
 0x709   :  { %v3574_v0 = vadd.f32 %v14909_v47, %v3566_v48 }
 0x70a   :  { %v3326_v4 = vpop.f32.mrb[38].mxu1  ;;  %v3601_v18 = vsel %vm230_vm2, %v3579_v46, -inf }
 0x70b   :  { %v3568_v5 = vmul.f32 0.35355338, %v3326_v4  ;;  %v13561_v7 = vpop.f32.mrb[39].mxu1  ;;  %v3586_v39 = vsel %vm230_vm2, %v3574_v0, -inf }
 0x70c   :  { %3587 = vmax.xlane.f32.xlu0 %v3586_v39 }
 0x70d   :  { %v3576_v13 = vadd.f32 %v14919_v60, %v3568_v5 }
 0x70e   :  { %v3482_v16 = vpop.f32.mrb[40].mxu1 }
 0x70f   :  { %v13571_v41 = vpop.f32.mrb[41].mxu1  ;;  %v3592_v32 = vsel %vm230_vm2, %v3576_v13, -inf  ;;  %v3570_v55 = vmul.f32 0.35355338, %v3482_v16 }
 0x710   :  { %3590 = vmax.xlane.f32.xlu0 %v3589_v19  ;;  %3593 = vmax.xlane.f32.xlu1 %v3592_v32 }
 0x711   :  { %v15380_v21 = vadd.f32 %v14926_v3, %v3570_v55 }
 0x713   :  { %v3598_v24 = vsel %vm230_vm2, %v15380_v21, -inf }
 0x714   :  { %3596 = vmax.xlane.f32.xlu0 %v3595_v45 }
 0x718   :  { %3602 = vmax.xlane.f32.xlu0 %v3601_v18 }
 0x721   :  { %3668 = vrot.lane.b32.xlu1 %v14807_v20, %s14651_s1 }
 0x72e   :  { %3744 = vrot.lane.b32.xlu0 %v14803_v17, %s14651_s1 }
 0x732   :  { %3972 = vrot.lane.b32.xlu0 %v14817_v26, %s14651_s1 }
 0x736   :  { %4124 = vrot.lane.b32.xlu0 %v14825_v30, %s14651_s1 }
 0x73a   :  { %4278 = vrot.lane.b32.xlu0 %v14807_v20, %s14652_s28 }
 0x73e   :  { %4276 = vrot.lane.b32.xlu0 %v14807_v20, %s14653_s29 }
 0x742   :  { %4434 = vrot.lane.b32.xlu0 %v14809_v22, %s14652_s28 }
 0x745   :  { %3599 = vmax.xlane.f32.xlu1 %v3598_v24 }
 0x756   :  { %3820 = vrot.lane.b32.xlu1 %v14809_v22, %s14651_s1 }
 0x75a   :  { %3896 = vrot.lane.b32.xlu1 %v14815_v25, %s14651_s1 }
 0x75e   :  { %4048 = vrot.lane.b32.xlu1 %v14819_v27, %s14651_s1 }
 0x762   :  { %4200 = vrot.lane.b32.xlu1 %v14827_v31, %s14651_s1 }
 0x766   :  { %4356 = vrot.lane.b32.xlu1 %v14803_v17, %s14652_s28 }
 0x76a   :  { %4354 = vrot.lane.b32.xlu1 %v14803_v17, %s14653_s29 }
 0x76c   :  { %v3585_v28 = vpop.xlane.xlu1 %3584 }
 0x76d   :  { %v3605_v50 = vsub.f32 %v15349_v35, %v3585_v28 }
 0x76e   :  { %4512 = vrot.lane.b32.xlu1 %v14815_v25, %s14652_s28 }
 0x76f   :  { %v3614_v57 = vmul.f32 1.442695, %v3605_v50 }
 0x771   :  { %14304 = vpow2.f32 %v3614_v57 }
 0x77b   :  { %v15401_v1 = vpop.eup %14304 }
 0x77c   :  { %v3631_v54 = vsel %vm230_vm2, %v15401_v1, 0.0 }
 0x77d   :  { %3632 = vadd.xlane.f32.xlu0 %v3631_v54 }
 0x795   :  { %v3582_v36 = vpop.xlane.xlu0 %3581 }
 0x796   :  { %v3604_v48 = vsub.f32 %v3572_v62, %v3582_v36 }
 0x798   :  { %v3612_v38 = vmul.f32 1.442695, %v3604_v48 }
 0x799   :  { %v3588_v2 = vpop.xlane.xlu0 %3587 }
 0x79a   :  { %14306 = vpow2.f32 %v3612_v38  ;;  %v3606_v4 = vsub.f32 %v3574_v0, %v3588_v2 }
 0x79c   :  { %v3616_v56 = vmul.f32 1.442695, %v3606_v4 }
 0x79d   :  { %v3594_v5 = vpop.xlane.xlu1 %3593  ;;  %v3591_v35 = vpop.xlane.xlu0 %3590 }
 0x79e   :  { %14308 = vpow2.f32 %v3616_v56  ;;  %v3608_v7 = vsub.f32 %v3576_v13, %v3594_v5  ;;  %v3607_v39 = vsub.f32 %v3575_v6, %v3591_v35 }
 0x7a0   :  { %v3620_v16 = vmul.f32 1.442695, %v3608_v7  ;;  %v3618_v40 = vmul.f32 1.442695, %v3607_v39 }
 0x7a1   :  { %v3669_v41 = vpop.permute.xlu1 %3668  ;;  %v3597_v19 = vpop.xlane.xlu0 %3596 }
 0x7a2   :  { %14310 = vpow2.f32 %v3620_v16  ;;  %v3609_v32 = vsub.f32 %v3577_v12, %v3597_v19  ;;  %13578 = vmatpush3.msra.mxu1 %v3669_v41 }
 0x7a3   :  { %14312 = vpow2.f32 %v3618_v40  ;;  %13587 = vmatprep.subr.mxu1 %v17213_v14 }
 0x7a4   :  { %v15406_v62 = vpop.eup %14306  ;;  %v3622_v45 = vmul.f32 1.442695, %v3609_v32 }
 0x7a5   :  { %v3603_v0 = vpop.xlane.xlu0 %3602  ;;  %v3628_v18 = vsel %vm230_vm2, %v15406_v62, 0.0 }
 0x7a6   :  { %14314 = vpow2.f32 %v3622_v45  ;;  %v3611_v13 = vsub.f32 %v3579_v46, %v3603_v0  ;;  %3629 = vadd.xlane.f32.xlu1 %v3628_v18 }
 0x7a8   :  { %v15410_v6 = vpop.eup %14308  ;;  %v3626_v55 = vmul.f32 1.442695, %v3611_v13 }
 0x7a9   :  { %v3745_v24 = vpop.permute.xlu0 %3744  ;;  %v3634_v12 = vsel %vm230_vm2, %v15410_v6, 0.0 }
 0x7aa   :  { %14316 = vpow2.f32 %v3626_v55  ;;  %3635 = vadd.xlane.f32.xlu1 %v3634_v12  ;;  %13583 = vmatpush3.msra.mxu0 %v3745_v24 }
 0x7ab   :  { %13592 = vmatprep.subr.mxu0 %v17213_v14 }
 0x7ac   :  { %v15415_v28 = vpop.eup %14310 }
 0x7ad   :  { %v15417_v50 = vpop.eup %14312  ;;  %v3640_v46 = vsel %vm230_vm2, %v15415_v28, 0.0  ;;  %v3973_v7 = vpop.permute.xlu0 %3972 }
 0x7ae   :  { %3641 = vadd.xlane.f32.xlu1 %v3640_v46  ;;  %v3637_v57 = vsel %vm230_vm2, %v15417_v50, 0.0 }
 0x7af   :  { %3638 = vadd.xlane.f32.xlu0 %v3637_v57 }
 0x7b0   :  { %v15423_v54 = vpop.eup %14314 }
 0x7b1   :  { %v3643_v36 = vsel %vm230_vm2, %v15423_v54, 0.0  ;;  %v4125_v39 = vpop.permute.xlu0 %4124 }
 0x7b3   :  { %3644 = vadd.xlane.f32.xlu0 %v3643_v36 }
 0x7b4   :  { %v15427_v48 = vpop.eup %14316 }
 0x7b5   :  { %v3649_v38 = vsel %vm230_vm2, %v15427_v48, 0.0 }
 0x7b7   :  { %3650 = vadd.xlane.f32.xlu0 %v3649_v38 }
 0x7cd   :  { %4432 = vrot.lane.b32.xlu0 %v14809_v22, %s14653_s29 }
 0x7d1   :  { %4590 = vrot.lane.b32.xlu0 %v14817_v26, %s14652_s28 }
 0x7d2   :  { %v3600_v2 = vpop.xlane.xlu1 %3599 }
 0x7d3   :  { %v3610_v4 = vsub.f32 %v15380_v21, %v3600_v2  ;;  %v15450_v21 = vpop.permute.xlu0 %4278 }
 0x7d5   :  { %v3624_v56 = vmul.f32 1.442695, %v3610_v4  ;;  %4588 = vrot.lane.b32.xlu0 %v14817_v26, %s14653_s29 }
 0x7d6   :  { %v3821_v19 = vpop.permute.xlu1 %3820 }
 0x7d7   :  { %14318 = vpow2.f32 %v3624_v56  ;;  %v15454_v16 = vpop.permute.xlu0 %4276 }
 0x7d9   :  { %4746 = vrot.lane.b32.xlu0 %v14825_v30, %s14652_s28 }
 0x7da   :  { %v3897_v32 = vpop.permute.xlu1 %3896 }
 0x7db   :  { %v15460_v40 = vpop.permute.xlu0 %4434 }
 0x7dd   :  { %4744 = vrot.lane.b32.xlu0 %v14825_v30, %s14653_s29 }
 0x7de   :  { %v4049_v18 = vpop.permute.xlu1 %4048 }
 0x7e1   :  { %v15442_v5 = vpop.eup %14318 }
 0x7e2   :  { %v3646_v35 = vsel %vm230_vm2, %v15442_v5, 0.0  ;;  %v4201_v13 = vpop.permute.xlu1 %4200 }
 0x7e3   :  { %3647 = vadd.xlane.f32.xlu1 %v3646_v35 }
 0x7e6   :  { %v4357_v55 = vpop.permute.xlu1 %4356 }
 0x7ea   :  { %v4355_v24 = vpop.permute.xlu1 %4354 }
 0x7ee   :  { %v4513_v12 = vpop.permute.xlu1 %4512 }
 0x7f4   :  { %4510 = vrot.lane.b32.xlu1 %v14815_v25, %s14653_s29 }
 0x7f8   :  { %4668 = vrot.lane.b32.xlu1 %v14819_v27, %s14652_s28 }
 0x7fc   :  { %4666 = vrot.lane.b32.xlu1 %v14819_v27, %s14653_s29 }
 0x800   :  { %4824 = vrot.lane.b32.xlu1 %v14827_v31, %s14652_s28 }
 0x804   :  { %4822 = vrot.lane.b32.xlu1 %v14827_v31, %s14653_s29 }
 0x80a   :  { %v3633_v41 = vpop.xlane.xlu0 %3632 }
 0x80b   :  { %14320 = vrcp.f32 %v3633_v41 }
 0x815   :  { %v14321_v45 = vpop.eup %14320 }
 0x816   :  { %v3661_v0 = vmul.f32 %v14321_v45, %v15401_v1 }
 0x818   :  { %13585 = vmatmul.mubr.msk.f32.vlgmr.msra.gmra.mrb[46].mxu0 %vm230_vm2, %v3661_v0 }
 0x819   :  { %13593 = vmatpush3.msra.mxu0 %v3897_v32  ;;  %13594 = vmatprep.mubr.msk.f32.mxu0 %vm14643_vm1, %v17213_v14 }
 0x81a   :  { %13602 = vmatprep.subr.mxu0 %v17213_v14 }
 0x833   :  { %v3630_v46 = vpop.xlane.xlu1 %3629 }
 0x834   :  { %14322 = vrcp.f32 %v3630_v46 }
 0x837   :  { %v3636_v57 = vpop.xlane.xlu1 %3635 }
 0x838   :  { %14324 = vrcp.f32 %v3636_v57 }
 0x83b   :  { %v3642_v36 = vpop.xlane.xlu1 %3641 }
 0x83c   :  { %14326 = vrcp.f32 %v3642_v36  ;;  %v3639_v1 = vpop.xlane.xlu0 %3638 }
 0x83d   :  { %14328 = vrcp.f32 %v3639_v1 }
 0x83e   :  { %v14323_v38 = vpop.eup %14322 }
 0x83f   :  { %v3660_v2 = vmul.f32 %v14323_v38, %v15406_v62 }
 0x840   :  { %v3645_v4 = vpop.xlane.xlu0 %3644 }
 0x841   :  { %14330 = vrcp.f32 %v3645_v4  ;;  %13580 = vmatmul.mubr.msk.f32.vlgmr.msra.gmra.mrb[42].mxu1 %vm230_vm2, %v3660_v2 }
 0x842   :  { %v14325_v56 = vpop.eup %14324  ;;  %13588 = vmatpush3.msra.mxu1 %v3821_v19  ;;  %13589 = vmatprep.mubr.msk.f32.mxu1 %vm14643_vm1, %v17213_v14 }
 0x843   :  { %13597 = vmatprep.subr.mxu1 %v17213_v14  ;;  %v3662_v35 = vmul.f32 %v14325_v56, %v15410_v6 }
 0x844   :  { %v3651_v41 = vpop.xlane.xlu0 %3650 }
 0x845   :  { %14332 = vrcp.f32 %v3651_v41  ;;  %13590 = vmatmul.mubr.msk.f32.vlgmr.msra.gmra.mrb[44].mxu1 %vm230_vm2, %v3662_v35 }
 0x846   :  { %v14327_v32 = vpop.eup %14326  ;;  %13598 = vmatpush3.msra.mxu1 %v3973_v7  ;;  %13599 = vmatprep.mubr.msk.f32.mxu1 %vm14643_vm1, %v17213_v14 }
 0x847   :  { %v14329_v62 = vpop.eup %14328  ;;  %13607 = vmatprep.subr.mxu1 %v17213_v14  ;;  %v3664_v19 = vmul.f32 %v14327_v32, %v15415_v28 }
 0x848   :  { %v3663_v45 = vmul.f32 %v14329_v62, %v15417_v50 }
 0x849   :  { %13600 = vmatmul.mubr.msk.f32.vlgmr.msra.gmra.mrb[46].mxu1 %vm230_vm2, %v3664_v19 }
 0x84a   :  { %13595 = vmatmul.mubr.msk.f32.vlgmr.msra.gmra.mrb[48].mxu0 %vm230_vm2, %v3663_v45  ;;  %13608 = vmatpush3.msra.mxu1 %v4125_v39  ;;  %v4433_v39 = vpop.permute.xlu0 %4432 }
 0x84b   :  { %v14331_v6 = vpop.eup %14330  ;;  %13603 = vmatpush3.msra.mxu0 %v4049_v18  ;;  %13604 = vmatprep.mubr.msk.f32.mxu0 %vm14643_vm1, %v17213_v14 }
 0x84c   :  { %13612 = vmatprep.subr.mxu0 %v17213_v14  ;;  %v3665_v7 = vmul.f32 %v14331_v6, %v15423_v54  ;;  %13609 = vmatprep.mubr.msk.f32.mxu1 %vm14643_vm1, %v17213_v14 }
 0x84d   :  { %13617 = vmatprep.subr.mxu1 %v17213_v14 }
 0x84e   :  { %13605 = vmatmul.mubr.msk.f32.vlgmr.msra.gmra.mrb[50].mxu0 %vm230_vm2, %v3665_v7 }
 0x84f   :  { %v14333_v28 = vpop.eup %14332  ;;  %13613 = vmatpush3.msra.mxu0 %v4201_v13  ;;  %13614 = vmatprep.mubr.msk.f32.mxu0 %vm14643_vm1, %v17213_v14  ;;  %v4591_v13 = vpop.permute.xlu0 %4590 }
 0x850   :  { %v3667_v50 = vmul.f32 %v14333_v28, %v15427_v48  ;;  %13622 = vmatprep.subr.mxu0 %v17213_v14 }
 0x852   :  { %13615 = vmatmul.mubr.msk.f32.vlgmr.msra.gmra.mrb[52].mxu0 %vm230_vm2, %v3667_v50 }
 0x853   :  { %13624 = vmatprep.mubr.msk.f32.mxu0 %vm14643_vm1, %v17213_v14  ;;  %v4589_v46 = vpop.permute.xlu0 %4588 }
 0x856   :  { %13623 = vmatpush3.xpose.msk.msra.mxu0 %vm230_vm2, %v4357_v55 }
 0x857   :  { %13632 = vmatprep.subr.mxu0 %v17213_v14 }
 0x859   :  { %13625 = vmatmul.mubr.msk.f32.vlgmr.msra.gmra.mrb[54].mxu0 %vm230_vm2, %v4355_v24 }
 0x85a   :  { %13633 = vmatpush3.xpose.msk.msra.mxu0 %vm230_vm2, %v4513_v12  ;;  %13634 = vmatprep.mubr.msk.f32.mxu0 %vm14643_vm1, %v17213_v14 }
 0x85b   :  { %13642 = vmatprep.subr.mxu0 %v17213_v14 }
 0x870   :  { %v3648_v54 = vpop.xlane.xlu1 %3647 }
 0x871   :  { %14334 = vrcp.f32 %v3648_v54 }
 0x874   :  { %v4511_v48 = vpop.permute.xlu1 %4510 }
 0x875   :  { %13635 = vmatmul.mubr.msk.f32.vlgmr.msra.gmra.mrb[56].mxu0 %vm230_vm2, %v4511_v48 }
 0x876   :  { %13644 = vmatprep.mubr.msk.f32.mxu0 %vm14643_vm1, %v17213_v14 }
 0x878   :  { %v4669_v0 = vpop.permute.xlu1 %4668 }
 0x879   :  { %13643 = vmatpush3.xpose.msk.msra.mxu0 %vm230_vm2, %v4669_v0 }
 0x87a   :  { %13652 = vmatprep.subr.mxu0 %v17213_v14 }
 0x87b   :  { %v14335_v18 = vpop.eup %14334 }
 0x87c   :  { %v4667_v55 = vpop.permute.xlu1 %4666  ;;  %v3666_v24 = vmul.f32 %v14335_v18, %v15442_v5 }
 0x87d   :  { %13645 = vmatmul.mubr.msk.f32.vlgmr.msra.gmra.mrb[58].mxu0 %vm230_vm2, %v4667_v55 }
 0x87e   :  { %13610 = vmatmul.mubr.msk.f32.vlgmr.msra.gmra.mrb[48].mxu1 %vm230_vm2, %v3666_v24  ;;  %13654 = vmatprep.mubr.msk.f32.mxu0 %vm14643_vm1, %v17213_v14 }
 0x87f   :  { %13618 = vmatpush3.xpose.msk.msra.mxu1 %vm230_vm2, %v15450_v21  ;;  %13619 = vmatprep.mubr.msk.f32.mxu1 %vm14643_vm1, %v17213_v14  ;;  %v4747_v21 = vpop.permute.xlu0 %4746 }
 0x880   :  { %v4825_v12 = vpop.permute.xlu1 %4824  ;;  %13627 = vmatprep.subr.mxu1 %v17213_v14 }
 0x881   :  { %13653 = vmatpush3.xpose.msk.msra.mxu0 %vm230_vm2, %v4825_v12 }
 0x882   :  { %13620 = vmatmul.mubr.msk.f32.vlgmr.msra.gmra.mrb[50].mxu1 %vm230_vm2, %v15454_v16  ;;  %13662 = vmatprep.subr.mxu0 %v17213_v14 }
 0x883   :  { %13628 = vmatpush3.xpose.msk.msra.mxu1 %vm230_vm2, %v15460_v40  ;;  %13629 = vmatprep.mubr.msk.f32.mxu1 %vm14643_vm1, %v17213_v14  ;;  %v4745_v16 = vpop.permute.xlu0 %4744 }
 0x884   :  { %v4823_v5 = vpop.permute.xlu1 %4822  ;;  %13637 = vmatprep.subr.mxu1 %v17213_v14 }
 0x885   :  { %13655 = vmatmul.mubr.msk.f32.vlgmr.msra.gmra.mrb[60].mxu0 %vm230_vm2, %v4823_v5 }
 0x886   :  { %13630 = vmatmul.mubr.msk.f32.vlgmr.msra.gmra.mrb[52].mxu1 %vm230_vm2, %v4433_v39  ;;  %13664 = vmatprep.mubr.msk.f32.mxu0 %vm14643_vm1, %v17213_v14 }
 0x887   :  { %13638 = vmatpush3.xpose.msk.msra.mxu1 %vm230_vm2, %v4591_v13  ;;  %13639 = vmatprep.mubr.msk.f32.mxu1 %vm14643_vm1, %v17213_v14 }
 0x888   :  { %13647 = vmatprep.subr.mxu1 %v17213_v14 }
 0x88a   :  { %13640 = vmatmul.mubr.msk.f32.vlgmr.msra.gmra.mrb[54].mxu1 %vm230_vm2, %v4589_v46 }
 0x88b   :  { %13648 = vmatpush3.xpose.msk.msra.mxu1 %vm230_vm2, %v4747_v21  ;;  %13649 = vmatprep.mubr.msk.f32.mxu1 %vm14643_vm1, %v17213_v14 }
 0x88c   :  { %13657 = vmatprep.subr.mxu1 %v17213_v14 }
 0x88e   :  { %13650 = vmatmul.mubr.msk.f32.vlgmr.msra.gmra.mrb[56].mxu1 %vm230_vm2, %v4745_v16 }
 0x88f   :  { %13659 = vmatprep.mubr.msk.f32.mxu1 %vm14643_vm1, %v17213_v14 }
 0x8eb   :  { %v15543_v40 = vpop.f32.mrb[46].mxu0 }
 0x8ec   :  { %v13586_v57 = vpop.f32.mrb[47].mxu0 }
 0x914   :  { %v15545_v36 = vpop.f32.mrb[42].mxu1 }
 0x915   :  { %v13581_v1 = vpop.f32.mrb[43].mxu1 }
 0x918   :  { %v15547_v38 = vpop.f32.mrb[44].mxu1 }
 0x919   :  { %v13591_v2 = vpop.f32.mrb[45].mxu1 }
 0x91c   :  { %v15549_v4 = vpop.f32.mrb[46].mxu1 }
 0x91d   :  { %v15551_v56 = vpop.f32.mrb[48].mxu0  ;;  %v13601_v35 = vpop.f32.mrb[47].mxu1 }
 0x91e   :  { %v13596_v41 = vpop.f32.mrb[49].mxu0 }
 0x921   :  { %v15553_v32 = vpop.f32.mrb[50].mxu0 }
 0x922   :  { %v13606_v62 = vpop.f32.mrb[51].mxu0 }
 0x925   :  { %v15555_v19 = vpop.f32.mrb[52].mxu0 }
 0x926   :  { %v13616_v45 = vpop.f32.mrb[53].mxu0 }
 0x92c   :  { %v4428_v6 = vpop.f32.mrb[54].mxu0 }
 0x92d   :  { %v4901_v7 = vmul.f32 0.35355338, %v4428_v6  ;;  %v13626_v28 = vpop.f32.mrb[55].mxu0 }
 0x92f   :  { %v4909_v50 = vadd.f32 %v14905_v42, %v4901_v7 }
 0x931   :  { %v4919_v54 = vsel %vm230_vm2, %v4909_v50, -inf }
 0x932   :  { %4920 = vmax.xlane.f32.xlu1 %v4919_v54 }
 0x948   :  { %v4584_v48 = vpop.f32.mrb[56].mxu0 }
 0x949   :  { %v13636_v39 = vpop.f32.mrb[57].mxu0  ;;  %v4903_v16 = vmul.f32 0.35355338, %v4584_v48 }
 0x94b   :  { %v4911_v62 = vadd.f32 %v14923_v63, %v4903_v16 }
 0x94d   :  { %v4925_v39 = vsel %vm230_vm2, %v4911_v62, -inf }
 0x950   :  { %v4740_v0 = vpop.f32.mrb[58].mxu0 }
 0x951   :  { %v15559_v18 = vpop.f32.mrb[48].mxu1  ;;  %v13646_v13 = vpop.f32.mrb[59].mxu0  ;;  %v4905_v6 = vmul.f32 0.35355338, %v4740_v0 }
 0x952   :  { %v13611_v55 = vpop.f32.mrb[49].mxu1 }
 0x953   :  { %v4913_v13 = vadd.f32 %v14921_v61, %v4905_v6 }
 0x955   :  { %v4350_v24 = vpop.f32.mrb[50].mxu1 }
 0x956   :  { %v4900_v12 = vmul.f32 0.35355338, %v4350_v24  ;;  %v13621_v46 = vpop.f32.mrb[51].mxu1 }
 0x957   :  { %v4931_v46 = vsel %vm230_vm2, %v4913_v13, -inf }
 0x958   :  { %v4908_v5 = vadd.f32 %v14907_v44, %v4900_v12  ;;  %v4896_v21 = vpop.f32.mrb[60].mxu0 }
 0x959   :  { %v4506_v57 = vpop.f32.mrb[52].mxu1  ;;  %v13656_v1 = vpop.f32.mrb[61].mxu0  ;;  %v4907_v55 = vmul.f32 0.35355338, %v4896_v21 }
 0x95a   :  { %v4902_v42 = vmul.f32 0.35355338, %v4506_v57  ;;  %v13631_v2 = vpop.f32.mrb[53].mxu1  ;;  %v4916_v35 = vsel %vm230_vm2, %v4908_v5, -inf }
 0x95b   :  { %4917 = vmax.xlane.f32.xlu0 %v4916_v35  ;;  %v4915_v0 = vadd.f32 %v14928_v9, %v4907_v55 }
 0x95c   :  { %v4910_v41 = vadd.f32 %v14909_v47, %v4902_v42 }
 0x95d   :  { %v4662_v45 = vpop.f32.mrb[54].mxu1  ;;  %v4937_v16 = vsel %vm230_vm2, %v4915_v0, -inf }
 0x95e   :  { %v4904_v7 = vmul.f32 0.35355338, %v4662_v45  ;;  %v13641_v28 = vpop.f32.mrb[55].mxu1  ;;  %v4922_v54 = vsel %vm230_vm2, %v4910_v41, -inf }
 0x95f   :  { %4923 = vmax.xlane.f32.xlu0 %v4922_v54 }
 0x960   :  { %v4912_v44 = vadd.f32 %v14919_v60, %v4904_v7 }
 0x961   :  { %v4818_v48 = vpop.f32.mrb[56].mxu1 }
 0x962   :  { %v4906_v24 = vmul.f32 0.35355338, %v4818_v48  ;;  %v13651_v12 = vpop.f32.mrb[57].mxu1  ;;  %v4928_v47 = vsel %vm230_vm2, %v4912_v44, -inf }
 0x963   :  { %4926 = vmax.xlane.f32.xlu0 %v4925_v39  ;;  %4929 = vmax.xlane.f32.xlu1 %v4928_v47 }
 0x964   :  { %v4914_v63 = vadd.f32 %v14926_v3, %v4906_v24 }
 0x966   :  { %v4934_v60 = vsel %vm230_vm2, %v4914_v63, -inf }
 0x967   :  { %4932 = vmax.xlane.f32.xlu0 %v4931_v46  ;;  %4935 = vmax.xlane.f32.xlu1 %v4934_v60 }
 0x96b   :  { %4938 = vmax.xlane.f32.xlu0 %v4937_v16 }
 0x978   :  { %5004 = vrot.lane.b32.xlu1 %v14807_v20, %s14654_s30 }
 0x97c   :  { %5156 = vrot.lane.b32.xlu1 %v14809_v22, %s14654_s30 }
 0x980   :  { %5232 = vrot.lane.b32.xlu1 %v14815_v25, %s14654_s30 }
 0x981   :  { %5080 = vrot.lane.b32.xlu0 %v14803_v17, %s14654_s30 }
 0x984   :  { %5384 = vrot.lane.b32.xlu1 %v14819_v27, %s14654_s30 }
 0x985   :  { %5308 = vrot.lane.b32.xlu0 %v14817_v26, %s14654_s30 }
 0x9bf   :  { %v4921_v61 = vpop.xlane.xlu1 %4920 }
 0x9c0   :  { %v4941_v3 = vsub.f32 %v4909_v50, %v4921_v61 }
 0x9c2   :  { %v4950_v9 = vmul.f32 1.442695, %v4941_v3 }
 0x9c4   :  { %14336 = vpow2.f32 %v4950_v9 }
 0x9ce   :  { %v15587_v20 = vpop.eup %14336 }
 0x9cf   :  { %v4967_v22 = vsel %vm230_vm2, %v15587_v20, 0.0 }
 0x9d0   :  { %4968 = vadd.xlane.f32.xlu0 %v4967_v22 }
 0x9e8   :  { %v4918_v25 = vpop.xlane.xlu0 %4917 }
 0x9e9   :  { %v4940_v21 = vsub.f32 %v4908_v5, %v4918_v25 }
 0x9eb   :  { %v4948_v57 = vmul.f32 1.442695, %v4940_v21 }
 0x9ec   :  { %v4924_v17 = vpop.xlane.xlu0 %4923 }
 0x9ed   :  { %14338 = vpow2.f32 %v4948_v57  ;;  %v4942_v1 = vsub.f32 %v4910_v41, %v4924_v17 }
 0x9ef   :  { %v4952_v27 = vmul.f32 1.442695, %v4942_v1 }
 0x9f0   :  { %v4930_v42 = vpop.xlane.xlu1 %4929  ;;  %v4927_v2 = vpop.xlane.xlu0 %4926 }
 0x9f1   :  { %14340 = vpow2.f32 %v4952_v27  ;;  %v4944_v26 = vsub.f32 %v4912_v44, %v4930_v42  ;;  %v4943_v50 = vsub.f32 %v4911_v62, %v4927_v2 }
 0x9f3   :  { %v4956_v35 = vmul.f32 1.442695, %v4944_v26  ;;  %v4954_v45 = vmul.f32 1.442695, %v4943_v50 }
 0x9f4   :  { %v4936_v6 = vpop.xlane.xlu1 %4935  ;;  %v4933_v7 = vpop.xlane.xlu0 %4932 }
 0x9f5   :  { %14342 = vpow2.f32 %v4956_v35  ;;  %v4946_v28 = vsub.f32 %v4914_v63, %v4936_v6  ;;  %v4945_v54 = vsub.f32 %v4913_v13, %v4933_v7 }
 0x9f6   :  { %14344 = vpow2.f32 %v4954_v45 }
 0x9f7   :  { %v15591_v48 = vpop.eup %14338  ;;  %v4960_v5 = vmul.f32 1.442695, %v4946_v28  ;;  %v4958_v39 = vmul.f32 1.442695, %v4945_v54  ;;  %v5734_v28 = vld [vmem:[%s17198_s4] sm:$0xff]  ;;  %v5735_v54 = vld [vmem:[%s17198_s4 + $0x8] sm:$0xff] }
 0x9f8   :  { %v5005_v55 = vpop.permute.xlu1 %5004  ;;  %v4939_v41 = vpop.xlane.xlu0 %4938  ;;  %v4964_v24 = vsel %vm230_vm2, %v15591_v48, 0.0 }
 0x9f9   :  { %14346 = vpow2.f32 %v4960_v5  ;;  %v4947_v44 = vsub.f32 %v4915_v0, %v4939_v41  ;;  %13658 = vmatpush3.msra.mxu1 %v5005_v55  ;;  %4965 = vadd.xlane.f32.xlu1 %v4964_v24  ;;  %v14154_v5 = vpack.c.bf16 %v5735_v54, %v5734_v28 }
 0x9fa   :  { %14348 = vpow2.f32 %v4958_v39  ;;  %13667 = vmatprep.subr.mxu1 %v17213_v14  ;;  %v5737_v39 = vld [vmem:[%s17198_s4 + $0x18] sm:$0xff] }
 0x9fb   :  { %v15596_v62 = vpop.eup %14340  ;;  %v4962_v13 = vmul.f32 1.442695, %v4947_v44 }
 0x9fc   :  { %v5081_v12 = vpop.permute.xlu0 %5080  ;;  %v4970_v47 = vsel %vm230_vm2, %v15596_v62, 0.0 }
 0x9fd   :  { %14350 = vpow2.f32 %v4962_v13  ;;  %4971 = vadd.xlane.f32.xlu1 %v4970_v47  ;;  %13663 = vmatpush3.msra.mxu0 %v5081_v12 }
 0x9fe   :  { %13672 = vmatprep.subr.mxu0 %v17213_v14 }
 0x9ff   :  { %v15601_v63 = vpop.eup %14342 }
 0xa00   :  { %v15603_v0 = vpop.eup %14344  ;;  %v4976_v46 = vsel %vm230_vm2, %v15601_v63, 0.0 }
 0xa01   :  { %4977 = vadd.xlane.f32.xlu1 %v4976_v46  ;;  %v4973_v60 = vsel %vm230_vm2, %v15603_v0, 0.0 }
 0xa02   :  { %4974 = vadd.xlane.f32.xlu0 %v4973_v60 }
 0xa03   :  { %v15609_v16 = vpop.eup %14346 }
 0xa04   :  { %v15611_v61 = vpop.eup %14348  ;;  %v4982_v3 = vsel %vm230_vm2, %v15609_v16, 0.0 }
 0xa05   :  { %4983 = vadd.xlane.f32.xlu1 %v4982_v3  ;;  %v4979_v9 = vsel %vm230_vm2, %v15611_v61, 0.0 }
 0xa06   :  { %4980 = vadd.xlane.f32.xlu0 %v4979_v9 }
 0xa07   :  { %v15617_v22 = vpop.eup %14350 }
 0xa08   :  { %v4985_v25 = vsel %vm230_vm2, %v15617_v22, 0.0 }
 0xa0a   :  { %4986 = vadd.xlane.f32.xlu0 %v4985_v25 }
 0xa16   :  { %5536 = vrot.lane.b32.xlu1 %v14827_v31, %s14654_s30 }
 0xa1a   :  { %5622 = vrot.lane.b32.xlu1 %v15334_v37, %s17207_s22  ;;  %v5157_v37 = vpop.permute.xlu1 %5156 }
 0xa1e   :  { %5654 = vrot.lane.b32.xlu1 %v15543_v40, %s17211_s13 }
 0xa20   :  { %5460 = vrot.lane.b32.xlu0 %v14825_v30, %s14654_s30  ;;  %v5309_v30 = vpop.permute.xlu0 %5308 }
 0xa22   :  { %5626 = vrot.lane.b32.xlu1 %v15342_v58, %s17207_s22  ;;  %v5233_v58 = vpop.permute.xlu1 %5232 }
 0xa24   :  { %5620 = vrot.lane.b32.xlu0 %v15336_v59, %s17207_s22 }
 0xa26   :  { %5658 = vrot.lane.b32.xlu1 %v15551_v56, %s17211_s13 }
 0xa28   :  { %5652 = vrot.lane.b32.xlu0 %v15545_v36, %s17211_s13 }
 0xa2a   :  { %5630 = vrot.lane.b32.xlu1 %v15344_v15, %s17207_s22 }
 0xa2c   :  { %5624 = vrot.lane.b32.xlu0 %v15338_v8, %s17207_s22 }
 0xa2e   :  { %5662 = vrot.lane.b32.xlu1 %v15553_v32, %s17211_s13 }
 0xa30   :  { %5656 = vrot.lane.b32.xlu0 %v15547_v38, %s17211_s13 }
 0xa32   :  { %5634 = vrot.lane.b32.xlu1 %v15346_v43, %s17207_s22 }
 0xa34   :  { %5628 = vrot.lane.b32.xlu0 %v15340_v11, %s17207_s22  ;;  %v5385_v11 = vpop.permute.xlu1 %5384 }
 0xa38   :  { %5660 = vrot.lane.b32.xlu0 %v15549_v4, %s17211_s13 }
 0xa3c   :  { %5632 = vrot.lane.b32.xlu0 %v15353_v52, %s17207_s22 }
 0xa5d   :  { %v4969_v31 = vpop.xlane.xlu0 %4968 }
 0xa5e   :  { %14352 = vrcp.f32 %v4969_v31 }
 0xa68   :  { %v14353_v59 = vpop.eup %14352 }
 0xa69   :  { %v4997_v8 = vmul.f32 %v14353_v59, %v15587_v20 }
 0xa6b   :  { %13665 = vmatmul.mubr.msk.f32.vlgmr.msra.gmra.mrb[62].mxu0 %vm230_vm2, %v4997_v8 }
 0xa6c   :  { %13673 = vmatpush3.msra.mxu0 %v5233_v58  ;;  %13674 = vmatprep.mubr.msk.f32.mxu0 %vm14643_vm1, %v17213_v14 }
 0xa6d   :  { %13682 = vmatprep.subr.mxu0 %v17213_v14 }
 0xa86   :  { %v4966_v15 = vpop.xlane.xlu1 %4965 }
 0xa87   :  { %14354 = vrcp.f32 %v4966_v15 }
 0xa8a   :  { %v4972_v43 = vpop.xlane.xlu1 %4971 }
 0xa8b   :  { %14356 = vrcp.f32 %v4972_v43 }
 0xa8e   :  { %v4978_v52 = vpop.xlane.xlu1 %4977 }
 0xa8f   :  { %14358 = vrcp.f32 %v4978_v52  ;;  %v4975_v40 = vpop.xlane.xlu0 %4974 }
 0xa90   :  { %14360 = vrcp.f32 %v4975_v40 }
 0xa91   :  { %v14355_v36 = vpop.eup %14354 }
 0xa92   :  { %v4984_v38 = vpop.xlane.xlu1 %4983  ;;  %v4996_v4 = vmul.f32 %v14355_v36, %v15591_v48  ;;  %v5736_v48 = vld [vmem:[%s17198_s4 + $0x10] sm:$0xff] }
 0xa93   :  { %14362 = vrcp.f32 %v4984_v38  ;;  %v4981_v56 = vpop.xlane.xlu0 %4980  ;;  %v14158_v55 = vpack.c.bf16 %v5737_v39, %v5736_v48 }
 0xa94   :  { %14364 = vrcp.f32 %v4981_v56  ;;  %13660 = vmatmul.mubr.msk.f32.vlgmr.msra.gmra.mrb[58].mxu1 %vm230_vm2, %v4996_v4 }
 0xa95   :  { %v14357_v32 = vpop.eup %14356  ;;  %13668 = vmatpush3.msra.mxu1 %v5157_v37  ;;  %13669 = vmatprep.mubr.msk.f32.mxu1 %vm14643_vm1, %v17213_v14 }
 0xa96   :  { %13677 = vmatprep.subr.mxu1 %v17213_v14  ;;  %v4998_v20 = vmul.f32 %v14357_v32, %v15596_v62  ;;  %v5537_v45 = vpop.permute.xlu1 %5536 }
 0xa97   :  { %v4987_v21 = vpop.xlane.xlu0 %4986 }
 0xa98   :  { %14366 = vrcp.f32 %v4987_v21  ;;  %13670 = vmatmul.mubr.msk.f32.vlgmr.msra.gmra.mrb[60].mxu1 %vm230_vm2, %v4998_v20 }
 0xa99   :  { %v14359_v57 = vpop.eup %14358  ;;  %13678 = vmatpush3.msra.mxu1 %v5309_v30  ;;  %13679 = vmatprep.mubr.msk.f32.mxu1 %vm14643_vm1, %v17213_v14 }
 0xa9a   :  { %v14361_v17 = vpop.eup %14360  ;;  %13687 = vmatprep.subr.mxu1 %v17213_v14  ;;  %v5000_v1 = vmul.f32 %v14359_v57, %v15601_v63  ;;  %v5623_v25 = vpop.permute.xlu1 %5622 }
 0xa9b   :  { %v5461_v27 = vpop.permute.xlu0 %5460  ;;  %v4999_v42 = vmul.f32 %v14361_v17, %v15603_v0  ;;  %v5709_v4 = vsel %vm230_vm2, %v15121_v23, %v5623_v25  ;;  %v14534_v25 = vld [vmem:[%s17194_s0 + $0x10] sm:$0xff] }
 0xa9c   :  { %13680 = vmatmul.mubr.msk.f32.vlgmr.msra.gmra.mrb[62].mxu1 %vm230_vm2, %v5000_v1 }
 0xa9d   :  { %v14363_v2 = vpop.eup %14362  ;;  %13675 = vmatmul.mubr.msk.f32.vlgmr.msra.gmra.mrb[64].mxu0 %vm230_vm2, %v4999_v42  ;;  %13688 = vmatpush3.msra.mxu1 %v5461_v27 }
 0xa9e   :  { %v14365_v26 = vpop.eup %14364  ;;  %13683 = vmatpush3.msra.mxu0 %v5385_v11  ;;  %13684 = vmatprep.mubr.msk.f32.mxu0 %vm14643_vm1, %v17213_v14  ;;  %v5002_v50 = vmul.f32 %v14363_v2, %v15609_v16  ;;  %v5655_v31 = vpop.permute.xlu1 %5654 }
 0xa9f   :  { %13689 = vmatprep.mubr.msk.f32.mxu1 %vm14643_vm1, %v17213_v14  ;;  %13692 = vmatprep.subr.mxu0 %v17213_v14  ;;  %v5001_v35 = vmul.f32 %v14365_v26, %v15611_v61  ;;  %v5621_v30 = vpop.permute.xlu0 %5620  ;;  %v5718_v20 = vsel %vm5716_vm3, %v5709_v4, %v5655_v31 }
 0xaa0   :  { %13690 = vmatmul.mubr.msk.f32.vlgmr.msra.gmra.mrb[64].mxu1 %vm230_vm2, %v5002_v50  ;;  %14155 = vmatprep.subr.bf16.mxu1 %v14154_v5 }
 0xaa1   :  { %13685 = vmatmul.mubr.msk.f32.vlgmr.msra.gmra.mrb[66].mxu0 %vm230_vm2, %v5001_v35  ;;  %14157 = vmatpush3.bf16.msra.mxu1 %v14154_v5 }
 0xaa2   :  { %v14367_v6 = vpop.eup %14366  ;;  %13693 = vmatpush3.msra.mxu0 %v5537_v45  ;;  %13694 = vmatprep.mubr.msk.f32.mxu0 %vm14643_vm1, %v17213_v14  ;;  %v5627_v59 = vpop.permute.xlu1 %5626 }
 0xaa3   :  { %v5003_v7 = vmul.f32 %v14367_v6, %v15617_v22  ;;  %14159 = vmatprep.subr.bf16.mxu1 %v14158_v55  ;;  %v5653_v37 = vpop.permute.xlu0 %5652  ;;  %v5711_v42 = vsel %vm230_vm2, %v15127_v10, %v5627_v59  ;;  %v14535_v59 = vld [vmem:[%s17194_s0 + $0x18] sm:$0xff] }
 0xaa5   :  { %13695 = vmatmul.mubr.msk.f32.vlgmr.msra.gmra.mrb[68].mxu0 %vm230_vm2, %v5003_v7  ;;  %14161 = vmatpush3.bf16.msra.mxu1 %v14158_v55 }
 0xaa7   :  { %v5625_v8 = vpop.permute.xlu0 %5624 }
 0xaa8   :  { %v5710_v17 = vsel %vm230_vm2, %v15125_v34, %v5625_v8 }
 0xaab   :  { %v5657_v58 = vpop.permute.xlu0 %5656 }
 0xaaf   :  { %v5629_v15 = vpop.permute.xlu0 %5628 }
 0xab0   :  { %v5712_v27 = vsel %vm230_vm2, %v15131_v49, %v5629_v15  ;;  %v14536_v15 = vld [vmem:[%s17194_s0 + $0x20] sm:$0xff] }
 0xab3   :  { %v5661_v52 = vpop.permute.xlu0 %5660 }
 0xab4   :  { %v5721_v2 = vsel %vm5716_vm3, %v5712_v27, %v5661_v52  ;;  %v14537_v52 = vld [vmem:[%s17194_s0 + $0x28] sm:$0xff] }
 0xab7   :  { %v5633_v36 = vpop.permute.xlu0 %5632 }
 0xab8   :  { %v5714_v54 = vsel %vm230_vm2, %v15133_v51, %v5633_v36  ;;  %v12846_v51 = vld [vmem:[%s17199_s5] ss:$0 sm:$0xff] }
 0xb3e   :  { %v5152_v41 = vpop.f32.mrb[62].mxu0 }
 0xb3f   :  { %5686 = vrot.lane.b32.xlu1 %v5152_v41, %s17209_s14  ;;  %v13666_v24 = vpop.f32.mrb[63].mxu0 }
 0xb67   :  { %v5076_v44 = vpop.f32.mrb[58].mxu1 }
 0xb68   :  { %v13661_v62 = vpop.f32.mrb[59].mxu1  ;;  %5684 = vrot.lane.b32.xlu0 %v5076_v44, %s17209_s14 }
 0xb6b   :  { %v5228_v13 = vpop.f32.mrb[60].mxu1 }
 0xb6c   :  { %v13671_v12 = vpop.f32.mrb[61].mxu1  ;;  %5688 = vrot.lane.b32.xlu0 %v5228_v13, %s17209_s14 }
 0xb6f   :  { %v5380_v47 = vpop.f32.mrb[62].mxu1 }
 0xb70   :  { %v5304_v63 = vpop.f32.mrb[64].mxu0  ;;  %5692 = vrot.lane.b32.xlu0 %v5380_v47, %s17209_s14  ;;  %v13681_v0 = vpop.f32.mrb[63].mxu1 }
 0xb71   :  { %5690 = vrot.lane.b32.xlu1 %v5304_v63, %s17209_s14  ;;  %v13676_v46 = vpop.f32.mrb[65].mxu0  ;;  %v14532_v63 = vld [vmem:[%s17194_s0 + $0x8] sm:$0xff]  ;;  %v14533_v0 = vld [vmem:[%s17194_s0] sm:$0xff] }
 0xb73   :  { %v5532_v60 = vpop.f32.mrb[64].mxu1 }
 0xb74   :  { %v5456_v16 = vpop.f32.mrb[66].mxu0  ;;  %5664 = vrot.lane.b32.xlu0 %v15559_v18, %s17211_s13  ;;  %v13691_v61 = vpop.f32.mrb[65].mxu1 }
 0xb75   :  { %5694 = vrot.lane.b32.xlu1 %v5456_v16, %s17209_s14  ;;  %v13686_v3 = vpop.f32.mrb[67].mxu0  ;;  %v5659_v18 = vpop.permute.xlu1 %5658 }
 0xb76   :  { %v5720_v34 = vsel %vm5716_vm3, %v5711_v42, %v5659_v18 }
 0xb78   :  { %v5608_v9 = vpop.f32.mrb[68].mxu0  ;;  %5696 = vrot.lane.b32.xlu0 %v5532_v60, %s17209_s14 }
 0xb79   :  { %5666 = vrot.lane.b32.xlu1 %v15555_v19, %s17211_s13  ;;  %v13696_v22 = vpop.f32.mrb[69].mxu0  ;;  %v5631_v11 = vpop.permute.xlu1 %5630  ;;  %v5708_v19 = vsel %vm230_vm2, %v15123_v29, %v5621_v30  ;;  %v5719_v29 = vsel %vm5716_vm3, %v5710_v17, %v5657_v58  ;;  %v14539_v17 = vld [vmem:[%s17194_s0 + $0x30] sm:$0xff] }
 0xb7a   :  { %v5717_v56 = vsel %vm5716_vm3, %v5708_v19, %v5653_v37  ;;  %v5713_v6 = vsel %vm230_vm2, %v15129_v33, %v5631_v11 }
 0xb7d   :  { %5698 = vrot.lane.b32.xlu1 %v5608_v9, %s17209_s14  ;;  %v5663_v43 = vpop.permute.xlu1 %5662 }
 0xb7e   :  { %v5722_v10 = vsel %vm5716_vm3, %v5713_v6, %v5663_v43 }
 0xb81   :  { %v5635_v40 = vpop.permute.xlu1 %5634 }
 0xb82   :  { %v5715_v33 = vsel %vm230_vm2, %v15135_v53, %v5635_v40 }
 0xbb1   :  { %v5687_v38 = vpop.permute.xlu1 %5686 }
 0xbb2   :  { %v5727_v57 = vsel %vm5725_vm4, %v5718_v20, %v5687_v38 }
 0xbda   :  { %v5685_v32 = vpop.permute.xlu0 %5684 }
 0xbdb   :  { %v5726_v21 = vsel %vm5725_vm4, %v5717_v56, %v5685_v32 }
 0xbdc   :  { %13705 = vmatprep.mubr.msk.f32.mxu1 %vm97_vm0, %v5726_v21  ;;  %v14538_v21 = vld [vmem:[%s17194_s0 + $0x38] sm:$0xff] }
 0xbdd   :  { %13706 = vmatmul.mubr.msk.f32.vlgmr.msra.gmra.mrb[66].mxu1 %vm97_vm0, %v5727_v57 }
 0xbde   :  { %v5689_v1 = vpop.permute.xlu0 %5688 }
 0xbdf   :  { %v5728_v23 = vsel %vm5725_vm4, %v5719_v29, %v5689_v1 }
 0xbe0   :  { %13708 = vmatprep.mubr.msk.f32.mxu1 %vm97_vm0, %v5728_v23 }
 0xbe2   :  { %v5693_v26 = vpop.permute.xlu0 %5692 }
 0xbe3   :  { %v5691_v50 = vpop.permute.xlu1 %5690  ;;  %v5730_v35 = vsel %vm5725_vm4, %v5721_v2, %v5693_v26 }
 0xbe4   :  { %v5729_v45 = vsel %vm5725_vm4, %v5720_v34, %v5691_v50 }
 0xbe5   :  { %13709 = vmatmul.mubr.msk.f32.gmra.mrb[68].mxu1 %vm97_vm0, %v5729_v45 }
 0xbe6   :  { %13711 = vmatprep.mubr.msk.f32.mxu1 %vm97_vm0, %v5730_v35  ;;  %v5665_v49 = vpop.permute.xlu0 %5664 }
 0xbe7   :  { %v5695_v7 = vpop.permute.xlu1 %5694  ;;  %v5723_v48 = vsel %vm5716_vm3, %v5714_v54, %v5665_v49 }
 0xbe8   :  { %v5731_v28 = vsel %vm5725_vm4, %v5722_v10, %v5695_v7 }
 0xbe9   :  { %13712 = vmatmul.mubr.msk.f32.gmra.mrb[70].mxu1 %vm97_vm0, %v5731_v28 }
 0xbea   :  { %v5697_v5 = vpop.permute.xlu0 %5696 }
 0xbeb   :  { %v5667_v39 = vpop.permute.xlu1 %5666  ;;  %v5732_v55 = vsel %vm5725_vm4, %v5723_v48, %v5697_v5 }
 0xbec   :  { %13714 = vmatprep.mubr.msk.f32.mxu1 %vm97_vm0, %v5732_v55  ;;  %v5724_v41 = vsel %vm5716_vm3, %v5715_v33, %v5667_v39 }
 0xbef   :  { %v5699_v24 = vpop.permute.xlu1 %5698 }
 0xbf0   :  { %v5733_v44 = vsel %vm5725_vm4, %v5724_v41, %v5699_v24 }
 0xbf1   :  { %13715 = vmatmul.mubr.msk.f32.gmra.mrb[72].mxu1 %vm97_vm0, %v5733_v44 }
 0xcb0   :  { %v13707_v62 = vpop.f32.mrb[66].mxu1 }
 0xcb1   :  { %v5841_v13 = vadd.f32 %v13707_v62, %v12846_v51  ;;  %v5835_v12 = vpop.f32.mrb[67].mxu1 }
 0xcb2   :  { %v5836_v47 = vadd.f32 %v12846_v51, %v5835_v12 }
 0xcb3   :  { %v5875_v53 = vadd.f32 %v14532_v63, %v5841_v13 }
 0xcb4   :  { %v5874_v46 = vadd.f32 %v14533_v0, %v5836_v47 }
 0xcb5   :  { %v5887_v60 = vsel %vm97_vm0, %v5875_v53, 0.0 }
 0xcb6   :  { %5888 = vadd.xlane.f32.xlu1 %v5887_v60  ;;  %v5884_v16 = vsel %vm97_vm0, %v5874_v46, 0.0 }
 0xcb7   :  { %5885 = vadd.xlane.f32.xlu0 %v5884_v16 }
 0xcb8   :  { %v13710_v61 = vpop.f32.mrb[68].mxu1 }
 0xcb9   :  { %v5845_v3 = vpop.f32.mrb[69].mxu1  ;;  %v5851_v9 = vadd.f32 %v13710_v61, %v12846_v51 }
 0xcba   :  { %v5846_v22 = vadd.f32 %v12846_v51, %v5845_v3 }
 0xcbb   :  { %v5877_v8 = vadd.f32 %v14535_v59, %v5851_v9  ;;  %v6018_v59 = vld [vmem:[#allocation5 + $0x8] sm:$0xff] }
 0xcbc   :  { %v5876_v30 = vadd.f32 %v14534_v25, %v5846_v22  ;;  %v13713_v31 = vpop.f32.mrb[70].mxu1 }
 0xcbd   :  { %v5855_v37 = vpop.f32.mrb[71].mxu1  ;;  %v5861_v18 = vadd.f32 %v13713_v31, %v12846_v51  ;;  %v5893_v36 = vsel %vm97_vm0, %v5877_v8, 0.0 }
 0xcbe   :  { %v5856_v58 = vadd.f32 %v12846_v51, %v5855_v37  ;;  %v5890_v11 = vsel %vm97_vm0, %v5876_v30, 0.0  ;;  %v6017_v37 = vld [vmem:[#allocation5] sm:$0xff] }
 0xcbf   :  { %5891 = vadd.xlane.f32.xlu0 %v5890_v11  ;;  %v5879_v40 = vadd.f32 %v14537_v52, %v5861_v18  ;;  %v6019_v18 = vld [vmem:[#allocation5 + $0x10] sm:$0xff]  ;;  %v6167_v52 = vld [vmem:[%s17202_s8 + $0x10] sm:$0xff] }
 0xcc0   :  { %v5878_v43 = vadd.f32 %v14536_v15, %v5856_v58  ;;  %v6020_v58 = vld [vmem:[#allocation5 + $0x18] sm:$0xff] }
 0xcc1   :  { %v5899_v20 = vsel %vm97_vm0, %v5879_v40, 0.0  ;;  %v14166_v11 = vpack.c.bf16 %v6020_v58, %v6019_v18  ;;  %v6165_v15 = vld [vmem:[%s17202_s8] sm:$0xff] }
 0xcc2   :  { %v5896_v19 = vsel %vm97_vm0, %v5878_v43, 0.0 }
 0xcc3   :  { %5894 = vadd.xlane.f32.xlu0 %v5893_v36  ;;  %5897 = vadd.xlane.f32.xlu1 %v5896_v19  ;;  %v6168_v36 = vld [vmem:[%s17202_s8 + $0x18] sm:$0xff] }
 0xcc4   :  { %v13716_v38 = vpop.f32.mrb[72].mxu1  ;;  %v14174_v19 = vpack.c.bf16 %v6168_v36, %v6167_v52 }
 0xcc5   :  { %v5871_v4 = vadd.f32 %v13716_v38, %v12846_v51  ;;  %v5865_v56 = vpop.f32.mrb[73].mxu1  ;;  %v6169_v38 = vld [vmem:[%s17202_s8 + $0x20] sm:$0xff] }
 0xcc6   :  { %v5866_v32 = vadd.f32 %v12846_v51, %v5865_v56 }
 0xcc7   :  { %v5881_v57 = vadd.f32 %v14538_v21, %v5871_v4  ;;  %5900 = vadd.xlane.f32.xlu0 %v5899_v20  ;;  %v6170_v4 = vld [vmem:[%s17202_s8 + $0x28] sm:$0xff] }
 0xcc8   :  { %v5880_v29 = vadd.f32 %v14539_v17, %v5866_v32  ;;  %v14178_v56 = vpack.c.bf16 %v6170_v4, %v6169_v38  ;;  %v12857_v4 = vld [vmem:[%s17201_s7] ss:$0 sm:$0xff] }
 0xcc9   :  { %v5905_v1 = vsel %vm97_vm0, %v5881_v57, 0.0 }
 0xcca   :  { %v5902_v23 = vsel %vm97_vm0, %v5880_v29, 0.0 }
 0xccb   :  { %5906 = vadd.xlane.f32.xlu0 %v5905_v1  ;;  %5903 = vadd.xlane.f32.xlu1 %v5902_v23 }
 0xd43   :  { %v5889_v27 = vpop.xlane.xlu1 %5888 }
 0xd44   :  { %v5910_v42 = vmul.f32 0.03125, %v5889_v27  ;;  %v5886_v2 = vpop.xlane.xlu0 %5885 }
 0xd45   :  { %v5909_v26 = vmul.f32 0.03125, %v5886_v2 }
 0xd46   :  { %v15784_v34 = vsub.f32 %v5875_v53, %v5910_v42 }
 0xd47   :  { %v15786_v50 = vsub.f32 %v5874_v46, %v5909_v26 }
 0xd48   :  { %v5926_v35 = vmul.f32 %v15784_v34, %v15784_v34 }
 0xd49   :  { %v5925_v45 = vmul.f32 %v15786_v50, %v15786_v50 }
 0xd4a   :  { %v5936_v6 = vsel %vm97_vm0, %v5926_v35, 0.0 }
 0xd4b   :  { %5937 = vadd.xlane.f32.xlu0 %v5936_v6  ;;  %v5933_v49 = vsel %vm97_vm0, %v5925_v45, 0.0  ;;  %v12855_v6 = vld [vmem:[%s17204_s10] ss:$0 sm:$0xff] }
 0xd4c   :  { %v5892_v10 = vpop.xlane.xlu0 %5891  ;;  %5934 = vadd.xlane.f32.xlu1 %v5933_v49 }
 0xd4d   :  { %v5911_v7 = vmul.f32 0.03125, %v5892_v10 }
 0xd4f   :  { %v15794_v28 = vsub.f32 %v5876_v30, %v5911_v7 }
 0xd50   :  { %v5898_v54 = vpop.xlane.xlu1 %5897  ;;  %v5895_v48 = vpop.xlane.xlu0 %5894 }
 0xd51   :  { %v5913_v5 = vmul.f32 0.03125, %v5898_v54  ;;  %v5912_v39 = vmul.f32 0.03125, %v5895_v48  ;;  %v5927_v55 = vmul.f32 %v15794_v28, %v15794_v28 }
 0xd53   :  { %v15798_v33 = vsub.f32 %v5878_v43, %v5913_v5  ;;  %v15800_v41 = vsub.f32 %v5877_v8, %v5912_v39  ;;  %v5939_v24 = vsel %vm97_vm0, %v5927_v55, 0.0  ;;  %v14162_v8 = vpack.c.bf16 %v6018_v59, %v6017_v37  ;;  %v6166_v43 = vld [vmem:[%s17202_s8 + $0x8] sm:$0xff]  ;;  %v12856_v55 = vld [vmem:[%s17205_s11] ss:$0 sm:$0xff] }
 0xd54   :  { %5940 = vadd.xlane.f32.xlu1 %v5939_v24  ;;  %v5901_v44 = vpop.xlane.xlu0 %5900 }
 0xd55   :  { %v5914_v51 = vmul.f32 0.03125, %v5901_v44  ;;  %v5929_v62 = vmul.f32 %v15798_v33, %v15798_v33  ;;  %v5928_v13 = vmul.f32 %v15800_v41, %v15800_v41  ;;  %14163 = vmatprep.subr.bf16.mxu0 %v14162_v8 }
 0xd56   :  { %14165 = vmatpush3.bf16.msra.mxu0 %v14162_v8 }
 0xd57   :  { %v15807_v12 = vsub.f32 %v5879_v40, %v5914_v51  ;;  %v5945_v47 = vsel %vm97_vm0, %v5929_v62, 0.0  ;;  %v5942_v63 = vsel %vm97_vm0, %v5928_v13, 0.0  ;;  %14167 = vmatprep.subr.bf16.mxu0 %v14166_v11  ;;  %v14170_v40 = vpack.c.bf16 %v6166_v43, %v6165_v15 }
 0xd58   :  { %v5904_v53 = vpop.xlane.xlu1 %5903  ;;  %5946 = vadd.xlane.f32.xlu1 %v5945_v47  ;;  %5943 = vadd.xlane.f32.xlu0 %v5942_v63  ;;  %v5907_v0 = vpop.xlane.xlu0 %5906 }
 0xd59   :  { %v5915_v46 = vmul.f32 0.03125, %v5904_v53  ;;  %v5916_v60 = vmul.f32 0.03125, %v5907_v0  ;;  %v5930_v16 = vmul.f32 %v15807_v12, %v15807_v12  ;;  %14171 = vmatprep.subr.bf16.mxu1 %v14170_v40 }
 0xd5a   :  { %14169 = vmatpush3.bf16.msra.mxu0 %v14166_v11  ;;  %14173 = vmatpush3.bf16.msra.mxu1 %v14170_v40 }
 0xd5b   :  { %v15813_v61 = vsub.f32 %v5880_v29, %v5915_v46  ;;  %v15815_v3 = vsub.f32 %v5881_v57, %v5916_v60  ;;  %v5948_v9 = vsel %vm97_vm0, %v5930_v16, 0.0  ;;  %14175 = vmatprep.subr.bf16.mxu1 %v14174_v19 }
 0xd5c   :  { %5949 = vadd.xlane.f32.xlu0 %v5948_v9 }
 0xd5d   :  { %v5931_v22 = vmul.f32 %v15813_v61, %v15813_v61  ;;  %v5932_v25 = vmul.f32 %v15815_v3, %v15815_v3 }
 0xd5e   :  { %14177 = vmatpush3.bf16.msra.mxu1 %v14174_v19 }
 0xd5f   :  { %v5951_v30 = vsel %vm97_vm0, %v5931_v22, 0.0  ;;  %v5954_v31 = vsel %vm97_vm0, %v5932_v25, 0.0  ;;  %14179 = vmatprep.subr.bf16.mxu1 %v14178_v56 }
 0xd60   :  { %5952 = vadd.xlane.f32.xlu1 %v5951_v30  ;;  %5955 = vadd.xlane.f32.xlu0 %v5954_v31 }
 0xd62   :  { %14181 = vmatpush3.bf16.msra.mxu1 %v14178_v56 }
 0xdd8   :  { %v5938_v32 = vpop.xlane.xlu0 %5937 }
 0xdd9   :  { %v5958_v20 = vmul.f32 0.03125, %v5938_v32  ;;  %v5935_v21 = vpop.xlane.xlu1 %5934 }
 0xdda   :  { %v5957_v57 = vmul.f32 0.03125, %v5935_v21 }
 0xddb   :  { %v5966_v17 = vadd.f32 1e-08, %v5958_v20 }
 0xddc   :  { %v5965_v29 = vadd.f32 1e-08, %v5957_v57 }
 0xddd   :  { %14368 = vrsqrt.f32 %v5966_v17 }
 0xdde   :  { %14370 = vrsqrt.f32 %v5965_v29 }
 0xde1   :  { %v5941_v1 = vpop.xlane.xlu1 %5940 }
 0xde2   :  { %v5959_v23 = vmul.f32 0.03125, %v5941_v1 }
 0xde4   :  { %v5967_v27 = vadd.f32 1e-08, %v5959_v23 }
 0xde5   :  { %v5947_v42 = vpop.xlane.xlu1 %5946  ;;  %v5944_v2 = vpop.xlane.xlu0 %5943 }
 0xde6   :  { %14372 = vrsqrt.f32 %v5967_v27  ;;  %v5961_v26 = vmul.f32 0.03125, %v5947_v42  ;;  %v5960_v35 = vmul.f32 0.03125, %v5944_v2 }
 0xde7   :  { %v14369_v45 = vpop.eup %14368 }
 0xde8   :  { %v14371_v49 = vpop.eup %14370  ;;  %v5982_v10 = vmul.f32 %v14369_v45, %v15784_v34  ;;  %v5969_v7 = vadd.f32 1e-08, %v5961_v26  ;;  %v5968_v54 = vadd.f32 1e-08, %v5960_v35 }
 0xde9   :  { %v5950_v48 = vpop.xlane.xlu0 %5949  ;;  %v5981_v5 = vmul.f32 %v14371_v49, %v15786_v50 }
 0xdea   :  { %14374 = vrsqrt.f32 %v5969_v7  ;;  %v5962_v39 = vmul.f32 0.03125, %v5950_v48  ;;  %v5996_v24 = vmul.f32 %v12855_v6, %v5982_v10 }
 0xdeb   :  { %14376 = vrsqrt.f32 %v5968_v54  ;;  %v5995_v44 = vmul.f32 %v12855_v6, %v5981_v5 }
 0xdec   :  { %v5970_v51 = vadd.f32 1e-08, %v5962_v39  ;;  %v15852_v53 = vadd.f32 %v12856_v55, %v5996_v24  ;;  %v12866_v24 = vld [vmem:[%s17203_s9] ss:$0 sm:$0xff] }
 0xded   :  { %v5953_v62 = vpop.xlane.xlu1 %5952  ;;  %v5956_v13 = vpop.xlane.xlu0 %5955  ;;  %v15850_v47 = vadd.f32 %v12856_v55, %v5995_v44 }
 0xdee   :  { %14378 = vrsqrt.f32 %v5970_v51  ;;  %v5963_v34 = vmul.f32 0.03125, %v5953_v62  ;;  %v5964_v63 = vmul.f32 0.03125, %v5956_v13 }
 0xdef   :  { %13725 = vmatprep.mubr.msk.f32.mxu0 %vm97_vm0, %v15850_v47 }
 0xdf0   :  { %v14373_v50 = vpop.eup %14372  ;;  %v5971_v0 = vadd.f32 1e-08, %v5963_v34  ;;  %v5972_v46 = vadd.f32 1e-08, %v5964_v63  ;;  %13726 = vmatmul.mubr.msk.f32.vlgmr.msra.gmra.mrb[70].mxu0 %vm97_vm0, %v15852_v53 }
 0xdf1   :  { %v5983_v60 = vmul.f32 %v14373_v50, %v15794_v28 }
 0xdf2   :  { %14380 = vrsqrt.f32 %v5971_v0 }
 0xdf3   :  { %14382 = vrsqrt.f32 %v5972_v46  ;;  %v5997_v16 = vmul.f32 %v12855_v6, %v5983_v60 }
 0xdf4   :  { %v14375_v9 = vpop.eup %14374 }
 0xdf5   :  { %v14377_v22 = vpop.eup %14376  ;;  %v15859_v25 = vadd.f32 %v12856_v55, %v5997_v16  ;;  %v5985_v30 = vmul.f32 %v14375_v9, %v15798_v33 }
 0xdf6   :  { %v5984_v31 = vmul.f32 %v14377_v22, %v15800_v41 }
 0xdf7   :  { %13728 = vmatprep.mubr.msk.f32.mxu0 %vm97_vm0, %v15859_v25  ;;  %v5999_v37 = vmul.f32 %v12855_v6, %v5985_v30 }
 0xdf8   :  { %v14379_v59 = vpop.eup %14378  ;;  %v5998_v8 = vmul.f32 %v12855_v6, %v5984_v31 }
 0xdf9   :  { %v15865_v18 = vadd.f32 %v12856_v55, %v5999_v37  ;;  %v5986_v28 = vmul.f32 %v14379_v59, %v15807_v12 }
 0xdfa   :  { %v15868_v58 = vadd.f32 %v12856_v55, %v5998_v8 }
 0xdfb   :  { %v6000_v11 = vmul.f32 %v12855_v6, %v5986_v28 }
 0xdfc   :  { %v14381_v15 = vpop.eup %14380  ;;  %13729 = vmatmul.mubr.msk.f32.gmra.mrb[72].mxu0 %vm97_vm0, %v15868_v58 }
 0xdfd   :  { %v14383_v33 = vpop.eup %14382  ;;  %13731 = vmatprep.mubr.msk.f32.mxu0 %vm97_vm0, %v15865_v18  ;;  %v15874_v41 = vadd.f32 %v12856_v55, %v6000_v11  ;;  %v5987_v43 = vmul.f32 %v14381_v15, %v15813_v61  ;;  %v6171_v61 = vld [vmem:[%s17202_s8 + $0x30] sm:$0xff] }
 0xdfe   :  { %v5988_v52 = vmul.f32 %v14383_v33, %v15815_v3  ;;  %v6172_v3 = vld [vmem:[%s17202_s8 + $0x38] sm:$0xff] }
 0xdff   :  { %v6001_v40 = vmul.f32 %v12855_v6, %v5987_v43  ;;  %v14182_v38 = vpack.c.bf16 %v6172_v3, %v6171_v61 }
 0xe00   :  { %13732 = vmatmul.mubr.msk.f32.gmra.mrb[74].mxu0 %vm97_vm0, %v15874_v41  ;;  %v6002_v12 = vmul.f32 %v12855_v6, %v5988_v52 }
 0xe01   :  { %v15880_v36 = vadd.f32 %v12856_v55, %v6001_v40  ;;  %14183 = vmatprep.subr.bf16.mxu1 %v14182_v38 }
 0xe02   :  { %v15882_v19 = vadd.f32 %v12856_v55, %v6002_v12  ;;  %14185 = vmatpush3.bf16.msra.mxu1 %v14182_v38 }
 0xe03   :  { %13734 = vmatprep.mubr.msk.f32.mxu0 %vm97_vm0, %v15880_v36  ;;  %13785 = vmatprep.subr.mxu1 %v17213_v14 }
 0xe04   :  { %13735 = vmatmul.mubr.msk.f32.gmra.mrb[76].mxu0 %vm97_vm0, %v15882_v19 }
 0xec3   :  { %v13727_v56 = vpop.f32.mrb[70].mxu0 }
 0xec4   :  { %v6124_v32 = vadd.f32 %v13727_v56, %v12857_v4  ;;  %v6118_v20 = vpop.f32.mrb[71].mxu0 }
 0xec5   :  { %v6119_v21 = vadd.f32 %v12857_v4, %v6118_v20 }
 0xec6   :  { %v6158_v17 = vmax.f32 %v6124_v32, 0.0 }
 0xec7   :  { %v6157_v57 = vmax.f32 %v6119_v21, 0.0 }
 0xec9   :  { %13753 = vmatprep.mubr.msk.f32.mxu1 %vm6180_vm5, %v6157_v57 }
 0xeca   :  { %13754 = vmatmul.mubr.msk.f32.vlgmr.msra.gmra.mrb[74].mxu1 %vm6180_vm5, %v6158_v17 }
 0xecf   :  { %v13730_v29 = vpop.f32.mrb[72].mxu0 }
 0xed0   :  { %v6134_v1 = vadd.f32 %v13730_v29, %v12857_v4  ;;  %v6128_v23 = vpop.f32.mrb[73].mxu0 }
 0xed1   :  { %v6129_v27 = vadd.f32 %v12857_v4, %v6128_v23 }
 0xed2   :  { %v6160_v26 = vmax.f32 %v6134_v1, 0.0 }
 0xed3   :  { %v6159_v42 = vmax.f32 %v6129_v27, 0.0  ;;  %v13733_v2 = vpop.f32.mrb[74].mxu0 }
 0xed4   :  { %v6144_v35 = vadd.f32 %v13733_v2, %v12857_v4  ;;  %v6138_v45 = vpop.f32.mrb[75].mxu0 }
 0xed5   :  { %v6139_v6 = vadd.f32 %v12857_v4, %v6138_v45  ;;  %13756 = vmatprep.mubr.msk.f32.mxu1 %vm6180_vm5, %v6159_v42 }
 0xed6   :  { %13757 = vmatmul.mubr.msk.f32.gmra.mrb[76].mxu1 %vm6180_vm5, %v6160_v26  ;;  %v6162_v7 = vmax.f32 %v6144_v35, 0.0 }
 0xed7   :  { %v6161_v49 = vmax.f32 %v6139_v6, 0.0  ;;  %v13736_v10 = vpop.f32.mrb[76].mxu0 }
 0xed8   :  { %v6154_v54 = vadd.f32 %v13736_v10, %v12857_v4  ;;  %v6148_v48 = vpop.f32.mrb[77].mxu0 }
 0xed9   :  { %v6149_v5 = vadd.f32 %v12857_v4, %v6148_v48  ;;  %13759 = vmatprep.mubr.msk.f32.mxu1 %vm6180_vm5, %v6161_v49 }
 0xeda   :  { %13760 = vmatmul.mubr.msk.f32.gmra.mrb[78].mxu1 %vm6180_vm5, %v6162_v7  ;;  %v6164_v55 = vmax.f32 %v6154_v54, 0.0 }
 0xedb   :  { %v6163_v39 = vmax.f32 %v6149_v5, 0.0 }
 0xedd   :  { %13762 = vmatprep.mubr.msk.f32.mxu1 %vm6180_vm5, %v6163_v39 }
 0xede   :  { %13763 = vmatmul.mubr.msk.f32.gmra.mrb[80].mxu1 %vm6180_vm5, %v6164_v55 }
 0xedf   :  { %13787 = vmatprep.mubr.msk.f32.mxu1 %vm14643_vm1, %v17213_v14 }
 0xf9d   :  { %v13755_v44 = vpop.f32.mrb[74].mxu1 }
 0xf9e   :  { %v6277_v51 = vadd.f32 %v13755_v44, %v12866_v24  ;;  %v6271_v62 = vpop.f32.mrb[75].mxu1 }
 0xf9f   :  { %v6272_v13 = vadd.f32 %v12866_v24, %v6271_v62 }
 0xfa0   :  { %v6311_v34 = vadd.f32 %v6277_v51, %v15852_v53 }
 0xfa1   :  { %v6310_v63 = vadd.f32 %v6272_v13, %v15850_v47 }
 0xfa2   :  { %v6325_v50 = vsel %vm97_vm0, %v6311_v34, 0.0 }
 0xfa3   :  { %6326 = vadd.xlane.f32.xlu0 %v6325_v50  ;;  %v6322_v0 = vsel %vm97_vm0, %v6310_v63, 0.0 }
 0xfa4   :  { %6323 = vadd.xlane.f32.xlu1 %v6322_v0 }
 0xfa9   :  { %v13758_v46 = vpop.f32.mrb[76].mxu1 }
 0xfaa   :  { %v6287_v60 = vadd.f32 %v13758_v46, %v12866_v24  ;;  %v6281_v16 = vpop.f32.mrb[77].mxu1 }
 0xfab   :  { %v6282_v9 = vadd.f32 %v12866_v24, %v6281_v16  ;;  %v12880_v16 = vld [vmem:[%s17196_s2 + $0x28] sm:$0xff] }
 0xfac   :  { %v6313_v22 = vadd.f32 %v6287_v60, %v15868_v58  ;;  %v12879_v60 = vld [vmem:[%s17196_s2 + $0x20] sm:$0xff] }
 0xfad   :  { %v6312_v30 = vadd.f32 %v6282_v9, %v15859_v25  ;;  %v13761_v31 = vpop.f32.mrb[78].mxu1  ;;  %v14186_v9 = vpack.c.bf16 %v12880_v16, %v12879_v60 }
 0xfae   :  { %v6297_v37 = vadd.f32 %v13761_v31, %v12866_v24  ;;  %v6291_v59 = vpop.f32.mrb[79].mxu1  ;;  %v6331_v53 = vsel %vm97_vm0, %v6313_v22, 0.0 }
 0xfaf   :  { %v6292_v47 = vadd.f32 %v12866_v24, %v6291_v59  ;;  %6332 = vadd.xlane.f32.xlu0 %v6331_v53  ;;  %v6328_v8 = vsel %vm97_vm0, %v6312_v30, 0.0  ;;  %14187 = vmatprep.subr.bf16.mxu0 %v14186_v9 }
 0xfb0   :  { %v6315_v28 = vadd.f32 %v6297_v37, %v15874_v41  ;;  %6329 = vadd.xlane.f32.xlu1 %v6328_v8  ;;  %14189 = vmatpush3.bf16.msra.mxu0 %v14186_v9 }
 0xfb1   :  { %v6314_v11 = vadd.f32 %v6292_v47, %v15865_v18  ;;  %v13764_v15 = vpop.f32.mrb[80].mxu1 }
 0xfb2   :  { %v6307_v33 = vadd.f32 %v13764_v15, %v12866_v24  ;;  %v6337_v58 = vsel %vm97_vm0, %v6315_v28, 0.0  ;;  %v6301_v43 = vpop.f32.mrb[81].mxu1 }
 0xfb3   :  { %6338 = vadd.xlane.f32.xlu0 %v6337_v58  ;;  %v6302_v25 = vadd.f32 %v12866_v24, %v6301_v43  ;;  %v6334_v52 = vsel %vm97_vm0, %v6314_v11, 0.0 }
 0xfb4   :  { %v6317_v40 = vadd.f32 %v6307_v33, %v15882_v19  ;;  %6335 = vadd.xlane.f32.xlu1 %v6334_v52 }
 0xfb5   :  { %v6316_v12 = vadd.f32 %v6302_v25, %v15880_v36  ;;  %v12877_v25 = vld [vmem:[%s17204_s10 + $0x1] ss:$0 sm:$0xff] }
 0xfb6   :  { %v6343_v61 = vsel %vm97_vm0, %v6317_v40, 0.0 }
 0xfb7   :  { %6344 = vadd.xlane.f32.xlu0 %v6343_v61  ;;  %v6340_v41 = vsel %vm97_vm0, %v6316_v12, 0.0 }
 0xfb8   :  { %6341 = vadd.xlane.f32.xlu1 %v6340_v41 }
0x1030   :  { %v6327_v18 = vpop.xlane.xlu0 %6326 }
0x1031   :  { %v6347_v3 = vmul.f32 0.03125, %v6327_v18  ;;  %v6324_v38 = vpop.xlane.xlu1 %6323 }
0x1032   :  { %v6346_v4 = vmul.f32 0.03125, %v6324_v38 }
0x1033   :  { %v15927_v56 = vsub.f32 %v6311_v34, %v6347_v3 }
0x1034   :  { %v15929_v32 = vsub.f32 %v6310_v63, %v6346_v4 }
0x1035   :  { %v6363_v19 = vmul.f32 %v15927_v56, %v15927_v56 }
0x1036   :  { %v6362_v36 = vmul.f32 %v15929_v32, %v15929_v32 }
0x1037   :  { %v6373_v20 = vsel %vm97_vm0, %v6363_v19, 0.0 }
0x1038   :  { %6374 = vadd.xlane.f32.xlu0 %v6373_v20  ;;  %v6370_v21 = vsel %vm97_vm0, %v6362_v36, 0.0  ;;  %v12878_v36 = vld [vmem:[%s17205_s11 + $0x1] ss:$0 sm:$0xff] }
0x1039   :  { %6371 = vadd.xlane.f32.xlu1 %v6370_v21 }
0x103c   :  { %v6333_v57 = vpop.xlane.xlu0 %6332 }
0x103d   :  { %v6349_v17 = vmul.f32 0.03125, %v6333_v57  ;;  %v6330_v29 = vpop.xlane.xlu1 %6329 }
0x103e   :  { %v6348_v1 = vmul.f32 0.03125, %v6330_v29 }
0x103f   :  { %v15937_v23 = vsub.f32 %v6313_v22, %v6349_v17  ;;  %v12881_v22 = vld [vmem:[%s17196_s2 + $0x30] sm:$0xff] }
0x1040   :  { %v15939_v27 = vsub.f32 %v6312_v30, %v6348_v1  ;;  %v6339_v42 = vpop.xlane.xlu0 %6338  ;;  %v12882_v30 = vld [vmem:[%s17196_s2 + $0x38] sm:$0xff] }
0x1041   :  { %v6351_v2 = vmul.f32 0.03125, %v6339_v42  ;;  %v6336_v26 = vpop.xlane.xlu1 %6335  ;;  %v6365_v35 = vmul.f32 %v15937_v23, %v15937_v23  ;;  %v14190_v31 = vpack.c.bf16 %v12882_v30, %v12881_v22 }
0x1042   :  { %v6350_v45 = vmul.f32 0.03125, %v6336_v26  ;;  %v6364_v6 = vmul.f32 %v15939_v27, %v15939_v27 }
0x1043   :  { %v15945_v49 = vsub.f32 %v6315_v28, %v6351_v2  ;;  %v6379_v10 = vsel %vm97_vm0, %v6365_v35, 0.0  ;;  %14191 = vmatprep.subr.bf16.mxu0 %v14190_v31 }
0x1044   :  { %v15948_v7 = vsub.f32 %v6314_v11, %v6350_v45  ;;  %6380 = vadd.xlane.f32.xlu0 %v6379_v10  ;;  %v6376_v54 = vsel %vm97_vm0, %v6364_v6, 0.0  ;;  %v6345_v48 = vpop.xlane.xlu0 %6344  ;;  %14193 = vmatpush3.bf16.msra.mxu0 %v14190_v31 }
0x1045   :  { %6377 = vadd.xlane.f32.xlu1 %v6376_v54  ;;  %v6353_v5 = vmul.f32 0.03125, %v6345_v48  ;;  %v6342_v39 = vpop.xlane.xlu1 %6341  ;;  %v6367_v55 = vmul.f32 %v15945_v49, %v15945_v49  ;;  %13790 = vmatprep.subr.mxu0 %v17213_v14 }
0x1046   :  { %v6352_v24 = vmul.f32 0.03125, %v6342_v39  ;;  %v6366_v44 = vmul.f32 %v15948_v7, %v15948_v7 }
0x1047   :  { %v15955_v51 = vsub.f32 %v6317_v40, %v6353_v5  ;;  %v6385_v62 = vsel %vm97_vm0, %v6367_v55, 0.0 }
0x1048   :  { %v15958_v13 = vsub.f32 %v6316_v12, %v6352_v24  ;;  %6386 = vadd.xlane.f32.xlu0 %v6385_v62  ;;  %v6382_v34 = vsel %vm97_vm0, %v6366_v44, 0.0 }
0x1049   :  { %6383 = vadd.xlane.f32.xlu1 %v6382_v34  ;;  %v6369_v63 = vmul.f32 %v15955_v51, %v15955_v51 }
0x104a   :  { %v6368_v50 = vmul.f32 %v15958_v13, %v15958_v13 }
0x104b   :  { %v6391_v0 = vsel %vm97_vm0, %v6369_v63, 0.0 }
0x104c   :  { %6392 = vadd.xlane.f32.xlu0 %v6391_v0  ;;  %v6388_v46 = vsel %vm97_vm0, %v6368_v50, 0.0 }
0x104d   :  { %6389 = vadd.xlane.f32.xlu1 %v6388_v46 }
0x10c5   :  { %v6375_v37 = vpop.xlane.xlu0 %6374 }
0x10c6   :  { %v6395_v59 = vmul.f32 0.03125, %v6375_v37  ;;  %v6372_v53 = vpop.xlane.xlu1 %6371 }
0x10c7   :  { %v6394_v47 = vmul.f32 0.03125, %v6372_v53 }
0x10c8   :  { %v6403_v8 = vadd.f32 1e-08, %v6395_v59 }
0x10c9   :  { %v6402_v28 = vadd.f32 1e-08, %v6394_v47 }
0x10ca   :  { %14384 = vrsqrt.f32 %v6403_v8 }
0x10cb   :  { %14386 = vrsqrt.f32 %v6402_v28 }
0x10d1   :  { %v6381_v11 = vpop.xlane.xlu0 %6380 }
0x10d2   :  { %v6397_v15 = vmul.f32 0.03125, %v6381_v11  ;;  %v6378_v33 = vpop.xlane.xlu1 %6377 }
0x10d3   :  { %v6396_v58 = vmul.f32 0.03125, %v6378_v33 }
0x10d4   :  { %v14385_v43 = vpop.eup %14384  ;;  %v6405_v52 = vadd.f32 1e-08, %v6397_v15 }
0x10d5   :  { %v14387_v40 = vpop.eup %14386  ;;  %v6419_v12 = vmul.f32 %v14385_v43, %v15927_v56  ;;  %v6404_v61 = vadd.f32 1e-08, %v6396_v58  ;;  %v6387_v41 = vpop.xlane.xlu0 %6386 }
0x10d6   :  { %14388 = vrsqrt.f32 %v6405_v52  ;;  %v6399_v18 = vmul.f32 0.03125, %v6387_v41  ;;  %v6384_v3 = vpop.xlane.xlu1 %6383  ;;  %v6418_v38 = vmul.f32 %v14387_v40, %v15929_v32 }
0x10d7   :  { %v6433_v4 = vmul.f32 %v12877_v25, %v6419_v12  ;;  %14390 = vrsqrt.f32 %v6404_v61  ;;  %v6398_v19 = vmul.f32 0.03125, %v6384_v3 }
0x10d8   :  { %v6407_v20 = vadd.f32 1e-08, %v6399_v18  ;;  %v6432_v21 = vmul.f32 %v12877_v25, %v6418_v38 }
0x10d9   :  { %v6406_v57 = vadd.f32 1e-08, %v6398_v19  ;;  %v6393_v17 = vpop.xlane.xlu0 %6392  ;;  %v15990_v2 = vadd.f32 %v12878_v36, %v6433_v4 }
0x10da   :  { %14392 = vrsqrt.f32 %v6407_v20  ;;  %v6401_v56 = vmul.f32 0.03125, %v6393_v17  ;;  %v6390_v29 = vpop.xlane.xlu1 %6389  ;;  %v15988_v1 = vadd.f32 %v12878_v36, %v6432_v21  ;;  %v16111_v17 = vld [vmem:[#allocation2 + $0x1] sm:$0x1] }
0x10db   :  { %14394 = vrsqrt.f32 %v6406_v57  ;;  %v6400_v42 = vmul.f32 0.03125, %v6390_v29  ;;  %17224 = vst [vmem:[#allocation12_spill] sm:$0xff] %v15990_v2  ;;  %v16116_v29 = vld [vmem:[#allocation2] sm:$0x1] }
0x10dc   :  { %17223 = vst [vmem:[#allocation11_spill] sm:$0xff] %v15988_v1  ;;  %v6409_v32 = vadd.f32 1e-08, %v6401_v56  ;;  %13773 = vmatprep.mubr.msk.f32.mxu0 %vm97_vm0, %v15988_v1 }
0x10dd   :  { %v6408_v26 = vadd.f32 1e-08, %v6400_v42  ;;  %13774 = vmatmul.mubr.msk.f32.vlgmr.msra.gmra.mrb[78].mxu0 %vm97_vm0, %v15990_v2 }
0x10de   :  { %14396 = vrsqrt.f32 %v6409_v32 }
0x10df   :  { %14398 = vrsqrt.f32 %v6408_v26 }
0x10e0   :  { %v14389_v35 = vpop.eup %14388 }
0x10e1   :  { %v14391_v45 = vpop.eup %14390  ;;  %v6421_v6 = vmul.f32 %v14389_v35, %v15937_v23 }
0x10e2   :  { %v6420_v10 = vmul.f32 %v14391_v45, %v15939_v27 }
0x10e3   :  { %v6435_v54 = vmul.f32 %v12877_v25, %v6421_v6 }
0x10e4   :  { %v14393_v48 = vpop.eup %14392  ;;  %v6434_v5 = vmul.f32 %v12877_v25, %v6420_v10  ;;  %v16125_v10 = vld [vmem:[#allocation2 + $0x2] sm:$0x1] }
0x10e5   :  { %v14395_v39 = vpop.eup %14394  ;;  %v6423_v55 = vmul.f32 %v14393_v48, %v15945_v49  ;;  %v16002_v62 = vadd.f32 %v12878_v36, %v6435_v54 }
0x10e6   :  { %v15999_v24 = vadd.f32 %v12878_v36, %v6434_v5  ;;  %v6422_v44 = vmul.f32 %v14395_v39, %v15948_v7 }
0x10e7   :  { %17226 = vst [vmem:[#allocation14_spill] sm:$0xff] %v16002_v62  ;;  %v6437_v34 = vmul.f32 %v12877_v25, %v6423_v55 }
0x10e8   :  { %17225 = vst [vmem:[#allocation13_spill] sm:$0xff] %v15999_v24  ;;  %v14397_v63 = vpop.eup %14396  ;;  %13776 = vmatprep.mubr.msk.f32.mxu0 %vm97_vm0, %v15999_v24  ;;  %v6436_v23 = vmul.f32 %v12877_v25, %v6422_v44 }
0x10e9   :  { %v14399_v50 = vpop.eup %14398  ;;  %13777 = vmatmul.mubr.msk.f32.gmra.mrb[80].mxu0 %vm97_vm0, %v16002_v62  ;;  %v6425_v27 = vmul.f32 %v14397_v63, %v15955_v51  ;;  %v16012_v46 = vadd.f32 %v12878_v36, %v6437_v34  ;;  %v12884_v51 = vld [vmem:[%s17197_s3 + $0x1] ss:$0 sm:$0xff]  ;;  %v16132_v63 = vld [vmem:[#allocation2 + $0x3] sm:$0x1]  ;;  %s17233_s3 = smov 8  }
0x10ea   :  { %v16009_v0 = vadd.f32 %v12878_v36, %v6436_v23  ;;  %v6424_v49 = vmul.f32 %v14399_v50, %v15958_v13 }
0x10eb   :  { %17228 = vst [vmem:[#allocation16_spill] sm:$0xff] %v16012_v46  ;;  %v6439_v7 = vmul.f32 %v12877_v25, %v6425_v27 }
0x10ec   :  { %17227 = vst [vmem:[#allocation15_spill] sm:$0xff] %v16009_v0  ;;  %13779 = vmatprep.mubr.msk.f32.mxu0 %vm97_vm0, %v16009_v0  ;;  %v6438_v60 = vmul.f32 %v12877_v25, %v6424_v49 }
0x10ed   :  { %13780 = vmatmul.mubr.msk.f32.gmra.mrb[82].mxu0 %vm97_vm0, %v16012_v46  ;;  %v16020_v9 = vadd.f32 %v12878_v36, %v6439_v7 }
0x10ee   :  { %v16018_v16 = vadd.f32 %v12878_v36, %v6438_v60 }
0x10ef   :  { %17230 = vst [vmem:[#allocation18_spill] sm:$0xff] %v16020_v9 }
0x10f0   :  { %17229 = vst [vmem:[#allocation17_spill] sm:$0xff] %v16018_v16  ;;  %13782 = vmatprep.mubr.msk.f32.mxu0 %vm97_vm0, %v16018_v16 }
0x10f1   :  { %13783 = vmatmul.mubr.msk.f32.gmra.mrb[84].mxu0 %vm97_vm0, %v16020_v9 }
0x10f2   :  { %13792 = vmatprep.mubr.msk.f32.mxu0 %vm14643_vm1, %v17213_v14 }
0x11b0   :  { %v13775_v13 = vpop.f32.mrb[78].mxu0 }
0x11b1   :  { %v16031_v22 = vadd.f32 %v13775_v13, %v12884_v51  ;;  %v6557_v30 = vpop.f32.mrb[79].mxu0  ;;  %v16138_v13 = vld [vmem:[#allocation2 + $0x5] sm:$0x1] }
0x11b2   :  { %v16033_v31 = vadd.f32 %v12884_v51, %v6557_v30 }
0x11b3   :  { %6674 = vrot.lane.b32.xlu0 %v16031_v22, %s14644_s18 }
0x11b4   :  { %6597 = vrot.lane.b32.xlu1 %v16033_v31, %s14644_s18 }
0x11bc   :  { %v13778_v37 = vpop.f32.mrb[80].mxu0 }
0x11bd   :  { %v6567_v59 = vpop.f32.mrb[81].mxu0  ;;  %v16043_v28 = vadd.f32 %v13778_v37, %v12884_v51 }
0x11be   :  { %v16039_v53 = vadd.f32 %v12884_v51, %v6567_v59 }
0x11c0   :  { %6751 = vrot.lane.b32.xlu1 %v16039_v53, %s14644_s18  ;;  %v13781_v47 = vpop.f32.mrb[82].mxu0 }
0x11c1   :  { %v6577_v8 = vpop.f32.mrb[83].mxu0  ;;  %v16051_v58 = vadd.f32 %v13781_v47, %v12884_v51 }
0x11c2   :  { %v16045_v11 = vadd.f32 %v12884_v51, %v6577_v8 }
0x11c4   :  { %6828 = vrot.lane.b32.xlu1 %v16043_v28, %s14644_s18  ;;  %6905 = vrot.lane.b32.xlu0 %v16045_v11, %s14644_s18  ;;  %v13784_v15 = vpop.f32.mrb[84].mxu0 }
0x11c5   :  { %v6587_v33 = vpop.f32.mrb[85].mxu0  ;;  %v16059_v25 = vadd.f32 %v13784_v15, %v12884_v51  ;;  %v16142_v15 = vld [vmem:[#allocation2 + $0x7] sm:$0x1] }
0x11c6   :  { %v16053_v43 = vadd.f32 %v12884_v51, %v6587_v33 }
0x11c8   :  { %6982 = vrot.lane.b32.xlu1 %v16051_v58, %s14644_s18  ;;  %7059 = vrot.lane.b32.xlu0 %v16053_v43, %s14644_s18 }
0x11cc   :  { %7136 = vrot.lane.b32.xlu1 %v16059_v25, %s14644_s18  ;;  %s17234_s18 = smov 16  }
0x1225   :  { %v6675_v52 = vpop.permute.xlu0 %6674 }
0x1226   :  { %v6598_v40 = vpop.permute.xlu1 %6597  ;;  %13791 = vmatpush3.xpose.msk.msra.mxu0 %vm230_vm2, %v6675_v52 }
0x1227   :  { %13786 = vmatpush3.xpose.msk.msra.mxu1 %vm230_vm2, %v6598_v40  ;;  %13800 = vmatprep.subr.mxu0 %v17213_v14 }
0x1228   :  { %13795 = vmatprep.subr.mxu1 %v17213_v14 }
0x1229   :  { %13793 = vmatmul.mubr.msk.f32.vlgmr.msra.gmra.mrb[86].mxu0 %vm230_vm2, %v16031_v22 }
0x122a   :  { %13788 = vmatmul.mubr.msk.f32.vlgmr.msra.gmra.mrb[82].mxu1 %vm230_vm2, %v16033_v31  ;;  %13802 = vmatprep.mubr.msk.f32.mxu0 %vm14643_vm1, %v17213_v14 }
0x122b   :  { %13797 = vmatprep.mubr.msk.f32.mxu1 %vm14643_vm1, %v17213_v14 }
0x1232   :  { %v6752_v12 = vpop.permute.xlu1 %6751 }
0x1233   :  { %13796 = vmatpush3.xpose.msk.msra.mxu1 %vm230_vm2, %v6752_v12  ;;  %v16146_v12 = vld [vmem:[#allocation2 + $0x4] sm:$0x1] }
0x1234   :  { %13805 = vmatprep.subr.mxu1 %v17213_v14 }
0x1236   :  { %13798 = vmatmul.mubr.msk.f32.vlgmr.msra.gmra.mrb[84].mxu1 %vm230_vm2, %v16039_v53  ;;  %v6829_v61 = vpop.permute.xlu1 %6828  ;;  %v6906_v41 = vpop.permute.xlu0 %6905 }
0x1237   :  { %13801 = vmatpush3.xpose.msk.msra.mxu0 %vm230_vm2, %v6829_v61  ;;  %13806 = vmatpush3.xpose.msk.msra.mxu1 %vm230_vm2, %v6906_v41 }
0x1238   :  { %13807 = vmatprep.mubr.msk.f32.mxu1 %vm14643_vm1, %v17213_v14  ;;  %13810 = vmatprep.subr.mxu0 %v17213_v14 }
0x1239   :  { %13815 = vmatprep.subr.mxu1 %v17213_v14 }
0x123a   :  { %v6983_v18 = vpop.permute.xlu1 %6982  ;;  %13803 = vmatmul.mubr.msk.f32.vlgmr.msra.gmra.mrb[88].mxu0 %vm230_vm2, %v16043_v28  ;;  %13808 = vmatmul.mubr.msk.f32.vlgmr.msra.gmra.mrb[86].mxu1 %vm230_vm2, %v16045_v11  ;;  %v7060_v3 = vpop.permute.xlu0 %7059 }
0x123b   :  { %13811 = vmatpush3.xpose.msk.msra.mxu0 %vm230_vm2, %v6983_v18  ;;  %13816 = vmatpush3.xpose.msk.msra.mxu1 %vm230_vm2, %v7060_v3  ;;  %v16177_v3 = vld [vmem:[#allocation2 + $0x6] sm:$0x1] }
0x123c   :  { %13812 = vmatprep.mubr.msk.f32.mxu0 %vm14643_vm1, %v17213_v14  ;;  %13817 = vmatprep.mubr.msk.f32.mxu1 %vm14643_vm1, %v17213_v14 }
0x123d   :  { %13820 = vmatprep.subr.mxu0 %v17213_v14  ;;  %13825 = vmatprep.subr.mxu1 %v17213_v14 }
0x123e   :  { %v7137_v38 = vpop.permute.xlu1 %7136  ;;  %13813 = vmatmul.mubr.msk.f32.vlgmr.msra.gmra.mrb[90].mxu0 %vm230_vm2, %v16051_v58  ;;  %13818 = vmatmul.mubr.msk.f32.vlgmr.msra.gmra.mrb[88].mxu1 %vm230_vm2, %v16053_v43 }
0x123f   :  { %13821 = vmatpush3.xpose.msk.msra.mxu0 %vm230_vm2, %v7137_v38  ;;  %13822 = vmatprep.mubr.msk.f32.mxu0 %vm14643_vm1, %v17213_v14 }
0x1240   :  { %13830 = vmatprep.subr.mxu0 %v17213_v14  ;;  %13827 = vmatprep.mubr.msk.f32.mxu1 %vm14643_vm1, %v17213_v14 }
0x1242   :  { %13823 = vmatmul.mubr.msk.f32.vlgmr.msra.gmra.mrb[92].mxu0 %vm230_vm2, %v16059_v25 }
0x1243   :  { %13832 = vmatprep.mubr.msk.f32.mxu0 %vm14643_vm1, %v17213_v14 }
0x12fc   :  { %v6746_v4 = vpop.f32.mrb[86].mxu0 }
0x12fd   :  { %v7213_v19 = vmul.f32 0.35355338, %v6746_v4  ;;  %v6669_v36 = vpop.f32.mrb[82].mxu1  ;;  %v13794_v20 = vpop.f32.mrb[87].mxu0 }
0x12fe   :  { %v7212_v21 = vmul.f32 0.35355338, %v6669_v36  ;;  %v13789_v57 = vpop.f32.mrb[83].mxu1 }
0x12ff   :  { %v16114_v56 = vadd.f32 %v16111_v17, %v7213_v19 }
0x1300   :  { %v16119_v42 = vadd.f32 %v16116_v29, %v7212_v21 }
0x1301   :  { %v7232_v32 = vsel %vm7228_vm6, %v16114_v56, -inf }
0x1302   :  { %7233 = vmax.xlane.f32.xlu1 %v7232_v32  ;;  %v7229_v26 = vsel %vm7228_vm6, %v16119_v42, -inf }
0x1303   :  { %7230 = vmax.xlane.f32.xlu0 %v7229_v26 }
0x1309   :  { %v6823_v35 = vpop.f32.mrb[84].mxu1 }
0x130a   :  { %v7214_v45 = vmul.f32 0.35355338, %v6823_v35  ;;  %v13799_v6 = vpop.f32.mrb[85].mxu1 }
0x130c   :  { %v16128_v54 = vadd.f32 %v16125_v10, %v7214_v45 }
0x130d   :  { %v6900_v48 = vpop.f32.mrb[88].mxu0  ;;  %v6977_v5 = vpop.f32.mrb[86].mxu1 }
0x130e   :  { %v7215_v39 = vmul.f32 0.35355338, %v6900_v48  ;;  %v13804_v55 = vpop.f32.mrb[89].mxu0  ;;  %v13809_v44 = vpop.f32.mrb[87].mxu1  ;;  %v7235_v34 = vsel %vm7228_vm6, %v16128_v54, -inf }
0x130f   :  { %7236 = vmax.xlane.f32.xlu0 %v7235_v34  ;;  %v7216_v40 = vmul.f32 0.35355338, %v6977_v5 }
0x1310   :  { %v7223_v23 = vadd.f32 %v16132_v63, %v7215_v39 }
0x1311   :  { %v7054_v50 = vpop.f32.mrb[90].mxu0  ;;  %v7131_v27 = vpop.f32.mrb[88].mxu1  ;;  %v16149_v61 = vadd.f32 %v16146_v12, %v7216_v40 }
0x1312   :  { %v7217_v49 = vmul.f32 0.35355338, %v7054_v50  ;;  %v13814_v7 = vpop.f32.mrb[91].mxu0  ;;  %v7238_v60 = vsel %vm7228_vm6, %v7223_v23, -inf  ;;  %v13819_v51 = vpop.f32.mrb[89].mxu1 }
0x1313   :  { %7317 = vrot.lane.b32.xlu1 %v16033_v31, %s14645_s21  ;;  %7239 = vmax.xlane.f32.xlu0 %v7238_v60  ;;  %v7241_v41 = vsel %vm7228_vm6, %v16149_v61, -inf  ;;  %v7218_v18 = vmul.f32 0.35355338, %v7131_v27 }
0x1314   :  { %v7225_v30 = vadd.f32 %v16138_v13, %v7217_v49 }
0x1315   :  { %v7208_v37 = vpop.f32.mrb[92].mxu0  ;;  %v16180_v38 = vadd.f32 %v16177_v3, %v7218_v18 }
0x1316   :  { %v7219_v59 = vmul.f32 0.35355338, %v7208_v37  ;;  %v13824_v47 = vpop.f32.mrb[93].mxu0  ;;  %v7244_v8 = vsel %vm7228_vm6, %v7225_v30, -inf }
0x1317   :  { %7245 = vmax.xlane.f32.xlu0 %v7244_v8  ;;  %v7247_v4 = vsel %vm7228_vm6, %v16180_v38, -inf }
0x1318   :  { %v7227_v33 = vadd.f32 %v16142_v15, %v7219_v59 }
0x131a   :  { %v7250_v52 = vsel %vm7228_vm6, %v7227_v33, -inf }
0x131b   :  { %7251 = vmax.xlane.f32.xlu0 %v7250_v52 }
0x1331   :  { %7393 = vrot.lane.b32.xlu0 %v16031_v22, %s14645_s21 }
0x1335   :  { %7621 = vrot.lane.b32.xlu0 %v16045_v11, %s14645_s21 }
0x1337   :  { %7242 = vmax.xlane.f32.xlu1 %v7241_v41 }
0x1339   :  { %7773 = vrot.lane.b32.xlu0 %v16053_v43, %s14645_s21 }
0x133d   :  { %7927 = vrot.lane.b32.xlu0 %v16033_v31, %s14646_s23 }
0x1341   :  { %7925 = vrot.lane.b32.xlu0 %v16033_v31, %s14647_s24 }
0x1345   :  { %8083 = vrot.lane.b32.xlu0 %v16039_v53, %s14646_s23 }
0x1348   :  { %7469 = vrot.lane.b32.xlu1 %v16039_v53, %s14645_s21 }
0x134c   :  { %7545 = vrot.lane.b32.xlu1 %v16043_v28, %s14645_s21 }
0x1350   :  { %7697 = vrot.lane.b32.xlu1 %v16051_v58, %s14645_s21 }
0x1354   :  { %7849 = vrot.lane.b32.xlu1 %v16059_v25, %s14645_s21  ;;  %s17235_s21 = smov 24  }
0x1358   :  { %8005 = vrot.lane.b32.xlu1 %v16031_v22, %s14646_s23 }
0x135c   :  { %8003 = vrot.lane.b32.xlu1 %v16031_v22, %s14647_s24 }
0x1380   :  { %7248 = vmax.xlane.f32.xlu1 %v7247_v4 }
0x138f   :  { %v7234_v19 = vpop.xlane.xlu1 %7233 }
0x1390   :  { %v7254_v36 = vsub.f32 %v16114_v56, %v7234_v19  ;;  %v7231_v57 = vpop.xlane.xlu0 %7230 }
0x1391   :  { %8161 = vrot.lane.b32.xlu1 %v16043_v28, %s14646_s23  ;;  %v7253_v35 = vsub.f32 %v16119_v42, %v7231_v57 }
0x1392   :  { %v7263_v20 = vmul.f32 1.442695, %v7254_v36 }
0x1393   :  { %v7318_v21 = vpop.permute.xlu1 %7317  ;;  %v7261_v48 = vmul.f32 1.442695, %v7253_v35 }
0x1394   :  { %14400 = vpow2.f32 %v7263_v20  ;;  %13826 = vmatpush3.msra.mxu1 %v7318_v21 }
0x1395   :  { %13835 = vmatprep.subr.mxu1 %v17213_v14 }
0x139c   :  { %v7237_v32 = vpop.xlane.xlu0 %7236 }
0x139d   :  { %v7255_v5 = vsub.f32 %v16128_v54, %v7237_v32 }
0x139e   :  { %v16188_v26 = vpop.eup %14400 }
0x139f   :  { %v7280_v45 = vsel %vm7228_vm6, %v16188_v26, 0.0  ;;  %v7265_v34 = vmul.f32 1.442695, %v7255_v5 }
0x13a0   :  { %7281 = vadd.xlane.f32.xlu0 %v7280_v45  ;;  %v7240_v56 = vpop.xlane.xlu0 %7239 }
0x13a1   :  { %v7256_v6 = vsub.f32 %v7223_v23, %v7240_v56 }
0x13a3   :  { %v7267_v39 = vmul.f32 1.442695, %v7256_v6 }
0x13a4   :  { %v7246_v55 = vpop.xlane.xlu0 %7245 }
0x13a5   :  { %14402 = vpow2.f32 %v7267_v39  ;;  %v7258_v44 = vsub.f32 %v7225_v30, %v7246_v55 }
0x13a6   :  { %14404 = vpow2.f32 %v7261_v48 }
0x13a7   :  { %v7271_v50 = vmul.f32 1.442695, %v7258_v44 }
0x13a8   :  { %v7252_v27 = vpop.xlane.xlu0 %7251 }
0x13a9   :  { %14406 = vpow2.f32 %v7271_v50  ;;  %v7260_v49 = vsub.f32 %v7227_v33, %v7252_v27 }
0x13aa   :  { %14408 = vpow2.f32 %v7265_v34 }
0x13ab   :  { %v7275_v42 = vmul.f32 1.442695, %v7260_v49 }
0x13ac   :  { %v7394_v7 = vpop.permute.xlu0 %7393 }
0x13ad   :  { %14410 = vpow2.f32 %v7275_v42  ;;  %13831 = vmatpush3.msra.mxu0 %v7394_v7 }
0x13ae   :  { %13840 = vmatprep.subr.mxu0 %v17213_v14 }
0x13af   :  { %v16195_v23 = vpop.eup %14402 }
0x13b0   :  { %v16197_v54 = vpop.eup %14404  ;;  %v7286_v60 = vsel %vm7228_vm6, %v16195_v23, 0.0  ;;  %v7622_v56 = vpop.permute.xlu0 %7621 }
0x13b1   :  { %7287 = vadd.xlane.f32.xlu0 %v7286_v60  ;;  %v7277_v30 = vsel %vm7228_vm6, %v16197_v54, 0.0 }
0x13b3   :  { %v16201_v51 = vpop.eup %14406 }
0x13b4   :  { %v16205_v37 = vpop.eup %14408  ;;  %v7292_v59 = vsel %vm7228_vm6, %v16201_v51, 0.0  ;;  %v16237_v6 = vpop.permute.xlu0 %7773 }
0x13b5   :  { %7278 = vadd.xlane.f32.xlu1 %v7277_v30  ;;  %7293 = vadd.xlane.f32.xlu0 %v7292_v59  ;;  %v7283_v8 = vsel %vm7228_vm6, %v16205_v37, 0.0 }
0x13b7   :  { %v16209_v47 = vpop.eup %14410 }
0x13b8   :  { %v7298_v33 = vsel %vm7228_vm6, %v16209_v47, 0.0  ;;  %v16241_v5 = vpop.permute.xlu0 %7927 }
0x13b9   :  { %7284 = vadd.xlane.f32.xlu1 %v7283_v8  ;;  %7299 = vadd.xlane.f32.xlu0 %v7298_v33 }
0x13bc   :  { %v16245_v55 = vpop.permute.xlu0 %7925 }
0x13c0   :  { %v16247_v44 = vpop.permute.xlu0 %8083 }
0x13c4   :  { %v7243_v52 = vpop.xlane.xlu1 %7242 }
0x13c5   :  { %v7257_v40 = vsub.f32 %v16149_v61, %v7243_v52 }
0x13c7   :  { %v7269_v41 = vmul.f32 1.442695, %v7257_v40 }
0x13c8   :  { %v7470_v61 = vpop.permute.xlu1 %7469 }
0x13c9   :  { %14412 = vpow2.f32 %v7269_v41 }
0x13cc   :  { %v7546_v19 = vpop.permute.xlu1 %7545 }
0x13cf   :  { %8081 = vrot.lane.b32.xlu0 %v16039_v53, %s14647_s24 }
0x13d0   :  { %v7698_v36 = vpop.permute.xlu1 %7697 }
0x13d3   :  { %v16218_v18 = vpop.eup %14412  ;;  %8239 = vrot.lane.b32.xlu0 %v16045_v11, %s14646_s23 }
0x13d4   :  { %v7289_v4 = vsel %vm7228_vm6, %v16218_v18, 0.0  ;;  %v7850_v20 = vpop.permute.xlu1 %7849 }
0x13d5   :  { %7290 = vadd.xlane.f32.xlu1 %v7289_v4 }
0x13d7   :  { %8237 = vrot.lane.b32.xlu0 %v16045_v11, %s14647_s24 }
0x13d8   :  { %v16232_v21 = vpop.permute.xlu1 %8005 }
0x13db   :  { %8395 = vrot.lane.b32.xlu0 %v16053_v43, %s14646_s23 }
0x13dc   :  { %v16234_v57 = vpop.permute.xlu1 %8003 }
0x13df   :  { %8393 = vrot.lane.b32.xlu0 %v16053_v43, %s14647_s24 }
0x13e6   :  { %8159 = vrot.lane.b32.xlu1 %v16043_v28, %s14647_s24 }
0x140d   :  { %v7249_v32 = vpop.xlane.xlu1 %7248 }
0x140e   :  { %v7259_v35 = vsub.f32 %v16180_v38, %v7249_v32 }
0x1410   :  { %v7273_v45 = vmul.f32 1.442695, %v7259_v35 }
0x1411   :  { %v8162_v27 = vpop.permute.xlu1 %8161 }
0x1412   :  { %14414 = vpow2.f32 %v7273_v45 }
0x141c   :  { %v16239_v48 = vpop.eup %14414 }
0x141d   :  { %v7295_v39 = vsel %vm7228_vm6, %v16239_v48, 0.0 }
0x141e   :  { %7296 = vadd.xlane.f32.xlu1 %v7295_v39 }
0x142d   :  { %v7282_v34 = vpop.xlane.xlu0 %7281 }
0x142e   :  { %14416 = vrcp.f32 %v7282_v34 }
0x142f   :  { %8317 = vrot.lane.b32.xlu1 %v16051_v58, %s14646_s23 }
0x1433   :  { %8315 = vrot.lane.b32.xlu1 %v16051_v58, %s14647_s24 }
0x1437   :  { %8473 = vrot.lane.b32.xlu1 %v16059_v25, %s14646_s23 }
0x1438   :  { %v14417_v38 = vpop.eup %14416 }
0x1439   :  { %v7310_v50 = vmul.f32 %v14417_v38, %v16188_v26 }
0x143b   :  { %8471 = vrot.lane.b32.xlu1 %v16059_v25, %s14647_s24  ;;  %13833 = vmatmul.mubr.msk.f32.vlgmr.msra.gmra.mrb[94].mxu0 %vm230_vm2, %v7310_v50 }
0x143c   :  { %13841 = vmatpush3.msra.mxu0 %v7546_v19  ;;  %13842 = vmatprep.mubr.msk.f32.mxu0 %vm14643_vm1, %v17213_v14 }
0x143d   :  { %13850 = vmatprep.subr.mxu0 %v17213_v14 }
0x143e   :  { %v7288_v49 = vpop.xlane.xlu0 %7287 }
0x143f   :  { %14418 = vrcp.f32 %v7288_v49 }
0x1442   :  { %v7279_v42 = vpop.xlane.xlu1 %7278  ;;  %v7294_v7 = vpop.xlane.xlu0 %7293 }
0x1443   :  { %14420 = vrcp.f32 %v7279_v42 }
0x1444   :  { %14422 = vrcp.f32 %v7294_v7 }
0x1446   :  { %v7285_v60 = vpop.xlane.xlu1 %7284  ;;  %v7300_v26 = vpop.xlane.xlu0 %7299 }
0x1447   :  { %14424 = vrcp.f32 %v7285_v60 }
0x1448   :  { %14426 = vrcp.f32 %v7300_v26 }
0x1449   :  { %v14419_v30 = vpop.eup %14418 }
0x144a   :  { %v7312_v59 = vmul.f32 %v14419_v30, %v16195_v23 }
0x144c   :  { %13843 = vmatmul.mubr.msk.f32.vlgmr.msra.gmra.mrb[96].mxu0 %vm230_vm2, %v7312_v59 }
0x144d   :  { %v14421_v8 = vpop.eup %14420  ;;  %13851 = vmatpush3.msra.mxu0 %v7698_v36  ;;  %13852 = vmatprep.mubr.msk.f32.mxu0 %vm14643_vm1, %v17213_v14 }
0x144e   :  { %v14423_v33 = vpop.eup %14422  ;;  %v7309_v52 = vmul.f32 %v14421_v8, %v16197_v54  ;;  %13860 = vmatprep.subr.mxu0 %v17213_v14 }
0x144f   :  { %v7314_v40 = vmul.f32 %v14423_v33, %v16201_v51 }
0x1450   :  { %13828 = vmatmul.mubr.msk.f32.vlgmr.msra.gmra.mrb[90].mxu1 %vm230_vm2, %v7309_v52 }
0x1451   :  { %v14425_v41 = vpop.eup %14424  ;;  %13853 = vmatmul.mubr.msk.f32.vlgmr.msra.gmra.mrb[98].mxu0 %vm230_vm2, %v7314_v40  ;;  %13836 = vmatpush3.msra.mxu1 %v7470_v61 }
0x1452   :  { %v14427_v23 = vpop.eup %14426  ;;  %13861 = vmatpush3.msra.mxu0 %v7850_v20  ;;  %13862 = vmatprep.mubr.msk.f32.mxu0 %vm14643_vm1, %v17213_v14  ;;  %v7311_v4 = vmul.f32 %v14425_v41, %v16205_v37  ;;  %v8082_v20 = vpop.permute.xlu0 %8081 }
0x1453   :  { %v7316_v19 = vmul.f32 %v14427_v23, %v16209_v47  ;;  %13837 = vmatprep.mubr.msk.f32.mxu1 %vm14643_vm1, %v17213_v14  ;;  %13845 = vmatprep.subr.mxu1 %v17213_v14 }
0x1454   :  { %13838 = vmatmul.mubr.msk.f32.vlgmr.msra.gmra.mrb[92].mxu1 %vm230_vm2, %v7311_v4  ;;  %13870 = vmatprep.subr.mxu0 %v17213_v14 }
0x1455   :  { %13863 = vmatmul.mubr.msk.f32.vlgmr.msra.gmra.mrb[100].mxu0 %vm230_vm2, %v7316_v19  ;;  %13846 = vmatpush3.msra.mxu1 %v7622_v56 }
0x1456   :  { %13872 = vmatprep.mubr.msk.f32.mxu0 %vm14643_vm1, %v17213_v14  ;;  %13847 = vmatprep.mubr.msk.f32.mxu1 %vm14643_vm1, %v17213_v14 }
0x1457   :  { %13855 = vmatprep.subr.mxu1 %v17213_v14 }
0x1459   :  { %13871 = vmatpush3.xpose.msk.msra.mxu0 %vm230_vm2, %v16232_v21 }
0x145a   :  { %13880 = vmatprep.subr.mxu0 %v17213_v14 }
0x145c   :  { %13873 = vmatmul.mubr.msk.f32.vlgmr.msra.gmra.mrb[102].mxu0 %vm230_vm2, %v16234_v57  ;;  %v8240_v57 = vpop.permute.xlu0 %8239 }
0x145d   :  { %13881 = vmatpush3.xpose.msk.msra.mxu0 %vm230_vm2, %v8162_v27  ;;  %13882 = vmatprep.mubr.msk.f32.mxu0 %vm14643_vm1, %v17213_v14 }
0x145e   :  { %13890 = vmatprep.subr.mxu0 %v17213_v14 }
0x1460   :  { %v8238_v56 = vpop.permute.xlu0 %8237 }
0x1462   :  { %v7291_v54 = vpop.xlane.xlu1 %7290 }
0x1463   :  { %14428 = vrcp.f32 %v7291_v54 }
0x1466   :  { %v8160_v51 = vpop.permute.xlu1 %8159 }
0x1467   :  { %13883 = vmatmul.mubr.msk.f32.vlgmr.msra.gmra.mrb[104].mxu0 %vm230_vm2, %v8160_v51 }
0x1468   :  { %13892 = vmatprep.mubr.msk.f32.mxu0 %vm14643_vm1, %v17213_v14 }
0x146d   :  { %v14429_v37 = vpop.eup %14428 }
0x146e   :  { %v7313_v47 = vmul.f32 %v14429_v37, %v16218_v18 }
0x1470   :  { %13848 = vmatmul.mubr.msk.f32.vlgmr.msra.gmra.mrb[94].mxu1 %vm230_vm2, %v7313_v47 }
0x1471   :  { %13856 = vmatpush3.msra.mxu1 %v16237_v6  ;;  %13857 = vmatprep.mubr.msk.f32.mxu1 %vm14643_vm1, %v17213_v14  ;;  %v8396_v6 = vpop.permute.xlu0 %8395 }
0x1472   :  { %13865 = vmatprep.subr.mxu1 %v17213_v14 }
0x14ab   :  { %v7297_v61 = vpop.xlane.xlu1 %7296 }
0x14ac   :  { %14430 = vrcp.f32 %v7297_v61 }
0x14af   :  { %v8318_v36 = vpop.permute.xlu1 %8317 }
0x14b0   :  { %13891 = vmatpush3.xpose.msk.msra.mxu0 %vm230_vm2, %v8318_v36 }
0x14b1   :  { %13900 = vmatprep.subr.mxu0 %v17213_v14 }
0x14b3   :  { %v8316_v21 = vpop.permute.xlu1 %8315 }
0x14b4   :  { %13893 = vmatmul.mubr.msk.f32.vlgmr.msra.gmra.mrb[106].mxu0 %vm230_vm2, %v8316_v21 }
0x14b5   :  { %13902 = vmatprep.mubr.msk.f32.mxu0 %vm14643_vm1, %v17213_v14 }
0x14b6   :  { %v14431_v18 = vpop.eup %14430 }
0x14b7   :  { %v8474_v32 = vpop.permute.xlu1 %8473  ;;  %v7315_v35 = vmul.f32 %v14431_v18, %v16239_v48  ;;  %v8394_v48 = vpop.permute.xlu0 %8393 }
0x14b8   :  { %13901 = vmatpush3.xpose.msk.msra.mxu0 %vm230_vm2, %v8474_v32 }
0x14b9   :  { %13858 = vmatmul.mubr.msk.f32.vlgmr.msra.gmra.mrb[96].mxu1 %vm230_vm2, %v7315_v35  ;;  %13910 = vmatprep.subr.mxu0 %v17213_v14 }
0x14ba   :  { %13866 = vmatpush3.xpose.msk.msra.mxu1 %vm230_vm2, %v16241_v5  ;;  %13867 = vmatprep.mubr.msk.f32.mxu1 %vm14643_vm1, %v17213_v14 }
0x14bb   :  { %v8472_v45 = vpop.permute.xlu1 %8471  ;;  %13875 = vmatprep.subr.mxu1 %v17213_v14 }
0x14bc   :  { %13903 = vmatmul.mubr.msk.f32.vlgmr.msra.gmra.mrb[108].mxu0 %vm230_vm2, %v8472_v45 }
0x14bd   :  { %13868 = vmatmul.mubr.msk.f32.vlgmr.msra.gmra.mrb[98].mxu1 %vm230_vm2, %v16245_v55  ;;  %13912 = vmatprep.mubr.msk.f32.mxu0 %vm14643_vm1, %v17213_v14 }
0x14be   :  { %13876 = vmatpush3.xpose.msk.msra.mxu1 %vm230_vm2, %v16247_v44  ;;  %13877 = vmatprep.mubr.msk.f32.mxu1 %vm14643_vm1, %v17213_v14 }
0x14bf   :  { %13885 = vmatprep.subr.mxu1 %v17213_v14 }
0x14c1   :  { %13878 = vmatmul.mubr.msk.f32.vlgmr.msra.gmra.mrb[100].mxu1 %vm230_vm2, %v8082_v20 }
0x14c2   :  { %13886 = vmatpush3.xpose.msk.msra.mxu1 %vm230_vm2, %v8240_v57  ;;  %13887 = vmatprep.mubr.msk.f32.mxu1 %vm14643_vm1, %v17213_v14 }
0x14c3   :  { %13895 = vmatprep.subr.mxu1 %v17213_v14 }
0x14c5   :  { %13888 = vmatmul.mubr.msk.f32.vlgmr.msra.gmra.mrb[102].mxu1 %vm230_vm2, %v8238_v56 }
0x14c6   :  { %13896 = vmatpush3.xpose.msk.msra.mxu1 %vm230_vm2, %v8396_v6  ;;  %13897 = vmatprep.mubr.msk.f32.mxu1 %vm14643_vm1, %v17213_v14 }
0x14c7   :  { %13905 = vmatprep.subr.mxu1 %v17213_v14 }
0x14c9   :  { %13898 = vmatmul.mubr.msk.f32.vlgmr.msra.gmra.mrb[104].mxu1 %vm230_vm2, %v8394_v48 }
0x14ca   :  { %13907 = vmatprep.mubr.msk.f32.mxu1 %vm14643_vm1, %v17213_v14 }
0x150e   :  { %v16341_v5 = vpop.f32.mrb[94].mxu0 }
0x150f   :  { %v13834_v39 = vpop.f32.mrb[95].mxu0 }
0x151f   :  { %v16343_v55 = vpop.f32.mrb[96].mxu0 }
0x1520   :  { %v13844_v44 = vpop.f32.mrb[97].mxu0 }
0x1523   :  { %v16345_v34 = vpop.f32.mrb[90].mxu1 }
0x1524   :  { %v16347_v38 = vpop.f32.mrb[98].mxu0  ;;  %v13829_v50 = vpop.f32.mrb[91].mxu1 }
0x1525   :  { %v13854_v27 = vpop.f32.mrb[99].mxu0 }
0x1527   :  { %v16349_v49 = vpop.f32.mrb[92].mxu1 }
0x1528   :  { %v16351_v42 = vpop.f32.mrb[100].mxu0  ;;  %v13839_v7 = vpop.f32.mrb[93].mxu1 }
0x1529   :  { %v13864_v60 = vpop.f32.mrb[101].mxu0 }
0x152f   :  { %v8077_v26 = vpop.f32.mrb[102].mxu0 }
0x1530   :  { %v8550_v30 = vmul.f32 0.35355338, %v8077_v26  ;;  %v13874_v59 = vpop.f32.mrb[103].mxu0 }
0x1532   :  { %v16354_v8 = vadd.f32 %v16111_v17, %v8550_v30 }
0x1534   :  { %v8568_v33 = vsel %vm7228_vm6, %v16354_v8, -inf }
0x1535   :  { %8569 = vmax.xlane.f32.xlu1 %v8568_v33 }
0x153a   :  { %v8233_v52 = vpop.f32.mrb[104].mxu0 }
0x153b   :  { %v13884_v40 = vpop.f32.mrb[105].mxu0  ;;  %v8552_v18 = vmul.f32 0.35355338, %v8233_v52 }
0x153d   :  { %v8560_v6 = vadd.f32 %v16132_v63, %v8552_v18 }
0x153f   :  { %v8574_v30 = vsel %vm7228_vm6, %v8560_v6, -inf }
0x1543   :  { %v16358_v41 = vpop.f32.mrb[94].mxu1 }
0x1544   :  { %v13849_v23 = vpop.f32.mrb[95].mxu1 }
0x1546   :  { %8653 = vrot.lane.b32.xlu1 %v16033_v31, %s14648_s25 }
0x1587   :  { %v8389_v4 = vpop.f32.mrb[106].mxu0 }
0x1588   :  { %v13894_v19 = vpop.f32.mrb[107].mxu0  ;;  %v8554_v48 = vmul.f32 0.35355338, %v8389_v4 }
0x158a   :  { %v8562_v7 = vadd.f32 %v16138_v13, %v8554_v48 }
0x158c   :  { %v16362_v54 = vpop.f32.mrb[96].mxu1  ;;  %v8580_v59 = vsel %vm7228_vm6, %v8562_v7, -inf }
0x158d   :  { %17231 = vst [vmem:[#allocation19_spill] sm:$0xff] %v16362_v54  ;;  %v13859_v51 = vpop.f32.mrb[97].mxu1 }
0x158f   :  { %v8545_v37 = vpop.f32.mrb[108].mxu0 }
0x1590   :  { %v7999_v17 = vpop.f32.mrb[98].mxu1  ;;  %v13904_v47 = vpop.f32.mrb[109].mxu0  ;;  %v8556_v60 = vmul.f32 0.35355338, %v8545_v37 }
0x1591   :  { %v8549_v61 = vmul.f32 0.35355338, %v7999_v17  ;;  %v13869_v36 = vpop.f32.mrb[99].mxu1 }
0x1592   :  { %v8564_v63 = vadd.f32 %v16142_v15, %v8556_v60 }
0x1593   :  { %v8557_v20 = vadd.f32 %v16116_v29, %v8549_v61 }
0x1594   :  { %v8155_v21 = vpop.f32.mrb[100].mxu1  ;;  %v8586_v33 = vsel %vm7228_vm6, %v8564_v63, -inf }
0x1595   :  { %v8551_v57 = vmul.f32 0.35355338, %v8155_v21  ;;  %v13879_v32 = vpop.f32.mrb[101].mxu1  ;;  %v8565_v35 = vsel %vm7228_vm6, %v8557_v20, -inf }
0x1596   :  { %8566 = vmax.xlane.f32.xlu0 %v8565_v35 }
0x1597   :  { %v8559_v45 = vadd.f32 %v16125_v10, %v8551_v57 }
0x1598   :  { %v8311_v56 = vpop.f32.mrb[102].mxu1 }
0x1599   :  { %v8553_v39 = vmul.f32 0.35355338, %v8311_v56  ;;  %v13889_v44 = vpop.f32.mrb[103].mxu1  ;;  %v8571_v50 = vsel %vm7228_vm6, %v8559_v45, -inf }
0x159a   :  { %8572 = vmax.xlane.f32.xlu0 %v8571_v50 }
0x159b   :  { %v8561_v29 = vadd.f32 %v16146_v12, %v8553_v39 }
0x159c   :  { %v8467_v27 = vpop.f32.mrb[104].mxu1 }
0x159d   :  { %v13899_v26 = vpop.f32.mrb[105].mxu1  ;;  %v8577_v10 = vsel %vm7228_vm6, %v8561_v29, -inf  ;;  %v8555_v40 = vmul.f32 0.35355338, %v8467_v27 }
0x159e   :  { %8575 = vmax.xlane.f32.xlu0 %v8574_v30  ;;  %8578 = vmax.xlane.f32.xlu1 %v8577_v10 }
0x159f   :  { %v16403_v23 = vadd.f32 %v16177_v3, %v8555_v40 }
0x15a1   :  { %v8583_v4 = vsel %vm7228_vm6, %v16403_v23, -inf }
0x15a2   :  { %8581 = vmax.xlane.f32.xlu0 %v8580_v59 }
0x15a6   :  { %8587 = vmax.xlane.f32.xlu0 %v8586_v33 }
0x15af   :  { %8805 = vrot.lane.b32.xlu1 %v16039_v53, %s14648_s25 }
0x15b3   :  { %8881 = vrot.lane.b32.xlu1 %v16043_v28, %s14648_s25 }
0x15b7   :  { %9033 = vrot.lane.b32.xlu1 %v16051_v58, %s14648_s25 }
0x15bb   :  { %9185 = vrot.lane.b32.xlu1 %v16059_v25, %s14648_s25 }
0x15bc   :  { %8729 = vrot.lane.b32.xlu0 %v16031_v22, %s14648_s25 }
0x15bf   :  { %9341 = vrot.lane.b32.xlu1 %v16031_v22, %s14649_s26 }
0x15c0   :  { %8957 = vrot.lane.b32.xlu0 %v16045_v11, %s14648_s25 }
0x15c2   :  { %v8570_v13 = vpop.xlane.xlu1 %8569 }
0x15c3   :  { %9339 = vrot.lane.b32.xlu1 %v16031_v22, %s14650_s27  ;;  %v8590_v12 = vsub.f32 %v16354_v8, %v8570_v13 }
0x15c4   :  { %9109 = vrot.lane.b32.xlu0 %v16053_v43, %s14648_s25 }
0x15c5   :  { %v8599_v52 = vmul.f32 1.442695, %v8590_v12 }
0x15c6   :  { %v8654_v15 = vpop.permute.xlu1 %8653 }
0x15c7   :  { %13906 = vmatpush3.msra.mxu1 %v8654_v15  ;;  %14432 = vpow2.f32 %v8599_v52 }
0x15c8   :  { %9263 = vrot.lane.b32.xlu0 %v16033_v31, %s14649_s26  ;;  %13915 = vmatprep.subr.mxu1 %v17213_v14 }
0x15cc   :  { %9261 = vrot.lane.b32.xlu0 %v16033_v31, %s14650_s27 }
0x15d0   :  { %9419 = vrot.lane.b32.xlu0 %v16039_v53, %s14649_s26 }
0x15d1   :  { %v16407_v19 = vpop.eup %14432 }
0x15d2   :  { %v8616_v51 = vsel %vm7228_vm6, %v16407_v19, 0.0 }
0x15e7   :  { %8584 = vmax.xlane.f32.xlu1 %v8583_v4 }
0x15ef   :  { %8617 = vadd.xlane.f32.xlu0 %v8616_v51 }
0x15f8   :  { %9497 = vrot.lane.b32.xlu1 %v16043_v28, %s14649_s26 }
0x1623   :  { %v8567_v8 = vpop.xlane.xlu0 %8566 }
0x1624   :  { %v8589_v37 = vsub.f32 %v8557_v20, %v8567_v8 }
0x1626   :  { %v8597_v17 = vmul.f32 1.442695, %v8589_v37 }
0x1627   :  { %v8573_v47 = vpop.xlane.xlu0 %8572 }
0x1628   :  { %14434 = vpow2.f32 %v8597_v17  ;;  %v8591_v3 = vsub.f32 %v8559_v45, %v8573_v47 }
0x162a   :  { %v8601_v61 = vmul.f32 1.442695, %v8591_v3 }
0x162b   :  { %v8579_v36 = vpop.xlane.xlu1 %8578  ;;  %v8576_v21 = vpop.xlane.xlu0 %8575 }
0x162c   :  { %14436 = vpow2.f32 %v8601_v61  ;;  %v8593_v18 = vsub.f32 %v8561_v29, %v8579_v36  ;;  %v8592_v57 = vsub.f32 %v8560_v6, %v8576_v21 }
0x162e   :  { %v8605_v32 = vmul.f32 1.442695, %v8593_v18  ;;  %v8603_v35 = vmul.f32 1.442695, %v8592_v57 }
0x162f   :  { %v8582_v56 = vpop.xlane.xlu0 %8581  ;;  %v8806_v15 = vpop.permute.xlu1 %8805 }
0x1630   :  { %14438 = vpow2.f32 %v8605_v32  ;;  %v8594_v48 = vsub.f32 %v8562_v7, %v8582_v56 }
0x1631   :  { %14440 = vpow2.f32 %v8603_v35 }
0x1632   :  { %v16413_v39 = vpop.eup %14434  ;;  %v8607_v44 = vmul.f32 1.442695, %v8594_v48 }
0x1633   :  { %v8588_v20 = vpop.xlane.xlu0 %8587  ;;  %v8613_v50 = vsel %vm7228_vm6, %v16413_v39, 0.0  ;;  %v8882_v12 = vpop.permute.xlu1 %8881 }
0x1634   :  { %14442 = vpow2.f32 %v8607_v44  ;;  %v8596_v45 = vsub.f32 %v8564_v63, %v8588_v20  ;;  %8614 = vadd.xlane.f32.xlu1 %v8613_v50 }
0x1636   :  { %v16417_v27 = vpop.eup %14436  ;;  %v8611_v29 = vmul.f32 1.442695, %v8596_v45 }
0x1637   :  { %v8730_v6 = vpop.permute.xlu0 %8729  ;;  %v8619_v60 = vsel %vm7228_vm6, %v16417_v27, 0.0  ;;  %v16442_v52 = vpop.permute.xlu1 %9033 }
0x1638   :  { %14444 = vpow2.f32 %v8611_v29  ;;  %8620 = vadd.xlane.f32.xlu1 %v8619_v60  ;;  %13911 = vmatpush3.msra.mxu0 %v8730_v6 }
0x1639   :  { %13920 = vmatprep.subr.mxu0 %v17213_v14 }
0x163a   :  { %v16422_v7 = vpop.eup %14438 }
0x163b   :  { %v16424_v26 = vpop.eup %14440  ;;  %v8625_v30 = vsel %vm7228_vm6, %v16422_v7, 0.0  ;;  %v16446_v40 = vpop.permute.xlu0 %8957 }
0x163c   :  { %8626 = vadd.xlane.f32.xlu1 %v8625_v30  ;;  %v8622_v10 = vsel %vm7228_vm6, %v16424_v26, 0.0  ;;  %v16450_v4 = vpop.permute.xlu1 %9185 }
0x163d   :  { %8623 = vadd.xlane.f32.xlu0 %v8622_v10 }
0x163e   :  { %v16430_v63 = vpop.eup %14442 }
0x163f   :  { %v8628_v59 = vsel %vm7228_vm6, %v16430_v63, 0.0  ;;  %v16452_v51 = vpop.permute.xlu0 %9109 }
0x1640   :  { %v16456_v8 = vpop.permute.xlu1 %9341 }
0x1641   :  { %8629 = vadd.xlane.f32.xlu0 %v8628_v59 }
0x1642   :  { %v16434_v33 = vpop.eup %14444 }
0x1643   :  { %v8634_v13 = vsel %vm7228_vm6, %v16434_v33, 0.0  ;;  %v16460_v37 = vpop.permute.xlu0 %9263 }
0x1644   :  { %v16464_v17 = vpop.permute.xlu1 %9339 }
0x1645   :  { %8635 = vadd.xlane.f32.xlu0 %v8634_v13 }
0x1647   :  { %v16466_v47 = vpop.permute.xlu0 %9261 }
0x164b   :  { %v16473_v21 = vpop.permute.xlu0 %9419 }
0x164d   :  { %9495 = vrot.lane.b32.xlu1 %v16043_v28, %s14650_s27 }
0x165b   :  { %9417 = vrot.lane.b32.xlu0 %v16039_v53, %s14650_s27 }
0x165f   :  { %9575 = vrot.lane.b32.xlu0 %v16045_v11, %s14649_s26 }
0x1663   :  { %9573 = vrot.lane.b32.xlu0 %v16045_v11, %s14650_s27 }
0x1667   :  { %9731 = vrot.lane.b32.xlu0 %v16053_v43, %s14649_s26 }
0x166b   :  { %9729 = vrot.lane.b32.xlu0 %v16053_v43, %s14650_s27 }
0x166f   :  { %10065 = vrot.lane.b32.xlu0 %v16031_v22, %s14651_s1 }
0x1673   :  { %10293 = vrot.lane.b32.xlu0 %v16045_v11, %s14651_s1 }
0x1674   :  { %v8585_v3 = vpop.xlane.xlu1 %8584 }
0x1675   :  { %v8595_v61 = vsub.f32 %v16403_v23, %v8585_v3 }
0x1677   :  { %v8609_v36 = vmul.f32 1.442695, %v8595_v61  ;;  %10445 = vrot.lane.b32.xlu0 %v16053_v43, %s14651_s1 }
0x1679   :  { %14446 = vpow2.f32 %v8609_v36 }
0x167b   :  { %10599 = vrot.lane.b32.xlu0 %v16033_v31, %s14652_s28 }
0x167c   :  { %v8618_v18 = vpop.xlane.xlu0 %8617 }
0x167d   :  { %14448 = vrcp.f32 %v8618_v18 }
0x167f   :  { %10597 = vrot.lane.b32.xlu0 %v16033_v31, %s14653_s29 }
0x1683   :  { %v16479_v57 = vpop.eup %14446 }
0x1684   :  { %v8631_v23 = vsel %vm7228_vm6, %v16479_v57, 0.0 }
0x1685   :  { %8632 = vadd.xlane.f32.xlu1 %v8631_v23 }
0x1687   :  { %v14449_v32 = vpop.eup %14448 }
0x1688   :  { %v8646_v35 = vmul.f32 %v14449_v32, %v16407_v19  ;;  %v9498_v19 = vpop.permute.xlu1 %9497 }
0x168a   :  { %13913 = vmatmul.mubr.msk.f32.vlgmr.msra.gmra.mrb[110].mxu0 %vm230_vm2, %v8646_v35 }
0x168b   :  { %13921 = vmatpush3.msra.mxu0 %v8882_v12  ;;  %13922 = vmatprep.mubr.msk.f32.mxu0 %vm14643_vm1, %v17213_v14 }
0x168c   :  { %13930 = vmatprep.subr.mxu0 %v17213_v14 }
0x1696   :  { %9653 = vrot.lane.b32.xlu1 %v16051_v58, %s14649_s26 }
0x169a   :  { %9651 = vrot.lane.b32.xlu1 %v16051_v58, %s14650_s27 }
0x169e   :  { %9809 = vrot.lane.b32.xlu1 %v16059_v25, %s14649_s26 }
0x16a2   :  { %9807 = vrot.lane.b32.xlu1 %v16059_v25, %s14650_s27 }
0x16a6   :  { %9989 = vrot.lane.b32.xlu1 %v16033_v31, %s14651_s1 }
0x16aa   :  { %10141 = vrot.lane.b32.xlu1 %v16039_v53, %s14651_s1 }
0x16ae   :  { %10217 = vrot.lane.b32.xlu1 %v16043_v28, %s14651_s1 }
0x16b2   :  { %10369 = vrot.lane.b32.xlu1 %v16051_v58, %s14651_s1 }
0x16b6   :  { %10521 = vrot.lane.b32.xlu1 %v16059_v25, %s14651_s1 }
0x16ba   :  { %10677 = vrot.lane.b32.xlu1 %v16031_v22, %s14652_s28 }
0x16be   :  { %10675 = vrot.lane.b32.xlu1 %v16031_v22, %s14653_s29 }
0x16c1   :  { %v8615_v56 = vpop.xlane.xlu1 %8614 }
0x16c2   :  { %14450 = vrcp.f32 %v8615_v56 }
0x16c5   :  { %v8621_v48 = vpop.xlane.xlu1 %8620 }
0x16c6   :  { %14452 = vrcp.f32 %v8621_v48 }
0x16c9   :  { %v8627_v44 = vpop.xlane.xlu1 %8626 }
0x16ca   :  { %14454 = vrcp.f32 %v8627_v44  ;;  %v8624_v20 = vpop.xlane.xlu0 %8623 }
0x16cb   :  { %14456 = vrcp.f32 %v8624_v20 }
0x16cc   :  { %v14451_v50 = vpop.eup %14450 }
0x16cd   :  { %v8645_v45 = vmul.f32 %v14451_v50, %v16413_v39 }
0x16ce   :  { %v8630_v29 = vpop.xlane.xlu0 %8629 }
0x16cf   :  { %14458 = vrcp.f32 %v8630_v29  ;;  %13908 = vmatmul.mubr.msk.f32.vlgmr.msra.gmra.mrb[106].mxu1 %vm230_vm2, %v8645_v45 }
0x16d0   :  { %v14453_v6 = vpop.eup %14452  ;;  %13916 = vmatpush3.msra.mxu1 %v8806_v15  ;;  %13917 = vmatprep.mubr.msk.f32.mxu1 %vm14643_vm1, %v17213_v14 }
0x16d1   :  { %13925 = vmatprep.subr.mxu1 %v17213_v14  ;;  %v8647_v60 = vmul.f32 %v14453_v6, %v16417_v27 }
0x16d2   :  { %v8636_v30 = vpop.xlane.xlu0 %8635 }
0x16d3   :  { %14460 = vrcp.f32 %v8636_v30  ;;  %13918 = vmatmul.mubr.msk.f32.vlgmr.msra.gmra.mrb[108].mxu1 %vm230_vm2, %v8647_v60 }
0x16d4   :  { %v14455_v10 = vpop.eup %14454  ;;  %13926 = vmatpush3.msra.mxu1 %v16446_v40  ;;  %13927 = vmatprep.mubr.msk.f32.mxu1 %vm14643_vm1, %v17213_v14 }
0x16d5   :  { %v14457_v39 = vpop.eup %14456  ;;  %13935 = vmatprep.subr.mxu1 %v17213_v14  ;;  %v8649_v59 = vmul.f32 %v14455_v10, %v16422_v7 }
0x16d6   :  { %v8648_v13 = vmul.f32 %v14457_v39, %v16424_v26  ;;  %v16608_v39 = vld [vmem:[#allocation2 + $0x1] sm:$0x1] }
0x16d7   :  { %13928 = vmatmul.mubr.msk.f32.vlgmr.msra.gmra.mrb[110].mxu1 %vm230_vm2, %v8649_v59 }
0x16d8   :  { %13923 = vmatmul.mubr.msk.f32.vlgmr.msra.gmra.mrb[112].mxu0 %vm230_vm2, %v8648_v13  ;;  %13936 = vmatpush3.msra.mxu1 %v16452_v51 }
0x16d9   :  { %v14459_v27 = vpop.eup %14458  ;;  %13931 = vmatpush3.msra.mxu0 %v16442_v52  ;;  %13932 = vmatprep.mubr.msk.f32.mxu0 %vm14643_vm1, %v17213_v14 }
0x16da   :  { %13940 = vmatprep.subr.mxu0 %v17213_v14  ;;  %v8650_v15 = vmul.f32 %v14459_v27, %v16430_v63  ;;  %13937 = vmatprep.mubr.msk.f32.mxu1 %vm14643_vm1, %v17213_v14  ;;  %v9496_v63 = vpop.permute.xlu1 %9495 }
0x16db   :  { %13945 = vmatprep.subr.mxu1 %v17213_v14 }
0x16dc   :  { %13933 = vmatmul.mubr.msk.f32.vlgmr.msra.gmra.mrb[114].mxu0 %vm230_vm2, %v8650_v15 }
0x16dd   :  { %v14461_v7 = vpop.eup %14460  ;;  %13941 = vmatpush3.msra.mxu0 %v16450_v4  ;;  %13942 = vmatprep.mubr.msk.f32.mxu0 %vm14643_vm1, %v17213_v14 }
0x16de   :  { %v8652_v26 = vmul.f32 %v14461_v7, %v16434_v33  ;;  %13950 = vmatprep.subr.mxu0 %v17213_v14  ;;  %v9418_v33 = vpop.permute.xlu0 %9417 }
0x16e0   :  { %13943 = vmatmul.mubr.msk.f32.vlgmr.msra.gmra.mrb[116].mxu0 %vm230_vm2, %v8652_v26 }
0x16e1   :  { %13952 = vmatprep.mubr.msk.f32.mxu0 %vm14643_vm1, %v17213_v14 }
0x16e2   :  { %v9576_v12 = vpop.permute.xlu0 %9575 }
0x16e4   :  { %13951 = vmatpush3.xpose.msk.msra.mxu0 %vm230_vm2, %v16456_v8 }
0x16e5   :  { %13960 = vmatprep.subr.mxu0 %v17213_v14 }
0x16e6   :  { %v9574_v52 = vpop.permute.xlu0 %9573 }
0x16e7   :  { %13953 = vmatmul.mubr.msk.f32.vlgmr.msra.gmra.mrb[118].mxu0 %vm230_vm2, %v16464_v17 }
0x16e8   :  { %13961 = vmatpush3.xpose.msk.msra.mxu0 %vm230_vm2, %v9498_v19  ;;  %13962 = vmatprep.mubr.msk.f32.mxu0 %vm14643_vm1, %v17213_v14 }
0x16e9   :  { %13970 = vmatprep.subr.mxu0 %v17213_v14 }
0x16ea   :  { %v9732_v51 = vpop.permute.xlu0 %9731 }
0x16eb   :  { %13963 = vmatmul.mubr.msk.f32.vlgmr.msra.gmra.mrb[120].mxu0 %vm230_vm2, %v9496_v63 }
0x16ec   :  { %13972 = vmatprep.mubr.msk.f32.mxu0 %vm14643_vm1, %v17213_v14 }
0x16ee   :  { %v9730_v3 = vpop.permute.xlu0 %9729 }
0x16f2   :  { %v10066_v23 = vpop.permute.xlu0 %10065 }
0x1712   :  { %v8633_v40 = vpop.xlane.xlu1 %8632 }
0x1713   :  { %14462 = vrcp.f32 %v8633_v40 }
0x1716   :  { %v9654_v4 = vpop.permute.xlu1 %9653 }
0x1717   :  { %13971 = vmatpush3.xpose.msk.msra.mxu0 %vm230_vm2, %v9654_v4 }
0x1718   :  { %13980 = vmatprep.subr.mxu0 %v17213_v14 }
0x171a   :  { %v9652_v8 = vpop.permute.xlu1 %9651 }
0x171b   :  { %13973 = vmatmul.mubr.msk.f32.vlgmr.msra.gmra.mrb[122].mxu0 %vm230_vm2, %v9652_v8 }
0x171c   :  { %13982 = vmatprep.mubr.msk.f32.mxu0 %vm14643_vm1, %v17213_v14 }
0x171d   :  { %v14463_v17 = vpop.eup %14462 }
0x171e   :  { %v9810_v61 = vpop.permute.xlu1 %9809  ;;  %v8651_v36 = vmul.f32 %v14463_v17, %v16479_v57  ;;  %v16617_v17 = vld [vmem:[#allocation2] sm:$0x1] }
0x171f   :  { %13981 = vmatpush3.xpose.msk.msra.mxu0 %vm230_vm2, %v9810_v61 }
0x1720   :  { %13938 = vmatmul.mubr.msk.f32.vlgmr.msra.gmra.mrb[112].mxu1 %vm230_vm2, %v8651_v36  ;;  %13990 = vmatprep.subr.mxu0 %v17213_v14  ;;  %v16620_v36 = vld [vmem:[#allocation2 + $0x3] sm:$0x1] }
0x1721   :  { %13946 = vmatpush3.xpose.msk.msra.mxu1 %vm230_vm2, %v16460_v37  ;;  %13947 = vmatprep.mubr.msk.f32.mxu1 %vm14643_vm1, %v17213_v14 }
0x1722   :  { %v9808_v18 = vpop.permute.xlu1 %9807  ;;  %13955 = vmatprep.subr.mxu1 %v17213_v14 }
0x1723   :  { %13983 = vmatmul.mubr.msk.f32.vlgmr.msra.gmra.mrb[124].mxu0 %vm230_vm2, %v9808_v18 }
0x1724   :  { %13991 = vmatpush3.msra.mxu0 %v10066_v23  ;;  %13948 = vmatmul.mubr.msk.f32.vlgmr.msra.gmra.mrb[114].mxu1 %vm230_vm2, %v16466_v47 }
0x1725   :  { %13956 = vmatpush3.xpose.msk.msra.mxu1 %vm230_vm2, %v16473_v21  ;;  %13957 = vmatprep.mubr.msk.f32.mxu1 %vm14643_vm1, %v17213_v14 }
0x1726   :  { %13965 = vmatprep.subr.mxu1 %v17213_v14  ;;  %13992 = vmatprep.mubr.msk.f32.mxu0 %vm14643_vm1, %v17213_v14  ;;  %v9990_v37 = vpop.permute.xlu1 %9989 }
0x1727   :  { %14000 = vmatprep.subr.mxu0 %v17213_v14 }
0x1728   :  { %13958 = vmatmul.mubr.msk.f32.vlgmr.msra.gmra.mrb[116].mxu1 %vm230_vm2, %v9418_v33 }
0x1729   :  { %13966 = vmatpush3.xpose.msk.msra.mxu1 %vm230_vm2, %v9576_v12  ;;  %13967 = vmatprep.mubr.msk.f32.mxu1 %vm14643_vm1, %v17213_v14 }
0x172a   :  { %13975 = vmatprep.subr.mxu1 %v17213_v14 }
0x172c   :  { %13968 = vmatmul.mubr.msk.f32.vlgmr.msra.gmra.mrb[118].mxu1 %vm230_vm2, %v9574_v52 }
0x172d   :  { %13976 = vmatpush3.xpose.msk.msra.mxu1 %vm230_vm2, %v9732_v51  ;;  %13977 = vmatprep.mubr.msk.f32.mxu1 %vm14643_vm1, %v17213_v14 }
0x172e   :  { %13985 = vmatprep.subr.mxu1 %v17213_v14 }
0x1730   :  { %13978 = vmatmul.mubr.msk.f32.vlgmr.msra.gmra.mrb[120].mxu1 %vm230_vm2, %v9730_v3 }
0x1731   :  { %13986 = vmatpush3.msra.mxu1 %v9990_v37  ;;  %13987 = vmatprep.mubr.msk.f32.mxu1 %vm14643_vm1, %v17213_v14 }
0x1732   :  { %13995 = vmatprep.subr.mxu1 %v17213_v14 }
0x175d   :  { %v16594_v47 = vpop.f32.mrb[110].mxu0 }
0x175e   :  { %v13914_v21 = vpop.f32.mrb[111].mxu0 }
0x17a2   :  { %v16596_v57 = vpop.f32.mrb[106].mxu1 }
0x17a3   :  { %v13909_v32 = vpop.f32.mrb[107].mxu1 }
0x17a6   :  { %v16598_v35 = vpop.f32.mrb[108].mxu1 }
0x17a7   :  { %v13919_v19 = vpop.f32.mrb[109].mxu1 }
0x17aa   :  { %v16600_v56 = vpop.f32.mrb[110].mxu1 }
0x17ab   :  { %v16602_v48 = vpop.f32.mrb[112].mxu0  ;;  %v13929_v44 = vpop.f32.mrb[111].mxu1 }
0x17ac   :  { %v13924_v20 = vpop.f32.mrb[113].mxu0  ;;  %v16624_v44 = vld [vmem:[#allocation2 + $0x2] sm:$0x1] }
0x17af   :  { %v16604_v50 = vpop.f32.mrb[114].mxu0 }
0x17b0   :  { %v13934_v45 = vpop.f32.mrb[115].mxu0 }
0x17b3   :  { %v16606_v29 = vpop.f32.mrb[116].mxu0 }
0x17b4   :  { %v13944_v6 = vpop.f32.mrb[117].mxu0 }
0x17ba   :  { %v9413_v60 = vpop.f32.mrb[118].mxu0 }
0x17bb   :  { %v9886_v30 = vmul.f32 0.35355338, %v9413_v60  ;;  %v13954_v10 = vpop.f32.mrb[119].mxu0 }
0x17bd   :  { %v16611_v59 = vadd.f32 %v16608_v39, %v9886_v30  ;;  %v16628_v30 = vld [vmem:[#allocation2 + $0x4] sm:$0x1] }
0x17be   :  { %v9569_v13 = vpop.f32.mrb[120].mxu0 }
0x17bf   :  { %v13964_v27 = vpop.f32.mrb[121].mxu0  ;;  %v9904_v15 = vsel %vm7228_vm6, %v16611_v59, -inf  ;;  %v9888_v4 = vmul.f32 0.35355338, %v9569_v13 }
0x17c0   :  { %9905 = vmax.xlane.f32.xlu1 %v9904_v15  ;;  %v16633_v27 = vld [vmem:[#allocation2 + $0x5] sm:$0x1] }
0x17c1   :  { %v9896_v18 = vadd.f32 %v16620_v36, %v9888_v4 }
0x17c3   :  { %v9910_v60 = vsel %vm7228_vm6, %v9896_v18, -inf }
0x17ee   :  { %v9725_v7 = vpop.f32.mrb[122].mxu0 }
0x17ef   :  { %v13974_v26 = vpop.f32.mrb[123].mxu0  ;;  %v9890_v19 = vmul.f32 0.35355338, %v9725_v7 }
0x17f1   :  { %v9898_v15 = vadd.f32 %v16633_v27, %v9890_v19 }
0x17f3   :  { %v16615_v63 = vpop.f32.mrb[112].mxu1 }
0x17f4   :  { %v13939_v33 = vpop.f32.mrb[113].mxu1 }
0x17f6   :  { %v9881_v12 = vpop.f32.mrb[124].mxu0 }
0x17f7   :  { %v9335_v52 = vpop.f32.mrb[114].mxu1  ;;  %v13984_v40 = vpop.f32.mrb[125].mxu0  ;;  %v9892_v7 = vmul.f32 0.35355338, %v9881_v12 }
0x17f8   :  { %v9885_v51 = vmul.f32 0.35355338, %v9335_v52  ;;  %v13949_v8 = vpop.f32.mrb[115].mxu1  ;;  %v16639_v40 = vld [vmem:[#allocation2 + $0x7] sm:$0x1]  ;;  %v16651_v12 = vpop.permute.xlu1 %10141 }
0x17f9   :  { %v16642_v4 = vadd.f32 %v16639_v40, %v9892_v7 }
0x17fa   :  { %v9893_v3 = vadd.f32 %v16617_v17, %v9885_v51  ;;  %v9916_v51 = vsel %vm7228_vm6, %v9898_v15, -inf }
0x17fb   :  { %v9491_v61 = vpop.f32.mrb[116].mxu1  ;;  %v9922_v8 = vsel %vm7228_vm6, %v16642_v4, -inf }
0x17fc   :  { %v9887_v23 = vmul.f32 0.35355338, %v9491_v61  ;;  %v13959_v37 = vpop.f32.mrb[117].mxu1  ;;  %v9901_v21 = vsel %vm7228_vm6, %v9893_v3, -inf  ;;  %v16653_v61 = vpop.permute.xlu1 %10217 }
0x17fd   :  { %9902 = vmax.xlane.f32.xlu0 %v9901_v21  ;;  %v16655_v37 = vld [vmem:[#allocation2 + $0x6] sm:$0x1] }
0x17fe   :  { %v9895_v20 = vadd.f32 %v16624_v44, %v9887_v23 }
0x17ff   :  { %v9647_v32 = vpop.f32.mrb[118].mxu1 }
0x1800   :  { %v9889_v45 = vmul.f32 0.35355338, %v9647_v32  ;;  %v13969_v6 = vpop.f32.mrb[119].mxu1  ;;  %v9907_v33 = vsel %vm7228_vm6, %v9895_v20, -inf  ;;  %v16660_v32 = vpop.permute.xlu1 %10369 }
0x1801   :  { %9911 = vmax.xlane.f32.xlu0 %v9910_v60 }
0x1802   :  { %v16631_v10 = vadd.f32 %v16628_v30, %v9889_v45 }
0x1803   :  { %v9803_v13 = vpop.f32.mrb[120].mxu1 }
0x1804   :  { %v13979_v26 = vpop.f32.mrb[121].mxu1  ;;  %v9913_v52 = vsel %vm7228_vm6, %v16631_v10, -inf  ;;  %v9891_v23 = vmul.f32 0.35355338, %v9803_v13  ;;  %v16664_v45 = vpop.permute.xlu1 %10521 }
0x1805   :  { %9908 = vmax.xlane.f32.xlu0 %v9907_v33  ;;  %9914 = vmax.xlane.f32.xlu1 %v9913_v52 }
0x1806   :  { %v16658_v21 = vadd.f32 %v16655_v37, %v9891_v23 }
0x1808   :  { %v9919_v19 = vsel %vm7228_vm6, %v16658_v21, -inf  ;;  %v16666_v6 = vpop.permute.xlu1 %10677 }
0x1809   :  { %9917 = vmax.xlane.f32.xlu0 %v9916_v51  ;;  %v16672_v51 = vpop.permute.xlu0 %10293 }
0x180c   :  { %v16668_v60 = vpop.permute.xlu1 %10675 }
0x180d   :  { %9923 = vmax.xlane.f32.xlu0 %v9922_v8  ;;  %v16674_v8 = vpop.permute.xlu0 %10445 }
0x1811   :  { %v16676_v23 = vpop.permute.xlu0 %10599 }
0x1816   :  { %10833 = vrot.lane.b32.xlu1 %v16043_v28, %s14652_s28 }
0x1823   :  { %10755 = vrot.lane.b32.xlu0 %v16039_v53, %s14652_s28 }
0x183a   :  { %9920 = vmax.xlane.f32.xlu1 %v9919_v19  ;;  %v16678_v19 = vpop.permute.xlu0 %10597 }
0x184d   :  { %v9906_v7 = vpop.xlane.xlu1 %9905 }
0x184e   :  { %v9926_v13 = vsub.f32 %v16611_v59, %v9906_v7 }
0x1850   :  { %v9935_v26 = vmul.f32 1.442695, %v9926_v13 }
0x1852   :  { %14464 = vpow2.f32 %v9935_v26 }
0x185c   :  { %v14465_v33 = vpop.eup %14464 }
0x185d   :  { %v9952_v52 = vsel %vm7228_vm6, %v14465_v33, 0.0 }
0x185e   :  { %9953 = vadd.xlane.f32.xlu0 %v9952_v52 }
0x188a   :  { %v9903_v14 = vpop.xlane.xlu0 %9902 }
0x188b   :  { %v9925_v9 = vsub.f32 %v9893_v3, %v9903_v14 }
0x188d   :  { %v9933_v16 = vmul.f32 1.442695, %v9925_v9 }
0x188e   :  { %v9912_v46 = vpop.xlane.xlu0 %9911 }
0x188f   :  { %14466 = vpow2.f32 %v9933_v16  ;;  %v9928_v59 = vsub.f32 %v9896_v18, %v9912_v46 }
0x1891   :  { %v9939_v7 = vmul.f32 1.442695, %v9928_v59 }
0x1892   :  { %v9909_v13 = vpop.xlane.xlu0 %9908 }
0x1893   :  { %14468 = vpow2.f32 %v9939_v7  ;;  %v9927_v26 = vsub.f32 %v9895_v20, %v9909_v13 }
0x1895   :  { %v9937_v1 = vmul.f32 1.442695, %v9927_v26 }
0x1896   :  { %v9918_v52 = vpop.xlane.xlu0 %9917 }
0x1897   :  { %v9930_v0 = vsub.f32 %v9898_v15, %v9918_v52  ;;  %14470 = vpow2.f32 %v9937_v1 }
0x1899   :  { %v14467_v62 = vpop.eup %14466  ;;  %v9943_v24 = vmul.f32 1.442695, %v9930_v0 }
0x189a   :  { %v9949_v2 = vsel %vm7228_vm6, %v14467_v62, 0.0  ;;  %v9924_v0 = vpop.xlane.xlu0 %9923 }
0x189b   :  { %14472 = vpow2.f32 %v9943_v24  ;;  %9950 = vadd.xlane.f32.xlu1 %v9949_v2  ;;  %v9915_v2 = vpop.xlane.xlu1 %9914  ;;  %v9932_v3 = vsub.f32 %v16642_v4, %v9924_v0 }
0x189c   :  { %v9929_v24 = vsub.f32 %v16631_v10, %v9915_v2  ;;  %v17232_v2 = vmov 0.0  }
0x189d   :  { %v16681_v54 = vpop.eup %14468  ;;  %v9947_v20 = vmul.f32 1.442695, %v9932_v3 }
0x189e   :  { %v9958_v14 = vsel %vm7228_vm6, %v16681_v54, 0.0  ;;  %v9941_v18 = vmul.f32 1.442695, %v9929_v24  ;;  %v16707_v10 = vpop.permute.xlu0 %10755 }
0x189f   :  { %9959 = vadd.xlane.f32.xlu0 %v9958_v14  ;;  %v16711_v26 = vpop.permute.xlu1 %10833 }
0x18a0   :  { %14474 = vpow2.f32 %v9941_v18 }
0x18a1   :  { %v16685_v46 = vpop.eup %14470  ;;  %14476 = vpow2.f32 %v9947_v20 }
0x18a2   :  { %v9955_v16 = vsel %vm7228_vm6, %v16685_v46, 0.0 }
0x18a3   :  { %9956 = vadd.xlane.f32.xlu1 %v9955_v16 }
0x18a5   :  { %v16689_v9 = vpop.eup %14472 }
0x18a6   :  { %v9964_v1 = vsel %vm7228_vm6, %v16689_v9, 0.0 }
0x18a7   :  { %9965 = vadd.xlane.f32.xlu0 %v9964_v1 }
0x18aa   :  { %v16699_v15 = vpop.eup %14474 }
0x18ab   :  { %v16701_v59 = vpop.eup %14476  ;;  %v9961_v7 = vsel %vm7228_vm6, %v16699_v15, 0.0 }
0x18ac   :  { %v9970_v13 = vsel %vm7228_vm6, %v16701_v59, 0.0 }
0x18b4   :  { %10831 = vrot.lane.b32.xlu1 %v16043_v28, %s14653_s29 }
0x18bd   :  { %10753 = vrot.lane.b32.xlu0 %v16039_v53, %s14653_s29 }
0x18c7   :  { %v9921_v52 = vpop.xlane.xlu1 %9920 }
0x18c8   :  { %v9931_v1 = vsub.f32 %v16658_v21, %v9921_v52 }
0x18ca   :  { %v9945_v24 = vmul.f32 1.442695, %v9931_v1 }
0x18d8   :  { %9962 = vadd.xlane.f32.xlu1 %v9961_v7 }
0x18dc   :  { %9971 = vadd.xlane.f32.xlu0 %v9970_v13 }
0x18e9   :  { %10989 = vrot.lane.b32.xlu1 %v16051_v58, %s14652_s28 }
0x18eb   :  { %v9954_v4 = vpop.xlane.xlu0 %9953 }
0x18ec   :  { %14478 = vrcp.f32 %v9954_v4 }
0x18ed   :  { %14480 = vpow2.f32 %v9945_v24 }
0x18f2   :  { %10911 = vrot.lane.b32.xlu0 %v16045_v11, %s14652_s28 }
0x18f6   :  { %v14479_v14 = vpop.eup %14478  ;;  %10909 = vrot.lane.b32.xlu0 %v16045_v11, %s14653_s29 }
0x18f7   :  { %v9982_v16 = vmul.f32 %v14479_v14, %v14465_v33  ;;  %v16727_v33 = vpop.eup %14480 }
0x18f8   :  { %v9967_v21 = vsel %vm7228_vm6, %v16727_v33, 0.0 }
0x18f9   :  { %13993 = vmatmul.mubr.msk.f32.vlgmr.msra.gmra.mrb[126].mxu0 %vm230_vm2, %v9982_v16 }
0x18fa   :  { %14001 = vmatpush3.msra.mxu0 %v16653_v61  ;;  %11067 = vrot.lane.b32.xlu0 %v16053_v43, %s14652_s28 }
0x18fb   :  { %14002 = vmatprep.mubr.msk.f32.mxu0 %vm14643_vm1, %v17232_v2  ;;  %14010 = vmatprep.subr.mxu0 %v17232_v2 }
0x18fe   :  { %11065 = vrot.lane.b32.xlu0 %v16053_v43, %s14653_s29 }
0x190d   :  { %9968 = vadd.xlane.f32.xlu1 %v9967_v21 }
0x191e   :  { %10987 = vrot.lane.b32.xlu1 %v16051_v58, %s14653_s29 }
0x1922   :  { %11145 = vrot.lane.b32.xlu1 %v16059_v25, %s14652_s28 }
0x1926   :  { %11143 = vrot.lane.b32.xlu1 %v16059_v25, %s14653_s29 }
0x1928   :  { %v9951_v61 = vpop.xlane.xlu1 %9950 }
0x1929   :  { %14482 = vrcp.f32 %v9951_v61 }
0x192c   :  { %v9960_v0 = vpop.xlane.xlu0 %9959 }
0x192d   :  { %14484 = vrcp.f32 %v9960_v0 }
0x1930   :  { %v9957_v3 = vpop.xlane.xlu1 %9956 }
0x1931   :  { %14486 = vrcp.f32 %v9957_v3 }
0x1933   :  { %v14483_v18 = vpop.eup %14482 }
0x1934   :  { %v9981_v20 = vmul.f32 %v14483_v18, %v14467_v62  ;;  %v9966_v7 = vpop.xlane.xlu0 %9965 }
0x1935   :  { %14488 = vrcp.f32 %v9966_v7 }
0x1936   :  { %13988 = vmatmul.mubr.msk.f32.vlgmr.msra.gmra.mrb[122].mxu1 %vm230_vm2, %v9981_v20 }
0x1937   :  { %v14485_v13 = vpop.eup %14484  ;;  %13996 = vmatpush3.msra.mxu1 %v16651_v12  ;;  %13997 = vmatprep.mubr.msk.f32.mxu1 %vm14643_vm1, %v17232_v2 }
0x1938   :  { %v9984_v4 = vmul.f32 %v14485_v13, %v16681_v54  ;;  %14005 = vmatprep.subr.mxu1 %v17232_v2  ;;  %v10832_v54 = vpop.permute.xlu1 %10831 }
0x193a   :  { %14003 = vmatmul.mubr.msk.f32.vlgmr.msra.gmra.mrb[128].mxu0 %vm230_vm2, %v9984_v4 }
0x193b   :  { %14011 = vmatpush3.msra.mxu0 %v16660_v32  ;;  %14012 = vmatprep.mubr.msk.f32.mxu0 %vm14643_vm1, %v17232_v2  ;;  %v14487_v62 = vpop.eup %14486  ;;  %v10754_v32 = vpop.permute.xlu0 %10753 }
0x193c   :  { %14020 = vmatprep.subr.mxu0 %v17232_v2  ;;  %v9983_v52 = vmul.f32 %v14487_v62, %v16685_v46 }
0x193e   :  { %13998 = vmatmul.mubr.msk.f32.vlgmr.msra.gmra.mrb[124].mxu1 %vm230_vm2, %v9983_v52 }
0x193f   :  { %v14489_v12 = vpop.eup %14488  ;;  %14006 = vmatpush3.msra.mxu1 %v16672_v51  ;;  %14007 = vmatprep.mubr.msk.f32.mxu1 %vm14643_vm1, %v17232_v2 }
0x1940   :  { %v9986_v14 = vmul.f32 %v14489_v12, %v16689_v9  ;;  %14015 = vmatprep.subr.mxu1 %v17232_v2 }
0x1942   :  { %14013 = vmatmul.mubr.msk.f32.vlgmr.msra.gmra.mrb[130].mxu0 %vm230_vm2, %v9986_v14 }
0x1943   :  { %14021 = vmatpush3.msra.mxu0 %v16664_v45  ;;  %14022 = vmatprep.mubr.msk.f32.mxu0 %vm14643_vm1, %v17232_v2 }
0x1944   :  { %14030 = vmatprep.subr.mxu0 %v17232_v2 }
0x1965   :  { %v9963_v46 = vpop.xlane.xlu1 %9962 }
0x1966   :  { %14490 = vrcp.f32 %v9963_v46 }
0x1969   :  { %v9972_v9 = vpop.xlane.xlu0 %9971  ;;  %v10990_v45 = vpop.permute.xlu1 %10989 }
0x196a   :  { %14492 = vrcp.f32 %v9972_v9 }
0x1970   :  { %v14491_v51 = vpop.eup %14490 }
0x1971   :  { %v9985_v16 = vmul.f32 %v14491_v51, %v16699_v15 }
0x1973   :  { %14008 = vmatmul.mubr.msk.f32.vlgmr.msra.gmra.mrb[126].mxu1 %vm230_vm2, %v9985_v16 }
0x1974   :  { %v14493_v1 = vpop.eup %14492  ;;  %14016 = vmatpush3.msra.mxu1 %v16674_v8  ;;  %14017 = vmatprep.mubr.msk.f32.mxu1 %vm14643_vm1, %v17232_v2 }
0x1975   :  { %v9988_v24 = vmul.f32 %v14493_v1, %v16701_v59  ;;  %14025 = vmatprep.subr.mxu1 %v17232_v2  ;;  %v10912_v59 = vpop.permute.xlu0 %10911 }
0x1977   :  { %14023 = vmatmul.mubr.msk.f32.vlgmr.msra.gmra.mrb[132].mxu0 %vm230_vm2, %v9988_v24 }
0x1978   :  { %14031 = vmatpush3.xpose.msk.msra.mxu0 %vm230_vm2, %v16666_v6  ;;  %14032 = vmatprep.mubr.msk.f32.mxu0 %vm14643_vm1, %v17232_v2 }
0x1979   :  { %14040 = vmatprep.subr.mxu0 %v17232_v2  ;;  %v10910_v61 = vpop.permute.xlu0 %10909 }
0x197b   :  { %14033 = vmatmul.mubr.msk.f32.vlgmr.msra.gmra.mrb[134].mxu0 %vm230_vm2, %v16668_v60 }
0x197c   :  { %14041 = vmatpush3.xpose.msk.msra.mxu0 %vm230_vm2, %v16711_v26  ;;  %14042 = vmatprep.mubr.msk.f32.mxu0 %vm14643_vm1, %v17232_v2 }
0x197d   :  { %14050 = vmatprep.subr.mxu0 %v17232_v2 }
0x197f   :  { %14043 = vmatmul.mubr.msk.f32.vlgmr.msra.gmra.mrb[136].mxu0 %vm230_vm2, %v10832_v54 }
0x1980   :  { %14051 = vmatpush3.xpose.msk.msra.mxu0 %vm230_vm2, %v10990_v45  ;;  %14052 = vmatprep.mubr.msk.f32.mxu0 %vm14643_vm1, %v17232_v2 }
0x1981   :  { %14060 = vmatprep.subr.mxu0 %v17232_v2 }
0x199a   :  { %v9969_v6 = vpop.xlane.xlu1 %9968 }
0x199b   :  { %14494 = vrcp.f32 %v9969_v6 }
0x199e   :  { %v10988_v60 = vpop.permute.xlu1 %10987 }
0x199f   :  { %14053 = vmatmul.mubr.msk.f32.vlgmr.msra.gmra.mrb[138].mxu0 %vm230_vm2, %v10988_v60 }
0x19a0   :  { %14062 = vmatprep.mubr.msk.f32.mxu0 %vm14643_vm1, %v17232_v2 }
0x19a2   :  { %v11146_v8 = vpop.permute.xlu1 %11145 }
0x19a3   :  { %14061 = vmatpush3.xpose.msk.msra.mxu0 %vm230_vm2, %v11146_v8 }
0x19a4   :  { %14070 = vmatprep.subr.mxu0 %v17232_v2 }
0x19a5   :  { %v14495_v15 = vpop.eup %14494 }
0x19a6   :  { %v9987_v26 = vmul.f32 %v14495_v15, %v16727_v33  ;;  %v11144_v21 = vpop.permute.xlu1 %11143 }
0x19a7   :  { %14063 = vmatmul.mubr.msk.f32.vlgmr.msra.gmra.mrb[140].mxu0 %vm230_vm2, %v11144_v21 }
0x19a8   :  { %14018 = vmatmul.mubr.msk.f32.vlgmr.msra.gmra.mrb[128].mxu1 %vm230_vm2, %v9987_v26  ;;  %14072 = vmatprep.mubr.msk.f32.mxu0 %vm14643_vm1, %v17232_v2 }
0x19a9   :  { %14026 = vmatpush3.xpose.msk.msra.mxu1 %vm230_vm2, %v16676_v23  ;;  %14027 = vmatprep.mubr.msk.f32.mxu1 %vm14643_vm1, %v17232_v2  ;;  %v11068_v23 = vpop.permute.xlu0 %11067 }
0x19aa   :  { %14035 = vmatprep.subr.mxu1 %v17232_v2 }
0x19ac   :  { %14028 = vmatmul.mubr.msk.f32.vlgmr.msra.gmra.mrb[130].mxu1 %vm230_vm2, %v16678_v19 }
0x19ad   :  { %14036 = vmatpush3.xpose.msk.msra.mxu1 %vm230_vm2, %v16707_v10  ;;  %14037 = vmatprep.mubr.msk.f32.mxu1 %vm14643_vm1, %v17232_v2  ;;  %v11066_v19 = vpop.permute.xlu0 %11065 }
0x19ae   :  { %14045 = vmatprep.subr.mxu1 %v17232_v2 }
0x19b0   :  { %14038 = vmatmul.mubr.msk.f32.vlgmr.msra.gmra.mrb[132].mxu1 %vm230_vm2, %v10754_v32 }
0x19b1   :  { %14046 = vmatpush3.xpose.msk.msra.mxu1 %vm230_vm2, %v10912_v59  ;;  %14047 = vmatprep.mubr.msk.f32.mxu1 %vm14643_vm1, %v17232_v2 }
0x19b2   :  { %14055 = vmatprep.subr.mxu1 %v17232_v2 }
0x19b4   :  { %14048 = vmatmul.mubr.msk.f32.vlgmr.msra.gmra.mrb[134].mxu1 %vm230_vm2, %v10910_v61 }
0x19b5   :  { %14056 = vmatpush3.xpose.msk.msra.mxu1 %vm230_vm2, %v11068_v23  ;;  %14057 = vmatprep.mubr.msk.f32.mxu1 %vm14643_vm1, %v17232_v2 }
0x19b6   :  { %14065 = vmatprep.subr.mxu1 %v17232_v2 }
0x19b8   :  { %14058 = vmatmul.mubr.msk.f32.vlgmr.msra.gmra.mrb[136].mxu1 %vm230_vm2, %v11066_v19 }
0x19b9   :  { %14067 = vmatprep.mubr.msk.f32.mxu1 %vm14643_vm1, %v17232_v2 }
0x19cc   :  { %v16820_v10 = vpop.f32.mrb[126].mxu0 }
0x19cd   :  { %v13994_v33 = vpop.f32.mrb[127].mxu0 }
0x1a09   :  { %v16822_v0 = vpop.f32.mrb[122].mxu1 }
0x1a0a   :  { %v13989_v3 = vpop.f32.mrb[123].mxu1 }
0x1a0d   :  { %v16824_v18 = vpop.f32.mrb[128].mxu0 }
0x1a0e   :  { %v14004_v20 = vpop.f32.mrb[129].mxu0 }
0x1a11   :  { %v16826_v7 = vpop.f32.mrb[124].mxu1 }
0x1a12   :  { %v13999_v13 = vpop.f32.mrb[125].mxu1 }
0x1a15   :  { %v16828_v4 = vpop.f32.mrb[130].mxu0 }
0x1a16   :  { %v14014_v62 = vpop.f32.mrb[131].mxu0 }
0x1a46   :  { %v16830_v52 = vpop.f32.mrb[126].mxu1 }
0x1a47   :  { %v14009_v12 = vpop.f32.mrb[127].mxu1 }
0x1a4a   :  { %v16832_v14 = vpop.f32.mrb[132].mxu0 }
0x1a4b   :  { %v14024_v54 = vpop.f32.mrb[133].mxu0 }
0x1a4e   :  { %v10749_v32 = vpop.f32.mrb[134].mxu0 }
0x1a4f   :  { %v11222_v46 = vmul.f32 0.35355338, %v10749_v32  ;;  %v14034_v9 = vpop.f32.mrb[135].mxu0 }
0x1a51   :  { %v11230_v51 = vadd.f32 %v16608_v39, %v11222_v46 }
0x1a52   :  { %v10905_v16 = vpop.f32.mrb[136].mxu0 }
0x1a53   :  { %v14044_v1 = vpop.f32.mrb[137].mxu0  ;;  %v11240_v24 = vsel %vm7228_vm6, %v11230_v51, -inf  ;;  %v11224_v19 = vmul.f32 0.35355338, %v10905_v16 }
0x1a54   :  { %11241 = vmax.xlane.f32.xlu1 %v11240_v24 }
0x1a55   :  { %v11232_v62 = vadd.f32 %v16620_v36, %v11224_v19 }
0x1a57   :  { %v11246_v1 = vsel %vm7228_vm6, %v11232_v62, -inf }
0x1a72   :  { %v11061_v45 = vpop.f32.mrb[138].mxu0 }
0x1a73   :  { %v14054_v6 = vpop.f32.mrb[139].mxu0  ;;  %v11226_v54 = vmul.f32 0.35355338, %v11061_v45 }
0x1a75   :  { %v11234_v24 = vadd.f32 %v16633_v27, %v11226_v54 }
0x1a7a   :  { %v11217_v60 = vpop.f32.mrb[140].mxu0 }
0x1a7b   :  { %v16836_v8 = vpop.f32.mrb[128].mxu1  ;;  %v14064_v15 = vpop.f32.mrb[141].mxu0  ;;  %v11228_v6 = vmul.f32 0.35355338, %v11217_v60 }
0x1a7c   :  { %v14019_v59 = vpop.f32.mrb[129].mxu1 }
0x1a7d   :  { %v11236_v45 = vadd.f32 %v16639_v40, %v11228_v6 }
0x1a7f   :  { %v10671_v26 = vpop.f32.mrb[130].mxu1 }
0x1a80   :  { %v11221_v21 = vmul.f32 0.35355338, %v10671_v26  ;;  %v14029_v61 = vpop.f32.mrb[131].mxu1  ;;  %v11252_v26 = vsel %vm7228_vm6, %v11234_v24, -inf }
0x1a82   :  { %v11229_v23 = vadd.f32 %v16617_v17, %v11221_v21  ;;  %v11258_v21 = vsel %vm7228_vm6, %v11236_v45, -inf }
0x1a83   :  { %v10827_v33 = vpop.f32.mrb[132].mxu1 }
0x1a84   :  { %v11223_v39 = vmul.f32 0.35355338, %v10827_v33  ;;  %v14039_v3 = vpop.f32.mrb[133].mxu1  ;;  %v11237_v20 = vsel %vm7228_vm6, %v11229_v23, -inf }
0x1a85   :  { %11238 = vmax.xlane.f32.xlu0 %v11237_v20 }
0x1a86   :  { %v11231_v13 = vadd.f32 %v16624_v44, %v11223_v39 }
0x1a87   :  { %v10983_v12 = vpop.f32.mrb[134].mxu1 }
0x1a88   :  { %v11225_v32 = vmul.f32 0.35355338, %v10983_v12  ;;  %v14049_v46 = vpop.f32.mrb[135].mxu1  ;;  %v11243_v9 = vsel %vm7228_vm6, %v11231_v13, -inf }
0x1a89   :  { %11244 = vmax.xlane.f32.xlu0 %v11243_v9 }
0x1a8a   :  { %v11233_v17 = vadd.f32 %v16628_v30, %v11225_v32 }
0x1a8b   :  { %v11139_v16 = vpop.f32.mrb[136].mxu1 }
0x1a8c   :  { %v11227_v15 = vmul.f32 0.35355338, %v11139_v16  ;;  %v14059_v59 = vpop.f32.mrb[137].mxu1  ;;  %v11249_v44 = vsel %vm7228_vm6, %v11233_v17, -inf }
0x1a8d   :  { %11247 = vmax.xlane.f32.xlu0 %v11246_v1  ;;  %11250 = vmax.xlane.f32.xlu1 %v11249_v44 }
0x1a8e   :  { %v11235_v36 = vadd.f32 %v16655_v37, %v11227_v15 }
0x1a90   :  { %v11255_v30 = vsel %vm7228_vm6, %v11235_v36, -inf }
0x1a91   :  { %11253 = vmax.xlane.f32.xlu0 %v11252_v26  ;;  %11256 = vmax.xlane.f32.xlu1 %v11255_v30 }
0x1a95   :  { %11259 = vmax.xlane.f32.xlu0 %v11258_v21 }
0x1aa2   :  { %11325 = vrot.lane.b32.xlu1 %v16033_v31, %s14654_s30 }
0x1aa6   :  { %11477 = vrot.lane.b32.xlu1 %v16039_v53, %s14654_s30 }
0x1aaa   :  { %11553 = vrot.lane.b32.xlu1 %v16043_v28, %s14654_s30 }
0x1aab   :  { %11401 = vrot.lane.b32.xlu0 %v16031_v22, %s14654_s30 }
0x1aae   :  { %11705 = vrot.lane.b32.xlu1 %v16051_v58, %s14654_s30 }
0x1aaf   :  { %11629 = vrot.lane.b32.xlu0 %v16045_v11, %s14654_s30 }
0x1ae1   :  { %v11242_v27 = vpop.xlane.xlu1 %11241 }
0x1ae2   :  { %v11262_v40 = vsub.f32 %v11230_v51, %v11242_v27 }
0x1ae4   :  { %v11271_v37 = vmul.f32 1.442695, %v11262_v40 }
0x1ae6   :  { %14496 = vpow2.f32 %v11271_v37 }
0x1af0   :  { %v16864_v31 = vpop.eup %14496 }
0x1af1   :  { %v11288_v53 = vsel %vm7228_vm6, %v16864_v31, 0.0 }
0x1af2   :  { %11289 = vadd.xlane.f32.xlu0 %v11288_v53 }
0x1b12   :  { %v11239_v28 = vpop.xlane.xlu0 %11238 }
0x1b13   :  { %v11261_v60 = vsub.f32 %v11229_v23, %v11239_v28 }
0x1b15   :  { %v11269_v61 = vmul.f32 1.442695, %v11261_v60 }
0x1b16   :  { %v11245_v22 = vpop.xlane.xlu0 %11244 }
0x1b17   :  { %14498 = vpow2.f32 %v11269_v61  ;;  %v11263_v19 = vsub.f32 %v11231_v13, %v11245_v22 }
0x1b19   :  { %v11273_v58 = vmul.f32 1.442695, %v11263_v19 }
0x1b1a   :  { %v11251_v33 = vpop.xlane.xlu1 %11250  ;;  %v11248_v39 = vpop.xlane.xlu0 %11247 }
0x1b1b   :  { %14500 = vpow2.f32 %v11273_v58  ;;  %v11265_v11 = vsub.f32 %v11233_v17, %v11251_v33  ;;  %v11264_v51 = vsub.f32 %v11232_v62, %v11248_v39 }
0x1b1d   :  { %v11277_v3 = vmul.f32 1.442695, %v11265_v11  ;;  %v11275_v20 = vmul.f32 1.442695, %v11264_v51 }
0x1b1e   :  { %v11257_v12 = vpop.xlane.xlu1 %11256  ;;  %v11254_v54 = vpop.xlane.xlu0 %11253 }
0x1b1f   :  { %14502 = vpow2.f32 %v11277_v3  ;;  %v11267_v32 = vsub.f32 %v11235_v36, %v11257_v12  ;;  %v11266_v46 = vsub.f32 %v11234_v24, %v11254_v54 }
0x1b20   :  { %14504 = vpow2.f32 %v11275_v20 }
0x1b21   :  { %v16868_v9 = vpop.eup %14498  ;;  %v11281_v23 = vmul.f32 1.442695, %v11267_v32  ;;  %v11279_v16 = vmul.f32 1.442695, %v11266_v46 }
0x1b22   :  { %v11326_v1 = vpop.permute.xlu1 %11325  ;;  %v11260_v13 = vpop.xlane.xlu0 %11259  ;;  %v11285_v6 = vsel %vm7228_vm6, %v16868_v9, 0.0 }
0x1b23   :  { %14506 = vpow2.f32 %v11281_v23  ;;  %v11268_v17 = vsub.f32 %v11236_v45, %v11260_v13  ;;  %14066 = vmatpush3.msra.mxu1 %v11326_v1  ;;  %11286 = vadd.xlane.f32.xlu1 %v11285_v6  ;;  %v12989_v23 = vld [vmem:[%s17198_s4 + $0x20] sm:$0xff]  ;;  %v14656_v6 = vmov 0.0|0.0  }
0x1b24   :  { %14508 = vpow2.f32 %v11279_v16  ;;  %14075 = vmatprep.subr.mxu1 %v17232_v2  ;;  %v12990_v16 = vld [vmem:[%s17198_s4 + $0x28] sm:$0xff] }
0x1b25   :  { %v16873_v62 = vpop.eup %14500  ;;  %v11283_v24 = vmul.f32 1.442695, %v11268_v17  ;;  %v14195_v1 = vpack.c.bf16 %v12990_v16, %v12989_v23 }
0x1b26   :  { %v11402_v15 = vpop.permute.xlu0 %11401  ;;  %v11291_v59 = vsel %vm7228_vm6, %v16873_v62, 0.0 }
0x1b27   :  { %14510 = vpow2.f32 %v11283_v24  ;;  %11292 = vadd.xlane.f32.xlu1 %v11291_v59  ;;  %14071 = vmatpush3.msra.mxu0 %v11402_v15  ;;  %v12991_v15 = vld [vmem:[%s17198_s4 + $0x30] sm:$0xff]  ;;  %v12992_v59 = vld [vmem:[%s17198_s4 + $0x38] sm:$0xff] }
0x1b28   :  { %14080 = vmatprep.subr.mxu0 %v17232_v2 }
0x1b29   :  { %v16878_v44 = vpop.eup %14502 }
0x1b2a   :  { %v16880_v36 = vpop.eup %14504  ;;  %v11297_v45 = vsel %vm7228_vm6, %v16878_v44, 0.0 }
0x1b2b   :  { %11298 = vadd.xlane.f32.xlu1 %v11297_v45  ;;  %v11294_v26 = vsel %vm7228_vm6, %v16880_v36, 0.0 }
0x1b2c   :  { %11295 = vadd.xlane.f32.xlu0 %v11294_v26 }
0x1b2d   :  { %v16886_v30 = vpop.eup %14506 }
0x1b2e   :  { %v16888_v21 = vpop.eup %14508  ;;  %v11303_v27 = vsel %vm7228_vm6, %v16886_v30, 0.0 }
0x1b2f   :  { %11304 = vadd.xlane.f32.xlu1 %v11303_v27  ;;  %v11300_v40 = vsel %vm7228_vm6, %v16888_v21, 0.0 }
0x1b30   :  { %11301 = vadd.xlane.f32.xlu0 %v11300_v40 }
0x1b31   :  { %v16894_v37 = vpop.eup %14510 }
0x1b32   :  { %v11306_v53 = vsel %vm7228_vm6, %v16894_v37, 0.0 }
0x1b34   :  { %11307 = vadd.xlane.f32.xlu0 %v11306_v53 }
0x1b40   :  { %11857 = vrot.lane.b32.xlu1 %v16059_v25, %s14654_s30 }
0x1b44   :  { %11945 = vrot.lane.b32.xlu1 %v16598_v35, %s17233_s3 }
0x1b48   :  { %11941 = vrot.lane.b32.xlu1 %v16596_v57, %s17233_s3 }
0x1b4a   :  { %11781 = vrot.lane.b32.xlu0 %v16053_v43, %s14654_s30  ;;  %v11630_v43 = vpop.permute.xlu0 %11629 }
0x1b4c   :  { %11977 = vrot.lane.b32.xlu1 %v16826_v7, %s17234_s18 }
0x1b4e   :  { %11943 = vrot.lane.b32.xlu0 %v16594_v47, %s17233_s3  ;;  %v11478_v47 = vpop.permute.xlu1 %11477 }
0x1b50   :  { %11949 = vrot.lane.b32.xlu1 %v16600_v56, %s17233_s3 }
0x1b52   :  { %11975 = vrot.lane.b32.xlu0 %v16820_v10, %s17234_s18  ;;  %v11554_v56 = vpop.permute.xlu1 %11553 }
0x1b54   :  { %11979 = vrot.lane.b32.xlu1 %v16824_v18, %s17234_s18 }
0x1b56   :  { %11947 = vrot.lane.b32.xlu0 %v16602_v48, %s17233_s3  ;;  %v11706_v48 = vpop.permute.xlu1 %11705 }
0x1b58   :  { %11951 = vrot.lane.b32.xlu1 %v16604_v50, %s17233_s3 }
0x1b5a   :  { %11973 = vrot.lane.b32.xlu0 %v16822_v0, %s17234_s18 }
0x1b5c   :  { %11953 = vrot.lane.b32.xlu1 %v16615_v63, %s17233_s3 }
0x1b5e   :  { %11981 = vrot.lane.b32.xlu0 %v16830_v52, %s17234_s18 }
0x1b60   :  { %11985 = vrot.lane.b32.xlu1 %v16836_v8, %s17234_s18 }
0x1b62   :  { %11983 = vrot.lane.b32.xlu0 %v16828_v4, %s17234_s18 }
0x1b64   :  { %11987 = vrot.lane.b32.xlu1 %v16832_v14, %s17234_s18 }
0x1b66   :  { %11955 = vrot.lane.b32.xlu0 %v16606_v29, %s17233_s3 }
0x1b7f   :  { %v11290_v25 = vpop.xlane.xlu0 %11289 }
0x1b80   :  { %14512 = vrcp.f32 %v11290_v25 }
0x1b8a   :  { %v14513_v57 = vpop.eup %14512 }
0x1b8b   :  { %v11318_v35 = vmul.f32 %v14513_v57, %v16864_v31 }
0x1b8d   :  { %14073 = vmatmul.mubr.msk.f32.vlgmr.msra.gmra.mrb[142].mxu0 %vm230_vm2, %v11318_v35 }
0x1b8e   :  { %14081 = vmatpush3.msra.mxu0 %v11554_v56  ;;  %14082 = vmatprep.mubr.msk.f32.mxu0 %vm14643_vm1, %v17232_v2 }
0x1b8f   :  { %14090 = vmatprep.subr.mxu0 %v17232_v2 }
0x1bb0   :  { %v11287_v50 = vpop.xlane.xlu1 %11286 }
0x1bb1   :  { %14514 = vrcp.f32 %v11287_v50 }
0x1bb4   :  { %v11293_v29 = vpop.xlane.xlu1 %11292 }
0x1bb5   :  { %14516 = vrcp.f32 %v11293_v29 }
0x1bb8   :  { %v11299_v63 = vpop.xlane.xlu1 %11298 }
0x1bb9   :  { %14518 = vrcp.f32 %v11299_v63  ;;  %v11296_v10 = vpop.xlane.xlu0 %11295 }
0x1bba   :  { %14520 = vrcp.f32 %v11296_v10 }
0x1bbb   :  { %v14515_v0 = vpop.eup %14514 }
0x1bbc   :  { %v11317_v18 = vmul.f32 %v14515_v0, %v16868_v9  ;;  %v11305_v7 = vpop.xlane.xlu1 %11304 }
0x1bbd   :  { %14522 = vrcp.f32 %v11305_v7  ;;  %v11302_v4 = vpop.xlane.xlu0 %11301 }
0x1bbe   :  { %14524 = vrcp.f32 %v11302_v4  ;;  %14068 = vmatmul.mubr.msk.f32.vlgmr.msra.gmra.mrb[138].mxu1 %vm230_vm2, %v11317_v18 }
0x1bbf   :  { %v14517_v52 = vpop.eup %14516  ;;  %14076 = vmatpush3.msra.mxu1 %v11478_v47  ;;  %14077 = vmatprep.mubr.msk.f32.mxu1 %vm14643_vm1, %v17232_v2 }
0x1bc0   :  { %v11319_v14 = vmul.f32 %v14517_v52, %v16873_v62  ;;  %14085 = vmatprep.subr.mxu1 %v17232_v2  ;;  %v11858_v11 = vpop.permute.xlu1 %11857 }
0x1bc1   :  { %v11308_v8 = vpop.xlane.xlu0 %11307 }
0x1bc2   :  { %14526 = vrcp.f32 %v11308_v8  ;;  %14078 = vmatmul.mubr.msk.f32.vlgmr.msra.gmra.mrb[140].mxu1 %vm230_vm2, %v11319_v14 }
0x1bc3   :  { %v14519_v31 = vpop.eup %14518  ;;  %14086 = vmatpush3.msra.mxu1 %v11630_v43  ;;  %14087 = vmatprep.mubr.msk.f32.mxu1 %vm14643_vm1, %v17232_v2 }
0x1bc4   :  { %v14521_v28 = vpop.eup %14520  ;;  %v11321_v60 = vmul.f32 %v14519_v31, %v16878_v44  ;;  %14095 = vmatprep.subr.mxu1 %v17232_v2  ;;  %v14198_v44 = vpack.c.bf16 %v12992_v59, %v12991_v15  ;;  %v11946_v40 = vpop.permute.xlu1 %11945 }
0x1bc5   :  { %v11320_v61 = vmul.f32 %v14521_v28, %v16880_v36  ;;  %v11782_v22 = vpop.permute.xlu0 %11781 }
0x1bc6   :  { %14088 = vmatmul.mubr.msk.f32.vlgmr.msra.gmra.mrb[142].mxu1 %vm230_vm2, %v11321_v60 }
0x1bc7   :  { %v14523_v19 = vpop.eup %14522  ;;  %14083 = vmatmul.mubr.msk.f32.vlgmr.msra.gmra.mrb[144].mxu0 %vm230_vm2, %v11320_v61  ;;  %14096 = vmatpush3.msra.mxu1 %v11782_v22 }
0x1bc8   :  { %v14525_v58 = vpop.eup %14524  ;;  %v11323_v33 = vmul.f32 %v14523_v19, %v16886_v30  ;;  %14091 = vmatpush3.msra.mxu0 %v11706_v48  ;;  %14092 = vmatprep.mubr.msk.f32.mxu0 %vm14643_vm1, %v17232_v2 }
0x1bc9   :  { %v11322_v39 = vmul.f32 %v14525_v58, %v16888_v21  ;;  %14097 = vmatprep.mubr.msk.f32.mxu1 %vm14643_vm1, %v17232_v2  ;;  %14100 = vmatprep.subr.mxu0 %v17232_v2  ;;  %v11944_v53 = vpop.permute.xlu0 %11943 }
0x1bca   :  { %14098 = vmatmul.mubr.msk.f32.vlgmr.msra.gmra.mrb[144].mxu1 %vm230_vm2, %v11323_v33  ;;  %14194 = vmatprep.subr.bf16.mxu1 %v14656_v6  ;;  %v12030_v7 = vsel %vm230_vm2, %v16341_v5, %v11944_v53  ;;  %v12031_v33 = vsel %vm230_vm2, %v16349_v49, %v11946_v40 }
0x1bcb   :  { %14093 = vmatmul.mubr.msk.f32.vlgmr.msra.gmra.mrb[146].mxu0 %vm230_vm2, %v11322_v39  ;;  %14113 = vmatprep.mubr.msk.f32.mxu1 %vm14643_vm1, %v17232_v2 }
0x1bcc   :  { %v14527_v51 = vpop.eup %14526  ;;  %14101 = vmatpush3.msra.mxu0 %v11858_v11  ;;  %14102 = vmatprep.mubr.msk.f32.mxu0 %vm14643_vm1, %v17232_v2 }
0x1bcd   :  { %v11324_v3 = vmul.f32 %v14527_v51, %v16894_v37  ;;  %14200 = vmatprep.subr.bf16.mxu0 %v14656_v6  ;;  %14196 = vmatpush3.bf16.msra.mxu1 %v14195_v1  ;;  %v11942_v37 = vpop.permute.xlu1 %11941  ;;  %v11976_v25 = vpop.permute.xlu0 %11975 }
0x1bce   :  { %14197 = vmatprep.subr.bf16.mxu1 %v14656_v6  ;;  %v12038_v4 = vsel %vm5716_vm3, %v12030_v7, %v11976_v25  ;;  %v12029_v8 = vsel %vm230_vm2, %v16345_v34, %v11942_v37  ;;  %v12994_v37 = vld [vmem:[%s17199_s5 + $0x1] ss:$0 sm:$0xff]  ;;  %v17239_v7 = vld [vmem:[#allocation14_spill] sm:$0xff] }
0x1bcf   :  { %14103 = vmatmul.mubr.msk.f32.vlgmr.msra.gmra.mrb[148].mxu0 %vm230_vm2, %v11324_v3 }
0x1bd0   :  { %14124 = vmatprep.mubr.msk.f32.mxu0 %vm14643_vm1, %v17232_v2 }
0x1bd1   :  { %14199 = vmatpush3.bf16.msra.mxu1 %v14198_v44  ;;  %v11978_v43 = vpop.permute.xlu1 %11977  ;;  %v11948_v57 = vpop.permute.xlu0 %11947 }
0x1bd2   :  { %14206 = vmatprep.subr.bf16.mxu1 %v14656_v6  ;;  %v12032_v5 = vsel %vm230_vm2, %v16343_v55, %v11948_v57  ;;  %v12039_v11 = vsel %vm5716_vm3, %v12031_v33, %v11978_v43 }
0x1bd5   :  { %v11950_v47 = vpop.permute.xlu1 %11949  ;;  %v11974_v56 = vpop.permute.xlu0 %11973 }
0x1bd6   :  { %v12037_v31 = vsel %vm5716_vm3, %v12029_v8, %v11974_v56  ;;  %v12033_v34 = vsel %vm230_vm2, %v16358_v41, %v11950_v47 }
0x1bd9   :  { %v11980_v35 = vpop.permute.xlu1 %11979  ;;  %v11982_v50 = vpop.permute.xlu0 %11981 }
0x1bda   :  { %v12040_v39 = vsel %vm5716_vm3, %v12032_v5, %v11980_v35  ;;  %v12041_v51 = vsel %vm5716_vm3, %v12033_v34, %v11982_v50  ;;  %v17244_v5 = vld [vmem:[#allocation18_spill] sm:$0xff] }
0x1bdd   :  { %v11952_v48 = vpop.permute.xlu1 %11951  ;;  %v11984_v63 = vpop.permute.xlu0 %11983 }
0x1bde   :  { %v12034_v49 = vsel %vm230_vm2, %v16347_v38, %v11952_v48 }
0x1be1   :  { %v11954_v29 = vpop.permute.xlu1 %11953  ;;  %v11956_v0 = vpop.permute.xlu0 %11955 }
0x1be5   :  { %v11986_v10 = vpop.permute.xlu1 %11985 }
0x1be9   :  { %v11988_v52 = vpop.permute.xlu1 %11987 }
0x1c60   :  { %v11473_v20 = vpop.f32.mrb[142].mxu0 }
0x1c61   :  { %12007 = vrot.lane.b32.xlu0 %v11473_v20, %s17235_s21  ;;  %v14074_v12 = vpop.f32.mrb[143].mxu0 }
0x1c91   :  { %v11397_v54 = vpop.f32.mrb[138].mxu1 }
0x1c92   :  { %v14069_v32 = vpop.f32.mrb[139].mxu1  ;;  %12005 = vrot.lane.b32.xlu1 %v11397_v54, %s17235_s21 }
0x1c93   :  { %v12042_v32 = vsel %vm5716_vm3, %v12034_v49, %v11984_v63  ;;  %v17237_v63 = vld [vmem:[#allocation12_spill] sm:$0xff] }
0x1c95   :  { %v11549_v46 = vpop.f32.mrb[140].mxu1 }
0x1c96   :  { %v14079_v9 = vpop.f32.mrb[141].mxu1 }
0x1c99   :  { %v11701_v13 = vpop.f32.mrb[142].mxu1 }
0x1c9a   :  { %v11625_v17 = vpop.f32.mrb[144].mxu0  ;;  %12013 = vrot.lane.b32.xlu1 %v11701_v13, %s17235_s21  ;;  %v14089_v62 = vpop.f32.mrb[143].mxu1 }
0x1c9b   :  { %12011 = vrot.lane.b32.xlu0 %v11625_v17, %s17235_s21  ;;  %v14084_v24 = vpop.f32.mrb[145].mxu0  ;;  %v12036_v17 = vsel %vm230_vm2, %v16351_v42, %v11956_v0  ;;  %v17238_v0 = vld [vmem:[#allocation13_spill] sm:$0xff] }
0x1c9c   :  { %v17236_v24 = vld [vmem:[#allocation19_spill] sm:$0xff]  ;;  %v12044_v59 = vsel %vm5716_vm3, %v12036_v17, %v11988_v52 }
0x1c9d   :  { %v11853_v36 = vpop.f32.mrb[144].mxu1  ;;  %v12035_v15 = vsel %vm230_vm2, %v17236_v24, %v11954_v29 }
0x1c9e   :  { %v11777_v45 = vpop.f32.mrb[146].mxu0  ;;  %v14099_v26 = vpop.f32.mrb[145].mxu1  ;;  %v12043_v44 = vsel %vm5716_vm3, %v12035_v15, %v11986_v10 }
0x1c9f   :  { %12009 = vrot.lane.b32.xlu0 %v11549_v46, %s17235_s21  ;;  %v14094_v30 = vpop.f32.mrb[147].mxu0 }
0x1ca2   :  { %v11929_v21 = vpop.f32.mrb[148].mxu0 }
0x1ca3   :  { %12015 = vrot.lane.b32.xlu0 %v11777_v45, %s17235_s21  ;;  %12019 = vrot.lane.b32.xlu1 %v11929_v21, %s17235_s21  ;;  %v14104_v27 = vpop.f32.mrb[149].mxu0 }
0x1ca7   :  { %12017 = vrot.lane.b32.xlu0 %v11853_v36, %s17235_s21 }
0x1cd3   :  { %v12008_v18 = vpop.permute.xlu0 %12007 }
0x1cd4   :  { %v12046_v14 = vsel %vm5725_vm4, %v12038_v4, %v12008_v18  ;;  %v17240_v4 = vld [vmem:[#allocation15_spill] sm:$0xff] }
0x1cd5   :  { %v12074_v28 = vrot.slane %v12046_v14, 7  ;;  %v17241_v14 = vld [vmem:[#allocation11_spill] sm:$0xff] }
0x1d04   :  { %v12006_v60 = vpop.permute.xlu1 %12005 }
0x1d05   :  { %v12045_v61 = vsel %vm5725_vm4, %v12037_v31, %v12006_v60  ;;  %v17242_v31 = vld [vmem:[#allocation16_spill] sm:$0xff] }
0x1d06   :  { %v12076_v22 = vsel %vm12075_vm7, %v12074_v28, %v12045_v61 }
0x1d0c   :  { %v12014_v58 = vpop.permute.xlu1 %12013 }
0x1d0d   :  { %v12012_v19 = vpop.permute.xlu0 %12011  ;;  %v12049_v12 = vsel %vm5725_vm4, %v12041_v51, %v12014_v58 }
0x1d0e   :  { %v12048_v3 = vsel %vm5725_vm4, %v12040_v39, %v12012_v19  ;;  %v12083_v46 = vrot.slane %v12049_v12, 4 }
0x1d0f   :  { %v12080_v41 = vrot.slane %v12048_v3, 5 }
0x1d11   :  { %v12010_v20 = vpop.permute.xlu0 %12009 }
0x1d12   :  { %v12047_v55 = vsel %vm5725_vm4, %v12039_v11, %v12010_v20 }
0x1d13   :  { %v12077_v54 = vrot.slane %v12047_v55, 6 }
0x1d15   :  { %v12079_v9 = vsel %vm12078_vm8, %v12077_v54, %v12076_v22  ;;  %v12016_v23 = vpop.permute.xlu0 %12015  ;;  %v12020_v1 = vpop.permute.xlu1 %12019  ;;  %v17243_v22 = vld [vmem:[#allocation17_spill] sm:$0xff] }
0x1d16   :  { %v12082_v16 = vsel %vm12081_vm9, %v12080_v41, %v12079_v9  ;;  %v12050_v13 = vsel %vm5725_vm4, %v12042_v32, %v12016_v23  ;;  %v12052_v36 = vsel %vm5725_vm4, %v12044_v59, %v12020_v1 }
0x1d17   :  { %v12085_v62 = vsel %vm12084_vm10, %v12083_v46, %v12082_v16  ;;  %v12086_v38 = vrot.slane %v12050_v13, 3  ;;  %v12092_v42 = vrot.slane %v12052_v36, 1 }
0x1d19   :  { %v12088_v45 = vsel %vm12087_vm11, %v12086_v38, %v12085_v62  ;;  %v12018_v26 = vpop.permute.xlu0 %12017 }
0x1d1a   :  { %v12051_v30 = vsel %vm5725_vm4, %v12043_v44, %v12018_v26 }
0x1d1b   :  { %v12089_v21 = vrot.slane %v12051_v30, 2 }
0x1d1d   :  { %v12091_v27 = vsel %vm12090_vm12, %v12089_v21, %v12088_v45 }
0x1d1e   :  { %v12094_v40 = vsel %vm12093_vm13, %v12092_v42, %v12091_v27 }
0x1d1f   :  { %14114 = vmatmul.mubr.msk.f32.vlgmr.msra.gmra.mrb[146].mxu1 %vm97_vm0, %v12094_v40 }
0x1d20   :  { %14143 = vmatprep.mubr.msk.f32.mxu1 %vm14643_vm1, %v17232_v2 }
0x1df2   :  { %v12163_v53 = vpop.f32.mrb[146].mxu1 }
0x1df3   :  { %v12164_v43 = vadd.f32 %v12994_v37, %v12163_v53  ;;  %v14115_v25 = vpop.f32.mrb[147].mxu1 }
0x1df5   :  { %v12168_v47 = vrot.slane %v12164_v43, 1  ;;  %v12169_v57 = vrot.slane %v12164_v43, 2  ;;  %v12170_v35 = vrot.slane %v12164_v43, 3  ;;  %v12171_v56 = vrot.slane %v12164_v43, 4 }
0x1df6   :  { %v12172_v48 = vrot.slane %v12164_v43, 5  ;;  %v12173_v50 = vrot.slane %v12164_v43, 6  ;;  %v12174_v29 = vrot.slane %v12164_v43, 7  ;;  %v12183_v8 = vadd.f32 %v12164_v43, %v17241_v14  ;;  %v12336_v14 = vld [vmem:[#allocation5 + $0x20] sm:$0xff] }
0x1df7   :  { %v12184_v10 = vadd.f32 %v12168_v47, %v17237_v63  ;;  %v12185_v18 = vadd.f32 %v12169_v57, %v17238_v0  ;;  %v12186_v2 = vadd.f32 %v12170_v35, %v17239_v7  ;;  %v12187_v52 = vadd.f32 %v12171_v56, %v17240_v4 }
0x1df8   :  { %v12188_v28 = vadd.f32 %v12172_v48, %v17242_v31  ;;  %v12189_v19 = vadd.f32 %v12173_v50, %v17243_v22  ;;  %v12190_v58 = vadd.f32 %v12174_v29, %v17244_v5  ;;  %v12338_v31 = vld [vmem:[#allocation5 + $0x30] sm:$0xff]  ;;  %v13003_v22 = vld [vmem:[%s17202_s8 + $0x40] sm:$0xff]  ;;  %v13005_v5 = vld [vmem:[%s17202_s8 + $0x50] sm:$0xff] }
0x1df9   :  { %v12203_v60 = vrot.slane %v12184_v10, 7  ;;  %v12205_v61 = vrot.slane %v12185_v18, 6  ;;  %v12207_v34 = vrot.slane %v12186_v2, 5  ;;  %v12209_v11 = vrot.slane %v12187_v52, 4 }
0x1dfa   :  { %v12211_v3 = vrot.slane %v12188_v28, 3  ;;  %v12213_v12 = vrot.slane %v12189_v19, 2  ;;  %v12215_v54 = vrot.slane %v12190_v58, 1 }
0x1dfb   :  { %v12204_v33 = vsel %vm12075_vm7, %v12203_v60, %v12183_v8  ;;  %v12339_v60 = vld [vmem:[#allocation5 + $0x38] sm:$0xff] }
0x1dfc   :  { %v12206_v39 = vsel %vm12078_vm8, %v12205_v61, %v12204_v33  ;;  %v14204_v61 = vpack.c.bf16 %v12339_v60, %v12338_v31  ;;  %v13006_v33 = vld [vmem:[%s17202_s8 + $0x58] sm:$0xff]  ;;  %v13009_v31 = vld [vmem:[%s17202_s8 + $0x70] sm:$0xff] }
0x1dfd   :  { %v12208_v51 = vsel %vm12081_vm9, %v12207_v34, %v12206_v39  ;;  %v14210_v34 = vpack.c.bf16 %v13006_v33, %v13005_v5  ;;  %v13007_v39 = vld [vmem:[%s17202_s8 + $0x60] sm:$0xff] }
0x1dfe   :  { %v12210_v20 = vsel %vm12084_vm10, %v12209_v11, %v12208_v51  ;;  %v13008_v11 = vld [vmem:[%s17202_s8 + $0x68] sm:$0xff]  ;;  %v13012_v33 = vld [vmem:[%s17203_s9 + $0x1] ss:$0 sm:$0xff] }
0x1dff   :  { %v12212_v55 = vsel %vm12087_vm11, %v12211_v3, %v12210_v20  ;;  %v14213_v51 = vpack.c.bf16 %v13008_v11, %v13007_v39 }
0x1e00   :  { %v12214_v49 = vsel %vm12090_vm12, %v12213_v12, %v12212_v55 }
0x1e01   :  { %v12216_v41 = vsel %vm12093_vm13, %v12215_v54, %v12214_v49  ;;  %v12998_v54 = vld [vmem:[%s17204_s10 + $0x2] ss:$0 sm:$0xff] }
0x1e02   :  { %v12218_v32 = vsel %vm97_vm0, %v12216_v41, 0.0 }
0x1e03   :  { %12219 = vadd.xlane.f32.xlu0 %v12218_v32 }
0x1e90   :  { %v12220_v46 = vpop.xlane.xlu0 %12219 }
0x1e91   :  { %v12221_v9 = vmul.f32 0.03125, %v12220_v46 }
0x1e93   :  { %v12223_v23 = vrot.slane %v12221_v9, 1  ;;  %v12224_v16 = vrot.slane %v12221_v9, 2  ;;  %v12225_v1 = vrot.slane %v12221_v9, 3  ;;  %v12226_v13 = vrot.slane %v12221_v9, 4 }
0x1e94   :  { %v12227_v17 = vrot.slane %v12221_v9, 5  ;;  %v12228_v62 = vrot.slane %v12221_v9, 6  ;;  %v12229_v38 = vrot.slane %v12221_v9, 7  ;;  %v17055_v24 = vsub.f32 %v12183_v8, %v12221_v9  ;;  %v12337_v8 = vld [vmem:[#allocation5 + $0x28] sm:$0xff] }
0x1e95   :  { %v17057_v15 = vsub.f32 %v12184_v10, %v12223_v23  ;;  %v17059_v59 = vsub.f32 %v12185_v18, %v12224_v16  ;;  %v17061_v44 = vsub.f32 %v12186_v2, %v12225_v1  ;;  %v17063_v36 = vsub.f32 %v12187_v52, %v12226_v13 }
0x1e96   :  { %v17065_v45 = vsub.f32 %v12188_v28, %v12227_v17  ;;  %v17067_v26 = vsub.f32 %v12189_v19, %v12228_v62  ;;  %v17069_v30 = vsub.f32 %v12190_v58, %v12229_v38  ;;  %v12246_v37 = vmul.f32 %v17055_v24, %v17055_v24  ;;  %v13004_v19 = vld [vmem:[%s17202_s8 + $0x48] sm:$0xff] }
0x1e97   :  { %v12247_v21 = vmul.f32 %v17057_v15, %v17057_v15  ;;  %v12248_v42 = vmul.f32 %v17059_v59, %v17059_v59  ;;  %v12249_v27 = vmul.f32 %v17061_v44, %v17061_v44  ;;  %v12250_v40 = vmul.f32 %v17063_v36, %v17063_v36 }
0x1e98   :  { %v12251_v53 = vmul.f32 %v17065_v45, %v17065_v45  ;;  %v12252_v47 = vmul.f32 %v17067_v26, %v17067_v26  ;;  %v12253_v57 = vmul.f32 %v17069_v30, %v17069_v30  ;;  %v14201_v28 = vpack.c.bf16 %v12337_v8, %v12336_v14 }
0x1e99   :  { %v12262_v43 = vrot.slane %v12247_v21, 7  ;;  %v12264_v25 = vrot.slane %v12248_v42, 6  ;;  %v12266_v56 = vrot.slane %v12249_v27, 5  ;;  %v12268_v50 = vrot.slane %v12250_v40, 4 }
0x1e9a   :  { %v12270_v63 = vrot.slane %v12251_v53, 3  ;;  %v12272_v0 = vrot.slane %v12252_v47, 2  ;;  %v12274_v7 = vrot.slane %v12253_v57, 1  ;;  %14202 = vmatpush3.bf16.msra.mxu0 %v14201_v28  ;;  %v14207_v58 = vpack.c.bf16 %v13004_v19, %v13003_v22  ;;  %v13010_v28 = vld [vmem:[%s17202_s8 + $0x78] sm:$0xff] }
0x1e9b   :  { %v12263_v35 = vsel %vm12075_vm7, %v12262_v43, %v12246_v37  ;;  %14203 = vmatprep.subr.bf16.mxu0 %v14656_v6  ;;  %v14216_v60 = vpack.c.bf16 %v13010_v28, %v13009_v31 }
0x1e9c   :  { %v12265_v48 = vsel %vm12078_vm8, %v12264_v25, %v12263_v35  ;;  %14208 = vmatpush3.bf16.msra.mxu1 %v14207_v58 }
0x1e9d   :  { %v12267_v29 = vsel %vm12081_vm9, %v12266_v56, %v12265_v48  ;;  %14209 = vmatprep.subr.bf16.mxu1 %v14656_v6 }
0x1e9e   :  { %v12269_v10 = vsel %vm12084_vm10, %v12268_v50, %v12267_v29  ;;  %14205 = vmatpush3.bf16.msra.mxu0 %v14204_v61  ;;  %v13001_v61 = vld [vmem:[%s17201_s7 + $0x1] ss:$0 sm:$0xff] }
0x1e9f   :  { %v12271_v18 = vsel %vm12087_vm11, %v12270_v63, %v12269_v10 }
0x1ea0   :  { %v12273_v2 = vsel %vm12090_vm12, %v12272_v0, %v12271_v18  ;;  %14211 = vmatpush3.bf16.msra.mxu1 %v14210_v34 }
0x1ea1   :  { %v12275_v4 = vsel %vm12093_vm13, %v12274_v7, %v12273_v2  ;;  %14212 = vmatprep.subr.bf16.mxu1 %v14656_v6 }
0x1ea2   :  { %v12277_v52 = vsel %vm97_vm0, %v12275_v4, 0.0 }
0x1ea3   :  { %12278 = vadd.xlane.f32.xlu1 %v12277_v52 }
0x1ea4   :  { %14214 = vmatpush3.bf16.msra.mxu1 %v14213_v51 }
0x1ea5   :  { %14215 = vmatprep.subr.bf16.mxu1 %v14656_v6 }
0x1ea8   :  { %14217 = vmatpush3.bf16.msra.mxu1 %v14216_v60 }
0x1f30   :  { %v12279_v3 = vpop.xlane.xlu1 %12278 }
0x1f31   :  { %v12280_v20 = vmul.f32 0.03125, %v12279_v3 }
0x1f33   :  { %v12281_v12 = vadd.f32 1e-08, %v12280_v20 }
0x1f35   :  { %14528 = vrsqrt.f32 %v12281_v12 }
0x1f3f   :  { %v14529_v55 = vpop.eup %14528 }
0x1f40   :  { %v12284_v49 = vrot.slane %v14529_v55, 1  ;;  %v12285_v41 = vrot.slane %v14529_v55, 2  ;;  %v12286_v32 = vrot.slane %v14529_v55, 3  ;;  %v12287_v46 = vrot.slane %v14529_v55, 4 }
0x1f41   :  { %v12288_v9 = vrot.slane %v14529_v55, 5  ;;  %v12289_v23 = vrot.slane %v14529_v55, 6  ;;  %v12290_v16 = vrot.slane %v14529_v55, 7  ;;  %v12299_v1 = vmul.f32 %v14529_v55, %v17055_v24  ;;  %v12999_v24 = vld [vmem:[%s17205_s11 + $0x2] ss:$0 sm:$0xff] }
0x1f42   :  { %v12300_v6 = vmul.f32 %v12284_v49, %v17057_v15  ;;  %v12301_v13 = vmul.f32 %v12285_v41, %v17059_v59  ;;  %v12302_v17 = vmul.f32 %v12286_v32, %v17061_v44  ;;  %v12303_v62 = vmul.f32 %v12287_v46, %v17063_v36 }
0x1f43   :  { %v12304_v38 = vmul.f32 %v12288_v9, %v17065_v45  ;;  %v12305_v21 = vmul.f32 %v12289_v23, %v17067_v26  ;;  %v12306_v42 = vmul.f32 %v12290_v16, %v17069_v30  ;;  %v12313_v27 = vmul.f32 %v12998_v54, %v12299_v1 }
0x1f44   :  { %v12314_v40 = vmul.f32 %v12998_v54, %v12300_v6  ;;  %v12315_v37 = vmul.f32 %v12998_v54, %v12301_v13  ;;  %v12316_v53 = vmul.f32 %v12998_v54, %v12302_v17  ;;  %v12317_v43 = vmul.f32 %v12998_v54, %v12303_v62 }
0x1f45   :  { %v12318_v15 = vmul.f32 %v12998_v54, %v12304_v38  ;;  %v12319_v59 = vmul.f32 %v12998_v54, %v12305_v21  ;;  %v12320_v44 = vmul.f32 %v12998_v54, %v12306_v42  ;;  %v12327_v57 = vadd.f32 %v12999_v24, %v12313_v27 }
0x1f46   :  { %v12328_v25 = vadd.f32 %v12999_v24, %v12314_v40  ;;  %v12329_v36 = vadd.f32 %v12999_v24, %v12315_v37  ;;  %v12330_v47 = vadd.f32 %v12999_v24, %v12316_v53  ;;  %v12331_v45 = vadd.f32 %v12999_v24, %v12317_v43 }
0x1f47   :  { %v12332_v26 = vadd.f32 %v12999_v24, %v12318_v15  ;;  %v12333_v56 = vadd.f32 %v12999_v24, %v12319_v59  ;;  %v12334_v48 = vadd.f32 %v12999_v24, %v12320_v44 }
0x1f48   :  { %v12356_v35 = vrot.slane %v12328_v25, 7  ;;  %v12358_v30 = vrot.slane %v12329_v36, 6  ;;  %v12360_v29 = vrot.slane %v12330_v47, 5  ;;  %v12362_v10 = vrot.slane %v12331_v45, 4 }
0x1f49   :  { %v12364_v18 = vrot.slane %v12332_v26, 3  ;;  %v12366_v2 = vrot.slane %v12333_v56, 2  ;;  %v12368_v52 = vrot.slane %v12334_v48, 1 }
0x1f4a   :  { %v12357_v50 = vsel %vm12075_vm7, %v12356_v35, %v12327_v57 }
0x1f4b   :  { %v12359_v63 = vsel %vm12078_vm8, %v12358_v30, %v12357_v50 }
0x1f4c   :  { %v12361_v0 = vsel %vm12081_vm9, %v12360_v29, %v12359_v63 }
0x1f4d   :  { %v12363_v7 = vsel %vm12084_vm10, %v12362_v10, %v12361_v0 }
0x1f4e   :  { %v12365_v4 = vsel %vm12087_vm11, %v12364_v18, %v12363_v7 }
0x1f4f   :  { %v12367_v14 = vsel %vm12090_vm12, %v12366_v2, %v12365_v4 }
0x1f50   :  { %v12369_v8 = vsel %vm12093_vm13, %v12368_v52, %v12367_v14 }
0x1f51   :  { %14125 = vmatmul.mubr.msk.f32.vlgmr.msra.gmra.mrb[150].mxu0 %vm97_vm0, %v12369_v8 }
0x2024   :  { %v12438_v22 = vpop.f32.mrb[150].mxu0 }
0x2025   :  { %v12439_v19 = vadd.f32 %v13001_v61, %v12438_v22  ;;  %v14126_v5 = vpop.f32.mrb[151].mxu0 }
0x2027   :  { %v12442_v58 = vmax.f32 %v12439_v19, 0.0 }
0x2029   :  { %14144 = vmatmul.mubr.msk.f32.vlgmr.msra.gmra.mrb[148].mxu1 %vm6180_vm5, %v12442_v58 }
0x20fc   :  { %v12529_v34 = vpop.f32.mrb[148].mxu1 }
0x20fd   :  { %v12530_v39 = vadd.f32 %v13012_v33, %v12529_v34  ;;  %v14145_v11 = vpop.f32.mrb[149].mxu1 }
0x20ff   :  { %v12534_v51 = vrot.slane %v12530_v39, 1  ;;  %v12535_v3 = vrot.slane %v12530_v39, 2  ;;  %v12536_v20 = vrot.slane %v12530_v39, 3  ;;  %v12537_v12 = vrot.slane %v12530_v39, 4 }
0x2100   :  { %v12538_v55 = vrot.slane %v12530_v39, 5  ;;  %v12539_v54 = vrot.slane %v12530_v39, 6  ;;  %v12540_v49 = vrot.slane %v12530_v39, 7  ;;  %v12549_v23 = vadd.f32 %v12530_v39, %v12327_v57 }
0x2101   :  { %v12550_v41 = vadd.f32 %v12534_v51, %v12328_v25  ;;  %v12551_v32 = vadd.f32 %v12535_v3, %v12329_v36  ;;  %v12552_v46 = vadd.f32 %v12536_v20, %v12330_v47  ;;  %v12553_v9 = vadd.f32 %v12537_v12, %v12331_v45 }
0x2102   :  { %v12554_v16 = vadd.f32 %v12538_v55, %v12332_v26  ;;  %v12555_v13 = vadd.f32 %v12539_v54, %v12333_v56  ;;  %v12556_v17 = vadd.f32 %v12540_v49, %v12334_v48 }
0x2103   :  { %v12569_v1 = vrot.slane %v12550_v41, 7  ;;  %v12571_v6 = vrot.slane %v12551_v32, 6  ;;  %v12573_v38 = vrot.slane %v12552_v46, 5  ;;  %v12575_v42 = vrot.slane %v12553_v9, 4 }
0x2104   :  { %v12577_v40 = vrot.slane %v12554_v16, 3  ;;  %v12579_v53 = vrot.slane %v12555_v13, 2  ;;  %v12581_v24 = vrot.slane %v12556_v17, 1 }
0x2105   :  { %v12570_v62 = vsel %vm12075_vm7, %v12569_v1, %v12549_v23 }
0x2106   :  { %v12572_v21 = vsel %vm12078_vm8, %v12571_v6, %v12570_v62 }
0x2107   :  { %v12574_v27 = vsel %vm12081_vm9, %v12573_v38, %v12572_v21 }
0x2108   :  { %v12576_v37 = vsel %vm12084_vm10, %v12575_v42, %v12574_v27 }
0x2109   :  { %v12578_v43 = vsel %vm12087_vm11, %v12577_v40, %v12576_v37 }
0x210a   :  { %v12580_v15 = vsel %vm12090_vm12, %v12579_v53, %v12578_v43 }
0x210b   :  { %v12582_v59 = vsel %vm12093_vm13, %v12581_v24, %v12580_v15 }
0x210c   :  { %v12584_v44 = vsel %vm97_vm0, %v12582_v59, 0.0 }
0x210d   :  { %12585 = vadd.xlane.f32.xlu0 %v12584_v44 }
0x219a   :  { %v12586_v25 = vpop.xlane.xlu0 %12585 }
0x219b   :  { %v12587_v36 = vmul.f32 0.03125, %v12586_v25 }
0x219d   :  { %v12589_v47 = vrot.slane %v12587_v36, 1  ;;  %v12590_v45 = vrot.slane %v12587_v36, 2  ;;  %v12591_v57 = vrot.slane %v12587_v36, 3  ;;  %v12592_v26 = vrot.slane %v12587_v36, 4 }
0x219e   :  { %v12593_v35 = vrot.slane %v12587_v36, 5  ;;  %v12594_v30 = vrot.slane %v12587_v36, 6  ;;  %v12595_v56 = vrot.slane %v12587_v36, 7  ;;  %v12604_v48 = vsub.f32 %v12549_v23, %v12587_v36  ;;  %v13017_v36 = vld [vmem:[%s17205_s11 + $0x3] ss:$0 sm:$0xff]  ;;  %s14657_s11 = smov [#allocation7]  }
0x219f   :  { %v12605_v50 = vsub.f32 %v12550_v41, %v12589_v47  ;;  %v12606_v29 = vsub.f32 %v12551_v32, %v12590_v45  ;;  %v12607_v63 = vsub.f32 %v12552_v46, %v12591_v57  ;;  %v12608_v10 = vsub.f32 %v12553_v9, %v12592_v26  ;;  %v13016_v9 = vld [vmem:[%s17204_s10 + $0x3] ss:$0 sm:$0xff]  ;;  %s12731_s30 = sshll.u32 %s14657_s11, 4  ;;  %s12732_s30 = int_to_ptr.vmem [resolvable:$true] %s12731_s30 }
0x21a0   :  { %v12609_v0 = vsub.f32 %v12554_v16, %v12593_v35  ;;  %v12610_v18 = vsub.f32 %v12555_v13, %v12594_v30  ;;  %v12611_v7 = vsub.f32 %v12556_v17, %v12595_v56  ;;  %v12612_v8 = vmul.f32 %v12604_v48, %v12604_v48  ;;  %s14608_s5 = scalar_lea.vmem %s12732_s30, 128  ;;  %p14613_p3 = scmp.lt.s32.totalorder %s12732_s30, %s12732_s30 }
0x21a1   :  { %v12613_v2 = vmul.f32 %v12605_v50, %v12605_v50  ;;  %v12614_v4 = vmul.f32 %v12606_v29, %v12606_v29  ;;  %v12615_v52 = vmul.f32 %v12607_v63, %v12607_v63  ;;  %v12616_v14 = vmul.f32 %v12608_v10, %v12608_v10  ;;  %p14609_p2 = scmp.ne.s32.totalorder %s12732_s30, %s14608_s5  ;;  %p14614_p4 = scmp.lt.s32.totalorder %s14608_s5, %s14608_s5 }
0x21a2   :  { %v12617_v31 = vmul.f32 %v12609_v0, %v12609_v0  ;;  %v12618_v61 = vmul.f32 %v12610_v18, %v12610_v18  ;;  %v12619_v22 = vmul.f32 %v12611_v7, %v12611_v7 }
0x21a3   :  { %v12628_v28 = vrot.slane %v12613_v2, 7  ;;  %v12630_v60 = vrot.slane %v12614_v4, 6  ;;  %v12632_v5 = vrot.slane %v12615_v52, 5  ;;  %v12634_v33 = vrot.slane %v12616_v14, 4  ;;  %p14615_p5 = por %p14614_p4, %p14613_p3 }
0x21a4   :  { %v12636_v39 = vrot.slane %v12617_v31, 3  ;;  %v12638_v51 = vrot.slane %v12618_v61, 2  ;;  %v12640_v20 = vrot.slane %v12619_v22, 1 }
0x21a5   :  { %v12629_v19 = vsel %vm12075_vm7, %v12628_v28, %v12612_v8  ;;  %p14616_p6 = pnand %p14615_p5, %p14609_p2 }
0x21a6   :  { %v12631_v58 = vsel %vm12078_vm8, %v12630_v60, %v12629_v19 }
0x21a7   :  { %v12633_v34 = vsel %vm12081_vm9, %v12632_v5, %v12631_v58 }
0x21a8   :  { %v12635_v11 = vsel %vm12084_vm10, %v12634_v33, %v12633_v34 }
0x21a9   :  { %v12637_v3 = vsel %vm12087_vm11, %v12636_v39, %v12635_v11 }
0x21aa   :  { %v12639_v12 = vsel %vm12090_vm12, %v12638_v51, %v12637_v3 }
0x21ab   :  { %v12641_v55 = vsel %vm12093_vm13, %v12640_v20, %v12639_v12 }
0x21ac   :  { %v12643_v54 = vsel %vm97_vm0, %v12641_v55, 0.0 }
0x21ad   :  { %12644 = vadd.xlane.f32.xlu0 %v12643_v54 }
0x223a   :  { %v12645_v49 = vpop.xlane.xlu0 %12644 }
0x223b   :  { %v12646_v41 = vmul.f32 0.03125, %v12645_v49 }
0x223d   :  { %v12647_v32 = vadd.f32 1e-08, %v12646_v41 }
0x223f   :  { %14530 = vrsqrt.f32 %v12647_v32 }
0x2249   :  { %v14531_v46 = vpop.eup %14530 }
0x224a   :  { %v12650_v23 = vrot.slane %v14531_v46, 1  ;;  %v12651_v16 = vrot.slane %v14531_v46, 2  ;;  %v12652_v1 = vrot.slane %v14531_v46, 3  ;;  %v12653_v6 = vrot.slane %v14531_v46, 4 }
0x224b   :  { %v12654_v13 = vrot.slane %v14531_v46, 5  ;;  %v12655_v17 = vrot.slane %v14531_v46, 6  ;;  %v12656_v62 = vrot.slane %v14531_v46, 7  ;;  %v12665_v38 = vmul.f32 %v14531_v46, %v12604_v48 }
0x224c   :  { %v12666_v21 = vmul.f32 %v12650_v23, %v12605_v50  ;;  %v12667_v42 = vmul.f32 %v12651_v16, %v12606_v29  ;;  %v12668_v27 = vmul.f32 %v12652_v1, %v12607_v63  ;;  %v12669_v40 = vmul.f32 %v12653_v6, %v12608_v10 }
0x224d   :  { %v12670_v37 = vmul.f32 %v12654_v13, %v12609_v0  ;;  %v12671_v53 = vmul.f32 %v12655_v17, %v12610_v18  ;;  %v12672_v43 = vmul.f32 %v12656_v62, %v12611_v7  ;;  %v12679_v24 = vmul.f32 %v13016_v9, %v12665_v38 }
0x224e   :  { %v12680_v15 = vmul.f32 %v13016_v9, %v12666_v21  ;;  %v12681_v59 = vmul.f32 %v13016_v9, %v12667_v42  ;;  %v12682_v44 = vmul.f32 %v13016_v9, %v12668_v27  ;;  %v12683_v25 = vmul.f32 %v13016_v9, %v12669_v40 }
0x224f   :  { %v12684_v47 = vmul.f32 %v13016_v9, %v12670_v37  ;;  %v12685_v45 = vmul.f32 %v13016_v9, %v12671_v53  ;;  %v12686_v57 = vmul.f32 %v13016_v9, %v12672_v43  ;;  %v12693_v48 = vadd.f32 %v13017_v36, %v12679_v24 }
0x2250   :  { %v12694_v26 = vadd.f32 %v13017_v36, %v12680_v15  ;;  %v12695_v35 = vadd.f32 %v13017_v36, %v12681_v59  ;;  %v12696_v30 = vadd.f32 %v13017_v36, %v12682_v44  ;;  %v12697_v56 = vadd.f32 %v13017_v36, %v12683_v25 }
0x2251   :  { %v12698_v50 = vadd.f32 %v13017_v36, %v12684_v47  ;;  %v12699_v10 = vadd.f32 %v13017_v36, %v12685_v45  ;;  %v12700_v0 = vadd.f32 %v13017_v36, %v12686_v57 }
0x2252   :  { %v12709_v29 = vrot.slane %v12694_v26, 7  ;;  %v12711_v63 = vrot.slane %v12695_v35, 6  ;;  %v12713_v7 = vrot.slane %v12696_v30, 5  ;;  %v12715_v4 = vrot.slane %v12697_v56, 4 }
0x2253   :  { %v12717_v14 = vrot.slane %v12698_v50, 3  ;;  %v12719_v31 = vrot.slane %v12699_v10, 2  ;;  %v12721_v60 = vrot.slane %v12700_v0, 1 }
0x2254   :  { %v12710_v18 = vsel %vm12075_vm7, %v12709_v29, %v12693_v48 }
0x2255   :  { %v12712_v2 = vsel %vm12078_vm8, %v12711_v63, %v12710_v18 }
0x2256   :  { %v12714_v52 = vsel %vm12081_vm9, %v12713_v7, %v12712_v2 }
0x2257   :  { %v12716_v8 = vsel %vm12084_vm10, %v12715_v4, %v12714_v52 }
0x2258   :  { %v12718_v28 = vsel %vm12087_vm11, %v12717_v14, %v12716_v8 }
0x2259   :  { %v12720_v61 = vsel %vm12090_vm12, %v12719_v31, %v12718_v28 }
0x225a   :  { %v12722_v22 = vsel %vm12093_vm13, %v12721_v60, %v12720_v61 }
0x225b   :  { %12724 = vst.msk [vmem:[#allocation7] sm:$0xff] %vm97_vm0, %v12722_v22 }
0x225c   :  { %14619 = shalt.err (!%p14616_p6)
}
0x225d   :  { %s14620_s17 = scalar_lea.hbm %s17206_s12, 128 }
0x225e   :  { %p14621_p7 = scmp.ne.s32.totalorder %s17206_s12, %s14620_s17  ;;  %p14624_p8 = scmp.lt.u32.totalorder %s14620_s17, %s17206_s12 }
0x2260   :  { %p14626_p9 = pnand %p14624_p8, %p14621_p7 }
0x2262   :  { %14629 = shalt.err (!%p14626_p9)
}
0x2263   :  { %12734 = dma.vmem_to_hbm [thread:$0]  %s12732_s30, 128, %s17206_s12, [#allocation4]  }
0x2264   :  { %14634 = dma.done.wait [#allocation4], 128  }
0x2265   :  { %14635 = vsyncadd [#allocation4], 4294967168 }
0x2266   :  { %12738 = vsyncpa [#allocation3], 1 }
0x2267   :  { %12739 = vsyncpa [#allocation6], 1 }
0x2268   :  { %12740 = vsyncpa [#allocation4], 1 }

</bundles_post_ra>
